<compile_context>
chip_gen: v5e
topology: v5e:2x2
jax: 0.10.0
libtpu: 0.0.40
codegen_flags: <defaults>
</compile_context>

<pallas_src>
import functools

import jax
import jax.numpy as jnp
from jax import lax
from jax.experimental import pallas as pl
from jax.experimental.pallas import tpu as pltpu

EPS = 1e-5
MXU_DTYPE = jnp.bfloat16   # MXU operand dtype; accumulation stays float32.


def _gelu(x):
    # TODO(synk): HF wav2vec2 uses exact erf-GELU; tanh approximation is used
    # because an erf lowering inside Mosaic is not guaranteed.
    return jax.nn.gelu(x, approximate=True)


def _ln_rows(x, g, b):
    # Row-wise LayerNorm over the last dim with affine; x:(M,D), g/b:(1,D).
    mean = jnp.mean(x, axis=-1, keepdims=True)
    var = jnp.mean((x - mean) ** 2, axis=-1, keepdims=True)
    return (x - mean) * lax.rsqrt(var + EPS) * g + b


def _mm(a, b):
    # MXU matmul: bf16 operands, f32 accumulation.
    return jnp.dot(a.astype(MXU_DTYPE), b.astype(MXU_DTYPE),
                   preferred_element_type=jnp.float32)


# ----------------------------------------------------------------------------
# Kernels
# ----------------------------------------------------------------------------
def _global_ln_kernel(x_ref, o_ref):
    # F.layer_norm(x, x.shape): normalize over *all* elements, no affine.
    x = x_ref[...]
    mean = jnp.mean(x)
    var = jnp.mean((x - mean) ** 2)
    o_ref[...] = (x - mean) * lax.rsqrt(var + EPS)


def global_layer_norm(x):
    # TODO(synk): single whole-array block; real audio lengths need a tiled
    # two-pass (reduce, then normalize) formulation.
    return pl.pallas_call(
        _global_ln_kernel,
        grid=(1,),
        in_specs=[pl.BlockSpec(x.shape, lambda i: (0,) * x.ndim)],
        out_specs=pl.BlockSpec(x.shape, lambda i: (0,) * x.ndim),
        out_shape=jax.ShapeDtypeStruct(x.shape, x.dtype),
    )(x)


def _conv0_gn_kernel(p_ref, w_ref, gn_ref, o_ref):
    # One batch element: conv0 (im2col matmul, no bias) -> GroupNorm with
    # num_groups == num_channels (per-channel stats over time) -> GELU.
    # Kept at grid=(B,) because GroupNorm stats are per batch element; B=2
    # also gives v7x's two TensorCores a parallel axis.
    y = _mm(p_ref[0], w_ref[...])                          # (L0, C0) f32
    mean = jnp.mean(y, axis=0, keepdims=True)
    var = jnp.mean((y - mean) ** 2, axis=0, keepdims=True)
    yn = (y - mean) * lax.rsqrt(var + EPS)
    o_ref[0] = _gelu(yn * gn_ref[0:1, :] + gn_ref[1:2, :])


def conv0_gn_gelu(patches, w_mat, gn_vec):
    B, L0, CK = patches.shape
    C0 = w_mat.shape[1]
    return pl.pallas_call(
        _conv0_gn_kernel,
        grid=(B,),
        in_specs=[pl.BlockSpec((1, L0, CK), lambda b: (b, 0, 0)),
                  pl.BlockSpec((CK, C0), lambda b: (0, 0)),
                  pl.BlockSpec((2, C0), lambda b: (0, 0))],
        out_specs=pl.BlockSpec((1, L0, C0), lambda b: (b, 0, 0)),
        out_shape=jax.ShapeDtypeStruct((B, L0, C0), jnp.float32),
        compiler_params=pltpu.CompilerParams(dimension_semantics=("parallel",)),
    )(patches, w_mat, gn_vec)


def _conv1_fp_kernel(p_ref, w_ref, fpw_ref, vec_ref, o_ref, *, c1, hidden):
    # conv1 (im2col matmul) + GELU + feature-projection LN + Linear, fused.
    # All ops are row-wise, so B is folded into the matmul M dim (patches come
    # in as (B*T, C0*K1)) -> one grid step instead of B serial steps.
    y = _gelu(_mm(p_ref[...], w_ref[...]))                 # (B*T, C1)
    y = _ln_rows(y, vec_ref[0:1, :c1], vec_ref[1:2, :c1])
    o_ref[...] = _mm(y, fpw_ref[...]) + vec_ref[2:3, :hidden]


def conv1_feature_projection(patches, w_mat, fp_w, vec, hidden):
    M, CK = patches.shape
    C1 = w_mat.shape[1]
    kern = functools.partial(_conv1_fp_kernel, c1=C1, hidden=hidden)
    return pl.pallas_call(
        kern,
        grid=(1,),
        in_specs=[pl.BlockSpec((M, CK), lambda i: (0, 0)),
                  pl.BlockSpec((CK, C1), lambda i: (0, 0)),
                  pl.BlockSpec((C1, hidden), lambda i: (0, 0)),
                  pl.BlockSpec(vec.shape, lambda i: (0, 0))],
        out_specs=pl.BlockSpec((M, hidden), lambda i: (0, 0)),
        out_shape=jax.ShapeDtypeStruct((M, hidden), jnp.float32),
    )(patches, w_mat, fp_w, vec)


def _posconv_ln_kernel(p_ref, w_ref, h_ref, vec_ref, o_ref):
    # Positional conv embedding (block-diagonal grouped conv) + bias + GELU +
    # residual add + encoder LayerNorm, fused; B folded into M (row-wise ops).
    # Same-pad trimming is done by only building the first T patches per batch.
    y = _gelu(_mm(p_ref[...], w_ref[...]) + vec_ref[0:1, :])   # (B*T, H)
    z = h_ref[...] + y
    o_ref[...] = _ln_rows(z, vec_ref[1:2, :], vec_ref[2:3, :])


def posconv_residual_ln(patches, w_mat, h, vec):
    M, HK = patches.shape
    H = h.shape[1]
    return pl.pallas_call(
        _posconv_ln_kernel,
        grid=(1,),
        in_specs=[pl.BlockSpec((M, HK), lambda i: (0, 0)),
                  pl.BlockSpec((HK, H), lambda i: (0, 0)),
                  pl.BlockSpec((M, H), lambda i: (0, 0)),
                  pl.BlockSpec((3, H), lambda i: (0, 0))],
        out_specs=pl.BlockSpec((M, H), lambda i: (0, 0)),
        out_shape=jax.ShapeDtypeStruct((M, H), jnp.float32),
    )(patches, w_mat, h, vec)


def _encoder_stack_kernel(x_ref, wqkv_ref, wo_ref, w1_ref, w2_ref, vec_ref,
                          o_ref, h_scr, *, heads, hidden, ffn):
    # Full post-norm wav2vec2 encoder STACK for one batch element: grid axis 1
    # iterates layers; the hidden state stays resident in the h_scr VMEM
    # scratch across layers (no HBM round trips between layers).
    l = pl.program_id(1)

    @pl.when(l == 0)
    def _():
        h_scr[...] = x_ref[0]

    x = h_scr[...]                                         # (T, H) f32
    vec = vec_ref[0]                                       # (8, maxn) f32
    dh = hidden // heads

    # Fused QKV: one (T,H)@(H,3H) MXU matmul; 1/sqrt(Dh) already folded into
    # Wq/bq at prepare time.
    qkv = _mm(x, wqkv_ref[0]) + vec[0:1, :3 * hidden]      # (T, 3H)
    q = qkv[:, :hidden]
    k = qkv[:, hidden:2 * hidden]
    v = qkv[:, 2 * hidden:3 * hidden]

    # TODO(synk): at production head counts (12-16) replace this static unroll
    # with a batched (heads, T, Dh) einsum / flash-style KV tiling to avoid
    # vreg-pressure blowup and T x T score materialization.
    ctxs = []
    for hh in range(heads):
        sl = slice(hh * dh, (hh + 1) * dh)
        s = lax.dot_general(q[:, sl].astype(MXU_DTYPE), k[:, sl].astype(MXU_DTYPE),
                            (((1,), (1,)), ((), ())),
                            preferred_element_type=jnp.float32)   # (T, T)
        s = s - jnp.max(s, axis=-1, keepdims=True)
        p = jnp.exp(s)
        ctx = _mm(p, v[:, sl])                                    # (T, Dh)
        # Normalize the (T, Dh) context instead of the (T, T) probabilities.
        ctx = ctx * pl.reciprocal(jnp.sum(p, axis=-1, keepdims=True), approx=True)
        ctxs.append(ctx)
    ctx = jnp.concatenate(ctxs, axis=-1)                   # (T, H)

    # Single out-projection over the concatenated heads.
    ao = _mm(ctx, wo_ref[0]) + vec[1:2, :hidden]

    h1 = _ln_rows(x + ao, vec[2:3, :hidden], vec[3:4, :hidden])
    ff = _gelu(_mm(h1, w1_ref[0]) + vec[4:5, :ffn])
    ff = _mm(ff, w2_ref[0]) + vec[5:6, :hidden]
    h2 = _ln_rows(h1 + ff, vec[6:7, :hidden], vec[7:8, :hidden])

    h_scr[...] = h2

    @pl.when(l == pl.num_programs(1) - 1)
    def _():
        # TODO(synk): at production sizes present a lane-dense (1, T*H) output
        # slab instead of a 32-lane-wide block (masked vst otherwise).
        o_ref[0] = h2


def encoder_stack(h, sp, heads):
    B, T, H = h.shape
    L = sp["wqkv"].shape[0]
    F = sp["w1"].shape[2]
    maxn = sp["vec"].shape[2]
    kern = functools.partial(_encoder_stack_kernel, heads=heads, hidden=H, ffn=F)
    wmap = lambda b, l: (l, 0, 0)
    xmap = lambda b, l: (b, 0, 0)
    return pl.pallas_call(
        kern,
        grid=(B, L),
        in_specs=[pl.BlockSpec((1, T, H), xmap),
                  pl.BlockSpec((1, H, 3 * H), wmap),
                  pl.BlockSpec((1, H, H), wmap),
                  pl.BlockSpec((1, H, F), wmap),
                  pl.BlockSpec((1, F, H), wmap),
                  pl.BlockSpec((1, 8, maxn), wmap)],
        out_specs=pl.BlockSpec((1, T, H), xmap),
        out_shape=jax.ShapeDtypeStruct((B, T, H), jnp.float32),
        scratch_shapes=[pltpu.VMEM((T, H), jnp.float32)],
        compiler_params=pltpu.CompilerParams(
            dimension_semantics=("parallel", "arbitrary")),
    )(h, sp["wqkv"], sp["wo"], sp["w1"], sp["w2"], sp["vec"])


# ----------------------------------------------------------------------------
# Host-side glue: im2col window extraction (XLA) + parameter repacking.
# ----------------------------------------------------------------------------
def im2col_1d(x, k, stride):
    # x: (B, C, L) -> patches (B, L_out, C*k), channel-major flattening.
    # TODO(synk): could be moved in-kernel (K shifted matmuls over a VMEM row)
    # to avoid the Kx HBM duplication at real audio lengths.
    B, C, L = x.shape
    L_out = (L - k) // stride + 1
    idx = jnp.arange(L_out)[:, None] * stride + jnp.arange(k)[None, :]
    patches = x[:, :, idx]                                 # (B, C, L_out, k)
    return jnp.transpose(patches, (0, 2, 1, 3)).reshape(B, L_out, C * k)


def prepare_params(params, cfg):
    """Repack PyTorch-layout params into kernel layouts (done once):
    - MXU weight matrices cast to bf16; biases / norm params stay f32.
    - Wq/Wk/Wv fused into one (H, 3H) weight; 1/sqrt(Dh) folded into Wq/bq.
    - Per-layer weights stacked on a leading layer axis (single-launch stack).
    - Grouped pos-conv expanded to one block-diagonal (H*K, H) matmul weight.
    - Small per-kernel vectors packed into single sublane-aligned 2-D slabs.
    """
    H, F, heads = cfg["hidden"], cfg["ffn"], cfg["heads"]
    Dh = H // heads
    C0, C1 = cfg["conv_dims"]
    K0, K1 = cfg["kernels"]
    Kp, G = cfg["pos_kernel"], cfg["pos_groups"]
    mx = lambda w: w.astype(MXU_DTYPE)

    out = {
        "conv0_w": mx(params["conv0_w"].reshape(C0, 1 * K0).T),
        "gn_vec": jnp.stack([params["gn_g"], params["gn_b"]]),
        "conv1_w": mx(params["conv1_w"].reshape(C1, C0 * K1).T),
        "fp_w": mx(params["fp_w"]),
    }
    maxfp = max(C1, H)
    fp_vec = jnp.zeros((3, maxfp), jnp.float32)
    fp_vec = fp_vec.at[0, :C1].set(params["fp_ln_g"])
    fp_vec = fp_vec.at[1, :C1].set(params["fp_ln_b"])
    fp_vec = fp_vec.at[2, :H].set(params["fp_b"])
    out["fp_vec"] = fp_vec

    # Grouped positional conv -> block-diagonal full-conv weight (one matmul).
    # TODO(synk): keep this grouped (per-group matmuls) at production sizes —
    # H=768/G=16 dense expansion is a 16x FLOP / weight-byte blowup. Also HF
    # applies weight_norm to this weight; synthetic init skips it.
    gin = gout = H // G
    w_full = jnp.zeros((H, H, Kp), jnp.float32)
    for g in range(G):
        w_full = w_full.at[g * gout:(g + 1) * gout, g * gin:(g + 1) * gin, :].set(
            params["pos_w"][g * gout:(g + 1) * gout])
    out["pos_w"] = mx(w_full.reshape(H, H * Kp).T)
    out["pos_vec"] = jnp.stack(
        [params["pos_b"], params["enc_ln_g"], params["enc_ln_b"]])

    # Encoder layers: fused QKV, folded scale, packed vec slab, layer-stacked.
    scale = 1.0 / float(Dh) ** 0.5
    maxn = max(3 * H, F)
    wqkv_l, wo_l, w1_l, w2_l, vec_l = [], [], [], [], []
    for p in params["layers"]:
        wqkv = jnp.concatenate([p["wq"] * scale, p["wk"], p["wv"]], axis=1)  # (H, 3H)
        vec = jnp.zeros((8, maxn), jnp.float32)
        vec = vec.at[0, :H].set(p["bq"] * scale)
        vec = vec.at[0, H:2 * H].set(p["bk"])
        vec = vec.at[0, 2 * H:3 * H].set(p["bv"])
        vec = vec.at[1, :H].set(p["bo"])
        vec = vec.at[2, :H].set(p["ln1_g"])
        vec = vec.at[3, :H].set(p["ln1_b"])
        vec = vec.at[4, :F].set(p["b1"])
        vec = vec.at[5, :H].set(p["b2"])
        vec = vec.at[6, :H].set(p["ln2_g"])
        vec = vec.at[7, :H].set(p["ln2_b"])
        wqkv_l.append(mx(wqkv))
        wo_l.append(mx(p["wo"]))
        w1_l.append(mx(p["w1"]))
        w2_l.append(mx(p["w2"]))
        vec_l.append(vec)
    out["stack"] = {
        "wqkv": jnp.stack(wqkv_l),     # (L, H, 3H) bf16
        "wo": jnp.stack(wo_l),         # (L, H, H)  bf16
        "w1": jnp.stack(w1_l),         # (L, H, F)  bf16
        "w2": jnp.stack(w2_l),         # (L, F, H)  bf16
        "vec": jnp.stack(vec_l),       # (L, 8, maxn) f32
    }
    return out


def transformers_encoder_forward(wav, kp, cfg):
    # forward == extract_features under no_grad (frozen / eval encoder).
    K0, K1 = cfg["kernels"]
    S0, S1 = cfg["strides"]
    H, Kp = cfg["hidden"], cfg["pos_kernel"]
    B = wav.shape[0]

    # 1) input_layer_norm: F.layer_norm(wav, wav.shape)
    x = global_layer_norm(wav)

    # 2+3) conv feature extractor + feature projection (fused kernels).
    p0 = im2col_1d(x[:, None, :], K0, S0)                  # (B, L0, 1*K0)
    c0 = conv0_gn_gelu(p0, kp["conv0_w"], kp["gn_vec"])    # (B, L0, C0)
    p1 = im2col_1d(jnp.transpose(c0, (0, 2, 1)), K1, S1)   # (B, T, C0*K1)
    _, T, CK1 = p1.shape
    h = conv1_feature_projection(p1.reshape(B * T, CK1), kp["conv1_w"],
                                 kp["fp_w"], kp["fp_vec"], H)        # (B*T, H)

    # 4) encoder: pos-conv-embed + residual + LN (fused, B folded into M).
    pad = Kp // 2
    hp = jnp.pad(jnp.transpose(h.reshape(B, T, H), (0, 2, 1)),
                 ((0, 0), (0, 0), (pad, pad)))
    # Same-pad trim = only build the first T output positions per batch.
    pp = im2col_1d(hp, Kp, 1)[:, :T, :]                    # (B, T, H*Kp)
    h = posconv_residual_ln(pp.reshape(B * T, H * Kp), kp["pos_w"],
                            h, kp["pos_vec"])              # (B*T, H)

    # 5) all encoder layers in ONE pallas_call (h resident in VMEM across L).
    h = encoder_stack(h.reshape(B, T, H), kp["stack"], cfg["heads"])

    # 6) output_norm: F.layer_norm(out, out.shape) on a lane-dense (B, T*H) slab.
    return global_layer_norm(h.reshape(B, T * H)).reshape(B, T, H)


# ----------------------------------------------------------------------------
# Deterministic synthetic parameter init (PyTorch-style layouts, no checkpoint).
# ----------------------------------------------------------------------------
def init_params(key, cfg):
    keys = iter(jax.random.split(key, 128))

    def rnd(shape, scale=0.02):
        return scale * jax.random.normal(next(keys), shape, dtype=jnp.float32)

    H, F = cfg["hidden"], cfg["ffn"]
    C0, C1 = cfg["conv_dims"]
    params = {
        "conv0_w": rnd((C0, 1, cfg["kernels"][0])),
        "gn_g": jnp.ones((C0,), jnp.float32),
        "gn_b": jnp.zeros((C0,), jnp.float32),
        "conv1_w": rnd((C1, C0, cfg["kernels"][1])),
        "fp_ln_g": jnp.ones((C1,), jnp.float32),
        "fp_ln_b": jnp.zeros((C1,), jnp.float32),
        "fp_w": rnd((C1, H)),
        "fp_b": jnp.zeros((H,), jnp.float32),
        "pos_w": rnd((H, H // cfg["pos_groups"], cfg["pos_kernel"])),
        "pos_b": jnp.zeros((H,), jnp.float32),
        "enc_ln_g": jnp.ones((H,), jnp.float32),
        "enc_ln_b": jnp.zeros((H,), jnp.float32),
        "layers": [],
    }
    for _ in range(cfg["num_layers"]):
        params["layers"].append({
            "wq": rnd((H, H)), "bq": jnp.zeros((H,), jnp.float32),
            "wk": rnd((H, H)), "bk": jnp.zeros((H,), jnp.float32),
            "wv": rnd((H, H)), "bv": jnp.zeros((H,), jnp.float32),
            "wo": rnd((H, H)), "bo": jnp.zeros((H,), jnp.float32),
            "ln1_g": jnp.ones((H,), jnp.float32), "ln1_b": jnp.zeros((H,), jnp.float32),
            "w1": rnd((H, F)), "b1": jnp.zeros((F,), jnp.float32),
            "w2": rnd((F, H)), "b2": jnp.zeros((H,), jnp.float32),
            "ln2_g": jnp.ones((H,), jnp.float32), "ln2_b": jnp.zeros((H,), jnp.float32),
        })
    return params


if __name__ == "__main__":
    cfg = dict(
        conv_dims=[32, 32],
        kernels=[10, 3],
        strides=[5, 2],
        hidden=32,
        heads=2,
        ffn=64,
        num_layers=2,
        pos_kernel=4,
        pos_groups=2,
    )

    key = jax.random.PRNGKey(0)
    k_wav, k_param = jax.random.split(key)
    wav = jax.random.normal(k_wav, (2, 330), dtype=jnp.float32)   # (B, samples)
    params = init_params(k_param, cfg)
    kparams = prepare_params(params, cfg)

    fwd = jax.jit(functools.partial(transformers_encoder_forward, cfg=cfg))
    out = jax.block_until_ready(fwd(wav, kparams))

    # Expected output: (B, T, hidden) with T = ((330-10)//5+1 - 3)//2 + 1 = 32
    assert out.shape == (2, 32, 32), out.shape
    assert jnp.isfinite(out).all()
    print("KERNEL_OK")
</pallas_src>

<mosaic_0001>
module attributes {stable_mosaic.version = 11 : i64} {
  func.func @_global_ln_kernel(%arg0: i32, %arg1: memref<2x330xf32, #tpu.memory_space<vmem>>, %arg2: memref<2x330xf32, #tpu.memory_space<vmem>>) attributes {dimension_semantics = [#tpu.dimension_semantics<arbitrary>], iteration_bounds = array<i64: 1>, scalar_prefetch = 0 : i64, scratch_operands = 0 : i64, tpu.core_type = #tpu.core_type<tc>, window_params = [{pipeline_mode = #tpu.pipeline_mode<synchronous>, transform_indices = @transform_0, window_bounds = array<i64: 2, 330>}, {pipeline_mode = #tpu.pipeline_mode<synchronous>, transform_indices = @transform_1, window_bounds = array<i64: 2, 330>}]} {
    %c0 = arith.constant 0 : index
    %c0_0 = arith.constant 0 : index
    %0 = vector.load %arg1[%c0, %c0_0] : memref<2x330xf32, #tpu.memory_space<vmem>>, vector<2x330xf32>
    %1 = vector.shape_cast %0 : vector<2x330xf32> to vector<1x2x330xf32>
    %cst = arith.constant dense<0.000000e+00> : vector<1xf32>
    %2 = vector.multi_reduction <add>, %1, %cst [1, 2] : vector<1x2x330xf32> to vector<1xf32>
    %3 = vector.shape_cast %2 : vector<1xf32> to vector<1x1x1xf32>
    %4 = vector.extract %3[0, 0, 0] : f32 from vector<1x1x1xf32>
    %cst_1 = arith.constant 6.600000e+02 : f32
    %5 = arith.divf %4, %cst_1 : f32
    %6 = vector.broadcast %5 : f32 to vector<2x330xf32>
    %7 = arith.subf %0, %6 : vector<2x330xf32>
    %8 = arith.mulf %7, %7 : vector<2x330xf32>
    %9 = vector.shape_cast %8 : vector<2x330xf32> to vector<1x2x330xf32>
    %cst_2 = arith.constant dense<0.000000e+00> : vector<1xf32>
    %10 = vector.multi_reduction <add>, %9, %cst_2 [1, 2] : vector<1x2x330xf32> to vector<1xf32>
    %11 = vector.shape_cast %10 : vector<1xf32> to vector<1x1x1xf32>
    %12 = vector.extract %11[0, 0, 0] : f32 from vector<1x1x1xf32>
    %cst_3 = arith.constant 6.600000e+02 : f32
    %13 = arith.divf %12, %cst_3 : f32
    %14 = vector.broadcast %5 : f32 to vector<2x330xf32>
    %15 = arith.subf %0, %14 : vector<2x330xf32>
    %cst_4 = arith.constant 9.99999974E-6 : f32
    %16 = arith.addf %13, %cst_4 : f32
    %17 = math.rsqrt %16 : f32
    %18 = vector.broadcast %17 : f32 to vector<2x330xf32>
    %19 = arith.mulf %15, %18 : vector<2x330xf32>
    %c0_5 = arith.constant 0 : index
    %c0_6 = arith.constant 0 : index
    %20 = vector.load %arg2[%c0_5, %c0_6] : memref<2x330xf32, #tpu.memory_space<vmem>>, vector<2x330xf32>
    tpu.vector_store %arg2[%c0_5, %c0_6], %19 {strides = array<i32>} : memref<2x330xf32, #tpu.memory_space<vmem>>, vector<2x330xf32>,
    return
  }
  func.func @transform_0(%arg0: i32) -> (i32, i32) {
    %c0_i32 = arith.constant 0 : i32
    %c0_i32_0 = arith.constant 0 : i32
    %c0_i32_1 = arith.constant 0 : i32
    return %c0_i32, %c0_i32_0 : i32, i32
  }
  func.func @transform_1(%arg0: i32) -> (i32, i32) {
    %c0_i32 = arith.constant 0 : i32
    %c0_i32_0 = arith.constant 0 : i32
    %c0_i32_1 = arith.constant 0 : i32
    return %c0_i32, %c0_i32_0 : i32, i32
  }
}

module attributes {stable_mosaic.version = 11 : i64} {
  func.func @_conv0_gn_kernel(%arg0: i32, %arg1: memref<1x65x10xf32, #tpu.memory_space<vmem>>, %arg2: memref<10x32xbf16, #tpu.memory_space<vmem>>, %arg3: memref<2x32xf32, #tpu.memory_space<vmem>>, %arg4: memref<1x65x32xf32, #tpu.memory_space<vmem>>) attributes {dimension_semantics = [#tpu.dimension_semantics<parallel>], iteration_bounds = array<i64: 2>, scalar_prefetch = 0 : i64, scratch_operands = 0 : i64, tpu.core_type = #tpu.core_type<tc>, window_params = [{transform_indices = @transform_0, window_bounds = array<i64: 1, 65, 10>}, {pipeline_mode = #tpu.pipeline_mode<synchronous>, transform_indices = @transform_1, window_bounds = array<i64: 10, 32>}, {pipeline_mode = #tpu.pipeline_mode<synchronous>, transform_indices = @transform_2, window_bounds = array<i64: 2, 32>}, {transform_indices = @transform_3, window_bounds = array<i64: 1, 65, 32>}]} {
    %c0 = arith.constant 0 : index
    %c0_0 = arith.constant 0 : index
    %c0_1 = arith.constant 0 : index
    %0 = vector.load %arg1[%c0, %c0_0, %c0_1] : memref<1x65x10xf32, #tpu.memory_space<vmem>>, vector<1x65x10xf32>
    %1 = vector.shape_cast %0 : vector<1x65x10xf32> to vector<65x10xf32>
    %c0_2 = arith.constant 0 : index
    %c0_3 = arith.constant 0 : index
    %2 = vector.load %arg2[%c0_2, %c0_3] : memref<10x32xbf16, #tpu.memory_space<vmem>>, vector<10x32xbf16>
    %3 = arith.truncf %1 : vector<65x10xf32> to vector<65x10xbf16>
    %cst = arith.constant dense<0.000000e+00> : vector<65x32xf32>
    %4 = tpu.matmul %3, %2, %cst {dimension_numbers = #tpu.dot_dimension_numbers<[1], [0], [0], [1], [0, 0, 1, 1], [], []>} : vector<65x10xbf16>, vector<10x32xbf16>, vector<65x32xf32> -> vector<65x32xf32>
    %cst_4 = arith.constant dense<0.000000e+00> : vector<32xf32>
    %5 = vector.multi_reduction <add>, %4, %cst_4 [0] : vector<65x32xf32> to vector<32xf32>
    %6 = vector.shape_cast %5 : vector<32xf32> to vector<1x32xf32>
    %cst_5 = arith.constant 6.500000e+01 : f32
    %7 = vector.broadcast %cst_5 : f32 to vector<1x32xf32>
    %8 = arith.divf %6, %7 : vector<1x32xf32>
    %9 = vector.broadcast %8 : vector<1x32xf32> to vector<65x32xf32>
    %10 = arith.subf %4, %9 : vector<65x32xf32>
    %11 = arith.mulf %10, %10 : vector<65x32xf32>
    %cst_6 = arith.constant dense<0.000000e+00> : vector<32xf32>
    %12 = vector.multi_reduction <add>, %11, %cst_6 [0] : vector<65x32xf32> to vector<32xf32>
    %13 = vector.shape_cast %12 : vector<32xf32> to vector<1x32xf32>
    %cst_7 = arith.constant 6.500000e+01 : f32
    %14 = vector.broadcast %cst_7 : f32 to vector<1x32xf32>
    %15 = arith.divf %13, %14 : vector<1x32xf32>
    %16 = vector.broadcast %8 : vector<1x32xf32> to vector<65x32xf32>
    %17 = arith.subf %4, %16 : vector<65x32xf32>
    %cst_8 = arith.constant 9.99999974E-6 : f32
    %18 = vector.broadcast %cst_8 : f32 to vector<1x32xf32>
    %19 = arith.addf %15, %18 : vector<1x32xf32>
    %20 = math.rsqrt %19 : vector<1x32xf32>
    %21 = vector.broadcast %20 : vector<1x32xf32> to vector<65x32xf32>
    %22 = arith.mulf %17, %21 : vector<65x32xf32>
    %c0_9 = arith.constant 0 : index
    %c0_10 = arith.constant 0 : index
    %23 = vector.load %arg3[%c0_9, %c0_10] : memref<2x32xf32, #tpu.memory_space<vmem>>, vector<1x32xf32>
    %24 = vector.broadcast %23 : vector<1x32xf32> to vector<65x32xf32>
    %25 = arith.mulf %22, %24 : vector<65x32xf32>
    %c1 = arith.constant 1 : index
    %c0_11 = arith.constant 0 : index
    %26 = vector.load %arg3[%c1, %c0_11] : memref<2x32xf32, #tpu.memory_space<vmem>>, vector<1x32xf32>
    %27 = vector.broadcast %26 : vector<1x32xf32> to vector<65x32xf32>
    %28 = arith.addf %25, %27 : vector<65x32xf32>
    %29 = arith.mulf %28, %28 : vector<65x32xf32>
    %30 = arith.mulf %28, %29 : vector<65x32xf32>
    %cst_12 = arith.constant 4.471500e-02 : f32
    %31 = vector.broadcast %cst_12 : f32 to vector<65x32xf32>
    %32 = arith.mulf %31, %30 : vector<65x32xf32>
    %33 = arith.addf %28, %32 : vector<65x32xf32>
    %cst_13 = arith.constant 0.797884583 : f32
    %34 = vector.broadcast %cst_13 : f32 to vector<65x32xf32>
    %35 = arith.mulf %34, %33 : vector<65x32xf32>
    %36 = math.tanh %35 : vector<65x32xf32>
    %cst_14 = arith.constant 1.000000e+00 : f32
    %37 = vector.broadcast %cst_14 : f32 to vector<65x32xf32>
    %38 = arith.addf %37, %36 : vector<65x32xf32>
    %cst_15 = arith.constant 5.000000e-01 : f32
    %39 = vector.broadcast %cst_15 : f32 to vector<65x32xf32>
    %40 = arith.mulf %39, %38 : vector<65x32xf32>
    %41 = arith.mulf %28, %40 : vector<65x32xf32>
    %c0_16 = arith.constant 0 : index
    %c0_17 = arith.constant 0 : index
    %c0_18 = arith.constant 0 : index
    %42 = vector.load %arg4[%c0_16, %c0_17, %c0_18] : memref<1x65x32xf32, #tpu.memory_space<vmem>>, vector<1x65x32xf32>
    %43 = vector.shape_cast %42 : vector<1x65x32xf32> to vector<65x32xf32>
    %44 = vector.shape_cast %41 : vector<65x32xf32> to vector<1x65x32xf32>
    tpu.vector_store %arg4[%c0_16, %c0_17, %c0_18], %44 {strides = array<i32>} : memref<1x65x32xf32, #tpu.memory_space<vmem>>, vector<1x65x32xf32>,
    return
  }
  func.func @transform_0(%arg0: i32) -> (i32, i32, i32) {
    %c0_i32 = arith.constant 0 : i32
    %c0_i32_0 = arith.constant 0 : i32
    %c0_i32_1 = arith.constant 0 : i32
    return %arg0, %c0_i32, %c0_i32_0 : i32, i32, i32
  }
  func.func @transform_1(%arg0: i32) -> (i32, i32) {
    %c0_i32 = arith.constant 0 : i32
    %c0_i32_0 = arith.constant 0 : i32
    %c0_i32_1 = arith.constant 0 : i32
    return %c0_i32, %c0_i32_0 : i32, i32
  }
  func.func @transform_2(%arg0: i32) -> (i32, i32) {
    %c0_i32 = arith.constant 0 : i32
    %c0_i32_0 = arith.constant 0 : i32
    %c0_i32_1 = arith.constant 0 : i32
    return %c0_i32, %c0_i32_0 : i32, i32
  }
  func.func @transform_3(%arg0: i32) -> (i32, i32, i32) {
    %c0_i32 = arith.constant 0 : i32
    %c0_i32_0 = arith.constant 0 : i32
    %c0_i32_1 = arith.constant 0 : i32
    return %arg0, %c0_i32, %c0_i32_0 : i32, i32, i32
  }
}

module attributes {stable_mosaic.version = 11 : i64} {
  func.func @_conv1_fp_kernel(%arg0: i32, %arg1: memref<64x96xf32, #tpu.memory_space<vmem>>, %arg2: memref<96x32xbf16, #tpu.memory_space<vmem>>, %arg3: memref<32x32xbf16, #tpu.memory_space<vmem>>, %arg4: memref<3x32xf32, #tpu.memory_space<vmem>>, %arg5: memref<64x32xf32, #tpu.memory_space<vmem>>) attributes {dimension_semantics = [#tpu.dimension_semantics<arbitrary>], iteration_bounds = array<i64: 1>, scalar_prefetch = 0 : i64, scratch_operands = 0 : i64, tpu.core_type = #tpu.core_type<tc>, window_params = [{pipeline_mode = #tpu.pipeline_mode<synchronous>, transform_indices = @transform_0, window_bounds = array<i64: 64, 96>}, {pipeline_mode = #tpu.pipeline_mode<synchronous>, transform_indices = @transform_1, window_bounds = array<i64: 96, 32>}, {pipeline_mode = #tpu.pipeline_mode<synchronous>, transform_indices = @transform_2, window_bounds = array<i64: 32, 32>}, {pipeline_mode = #tpu.pipeline_mode<synchronous>, transform_indices = @transform_3, window_bounds = array<i64: 3, 32>}, {pipeline_mode = #tpu.pipeline_mode<synchronous>, transform_indices = @transform_4, window_bounds = array<i64: 64, 32>}]} {
    %c0 = arith.constant 0 : index
    %c0_0 = arith.constant 0 : index
    %0 = vector.load %arg1[%c0, %c0_0] : memref<64x96xf32, #tpu.memory_space<vmem>>, vector<64x96xf32>
    %c0_1 = arith.constant 0 : index
    %c0_2 = arith.constant 0 : index
    %1 = vector.load %arg2[%c0_1, %c0_2] : memref<96x32xbf16, #tpu.memory_space<vmem>>, vector<96x32xbf16>
    %2 = arith.truncf %0 : vector<64x96xf32> to vector<64x96xbf16>
    %cst = arith.constant dense<0.000000e+00> : vector<64x32xf32>
    %3 = tpu.matmul %2, %1, %cst {dimension_numbers = #tpu.dot_dimension_numbers<[1], [0], [0], [1], [0, 0, 1, 1], [], []>} : vector<64x96xbf16>, vector<96x32xbf16>, vector<64x32xf32> -> vector<64x32xf32>
    %4 = arith.mulf %3, %3 : vector<64x32xf32>
    %5 = arith.mulf %3, %4 : vector<64x32xf32>
    %cst_3 = arith.constant 4.471500e-02 : f32
    %6 = vector.broadcast %cst_3 : f32 to vector<64x32xf32>
    %7 = arith.mulf %6, %5 : vector<64x32xf32>
    %8 = arith.addf %3, %7 : vector<64x32xf32>
    %cst_4 = arith.constant 0.797884583 : f32
    %9 = vector.broadcast %cst_4 : f32 to vector<64x32xf32>
    %10 = arith.mulf %9, %8 : vector<64x32xf32>
    %11 = math.tanh %10 : vector<64x32xf32>
    %cst_5 = arith.constant 1.000000e+00 : f32
    %12 = vector.broadcast %cst_5 : f32 to vector<64x32xf32>
    %13 = arith.addf %12, %11 : vector<64x32xf32>
    %cst_6 = arith.constant 5.000000e-01 : f32
    %14 = vector.broadcast %cst_6 : f32 to vector<64x32xf32>
    %15 = arith.mulf %14, %13 : vector<64x32xf32>
    %16 = arith.mulf %3, %15 : vector<64x32xf32>
    %c0_7 = arith.constant 0 : index
    %c0_8 = arith.constant 0 : index
    %17 = vector.load %arg4[%c0_7, %c0_8] : memref<3x32xf32, #tpu.memory_space<vmem>>, vector<1x32xf32>
    %c1 = arith.constant 1 : index
    %c0_9 = arith.constant 0 : index
    %18 = vector.load %arg4[%c1, %c0_9] : memref<3x32xf32, #tpu.memory_space<vmem>>, vector<1x32xf32>
    %cst_10 = arith.constant dense<0.000000e+00> : vector<64xf32>
    %19 = vector.multi_reduction <add>, %16, %cst_10 [1] : vector<64x32xf32> to vector<64xf32>
    %20 = vector.shape_cast %19 : vector<64xf32> to vector<64x1xf32>
    %cst_11 = arith.constant 3.200000e+01 : f32
    %21 = vector.broadcast %cst_11 : f32 to vector<64x1xf32>
    %22 = arith.divf %20, %21 : vector<64x1xf32>
    %23 = vector.broadcast %22 : vector<64x1xf32> to vector<64x32xf32>
    %24 = arith.subf %16, %23 : vector<64x32xf32>
    %25 = arith.mulf %24, %24 : vector<64x32xf32>
    %cst_12 = arith.constant dense<0.000000e+00> : vector<64xf32>
    %26 = vector.multi_reduction <add>, %25, %cst_12 [1] : vector<64x32xf32> to vector<64xf32>
    %27 = vector.shape_cast %26 : vector<64xf32> to vector<64x1xf32>
    %cst_13 = arith.constant 3.200000e+01 : f32
    %28 = vector.broadcast %cst_13 : f32 to vector<64x1xf32>
    %29 = arith.divf %27, %28 : vector<64x1xf32>
    %30 = vector.broadcast %22 : vector<64x1xf32> to vector<64x32xf32>
    %31 = arith.subf %16, %30 : vector<64x32xf32>
    %cst_14 = arith.constant 9.99999974E-6 : f32
    %32 = vector.broadcast %cst_14 : f32 to vector<64x1xf32>
    %33 = arith.addf %29, %32 : vector<64x1xf32>
    %34 = math.rsqrt %33 : vector<64x1xf32>
    %35 = vector.broadcast %34 : vector<64x1xf32> to vector<64x32xf32>
    %36 = arith.mulf %31, %35 : vector<64x32xf32>
    %37 = vector.broadcast %17 : vector<1x32xf32> to vector<64x32xf32>
    %38 = arith.mulf %36, %37 : vector<64x32xf32>
    %39 = vector.broadcast %18 : vector<1x32xf32> to vector<64x32xf32>
    %40 = arith.addf %38, %39 : vector<64x32xf32>
    %c0_15 = arith.constant 0 : index
    %c0_16 = arith.constant 0 : index
    %41 = vector.load %arg3[%c0_15, %c0_16] : memref<32x32xbf16, #tpu.memory_space<vmem>>, vector<32x32xbf16>
    %42 = arith.truncf %40 : vector<64x32xf32> to vector<64x32xbf16>
    %cst_17 = arith.constant dense<0.000000e+00> : vector<64x32xf32>
    %43 = tpu.matmul %42, %41, %cst_17 {dimension_numbers = #tpu.dot_dimension_numbers<[1], [0], [0], [1], [0, 0, 1, 1], [], []>} : vector<64x32xbf16>, vector<32x32xbf16>, vector<64x32xf32> -> vector<64x32xf32>
    %c2 = arith.constant 2 : index
    %c0_18 = arith.constant 0 : index
    %44 = vector.load %arg4[%c2, %c0_18] : memref<3x32xf32, #tpu.memory_space<vmem>>, vector<1x32xf32>
    %45 = vector.broadcast %44 : vector<1x32xf32> to vector<64x32xf32>
    %46 = arith.addf %43, %45 : vector<64x32xf32>
    %c0_19 = arith.constant 0 : index
    %c0_20 = arith.constant 0 : index
    %47 = vector.load %arg5[%c0_19, %c0_20] : memref<64x32xf32, #tpu.memory_space<vmem>>, vector<64x32xf32>
    tpu.vector_store %arg5[%c0_19, %c0_20], %46 {strides = array<i32>} : memref<64x32xf32, #tpu.memory_space<vmem>>, vector<64x32xf32>,
    return
  }
  func.func @transform_0(%arg0: i32) -> (i32, i32) {
    %c0_i32 = arith.constant 0 : i32
    %c0_i32_0 = arith.constant 0 : i32
    %c0_i32_1 = arith.constant 0 : i32
    return %c0_i32, %c0_i32_0 : i32, i32
  }
  func.func @transform_1(%arg0: i32) -> (i32, i32) {
    %c0_i32 = arith.constant 0 : i32
    %c0_i32_0 = arith.constant 0 : i32
    %c0_i32_1 = arith.constant 0 : i32
    return %c0_i32, %c0_i32_0 : i32, i32
  }
  func.func @transform_2(%arg0: i32) -> (i32, i32) {
    %c0_i32 = arith.constant 0 : i32
    %c0_i32_0 = arith.constant 0 : i32
    %c0_i32_1 = arith.constant 0 : i32
    return %c0_i32, %c0_i32_0 : i32, i32
  }
  func.func @transform_3(%arg0: i32) -> (i32, i32) {
    %c0_i32 = arith.constant 0 : i32
    %c0_i32_0 = arith.constant 0 : i32
    %c0_i32_1 = arith.constant 0 : i32
    return %c0_i32, %c0_i32_0 : i32, i32
  }
  func.func @transform_4(%arg0: i32) -> (i32, i32) {
    %c0_i32 = arith.constant 0 : i32
    %c0_i32_0 = arith.constant 0 : i32
    %c0_i32_1 = arith.constant 0 : i32
    return %c0_i32, %c0_i32_0 : i32, i32
  }
}

module attributes {stable_mosaic.version = 11 : i64} {
  func.func @_posconv_ln_kernel(%arg0: i32, %arg1: memref<64x128xf32, #tpu.memory_space<vmem>>, %arg2: memref<128x32xbf16, #tpu.memory_space<vmem>>, %arg3: memref<64x32xf32, #tpu.memory_space<vmem>>, %arg4: memref<3x32xf32, #tpu.memory_space<vmem>>, %arg5: memref<64x32xf32, #tpu.memory_space<vmem>>) attributes {dimension_semantics = [#tpu.dimension_semantics<arbitrary>], iteration_bounds = array<i64: 1>, scalar_prefetch = 0 : i64, scratch_operands = 0 : i64, tpu.core_type = #tpu.core_type<tc>, window_params = [{pipeline_mode = #tpu.pipeline_mode<synchronous>, transform_indices = @transform_0, window_bounds = array<i64: 64, 128>}, {pipeline_mode = #tpu.pipeline_mode<synchronous>, transform_indices = @transform_1, window_bounds = array<i64: 128, 32>}, {pipeline_mode = #tpu.pipeline_mode<synchronous>, transform_indices = @transform_2, window_bounds = array<i64: 64, 32>}, {pipeline_mode = #tpu.pipeline_mode<synchronous>, transform_indices = @transform_3, window_bounds = array<i64: 3, 32>}, {pipeline_mode = #tpu.pipeline_mode<synchronous>, transform_indices = @transform_4, window_bounds = array<i64: 64, 32>}]} {
    %c0 = arith.constant 0 : index
    %c0_0 = arith.constant 0 : index
    %0 = vector.load %arg1[%c0, %c0_0] : memref<64x128xf32, #tpu.memory_space<vmem>>, vector<64x128xf32>
    %c0_1 = arith.constant 0 : index
    %c0_2 = arith.constant 0 : index
    %1 = vector.load %arg2[%c0_1, %c0_2] : memref<128x32xbf16, #tpu.memory_space<vmem>>, vector<128x32xbf16>
    %2 = arith.truncf %0 : vector<64x128xf32> to vector<64x128xbf16>
    %cst = arith.constant dense<0.000000e+00> : vector<64x32xf32>
    %3 = tpu.matmul %2, %1, %cst {dimension_numbers = #tpu.dot_dimension_numbers<[1], [0], [0], [1], [0, 0, 1, 1], [], []>} : vector<64x128xbf16>, vector<128x32xbf16>, vector<64x32xf32> -> vector<64x32xf32>
    %c0_3 = arith.constant 0 : index
    %c0_4 = arith.constant 0 : index
    %4 = vector.load %arg4[%c0_3, %c0_4] : memref<3x32xf32, #tpu.memory_space<vmem>>, vector<1x32xf32>
    %5 = vector.broadcast %4 : vector<1x32xf32> to vector<64x32xf32>
    %6 = arith.addf %3, %5 : vector<64x32xf32>
    %7 = arith.mulf %6, %6 : vector<64x32xf32>
    %8 = arith.mulf %6, %7 : vector<64x32xf32>
    %cst_5 = arith.constant 4.471500e-02 : f32
    %9 = vector.broadcast %cst_5 : f32 to vector<64x32xf32>
    %10 = arith.mulf %9, %8 : vector<64x32xf32>
    %11 = arith.addf %6, %10 : vector<64x32xf32>
    %cst_6 = arith.constant 0.797884583 : f32
    %12 = vector.broadcast %cst_6 : f32 to vector<64x32xf32>
    %13 = arith.mulf %12, %11 : vector<64x32xf32>
    %14 = math.tanh %13 : vector<64x32xf32>
    %cst_7 = arith.constant 1.000000e+00 : f32
    %15 = vector.broadcast %cst_7 : f32 to vector<64x32xf32>
    %16 = arith.addf %15, %14 : vector<64x32xf32>
    %cst_8 = arith.constant 5.000000e-01 : f32
    %17 = vector.broadcast %cst_8 : f32 to vector<64x32xf32>
    %18 = arith.mulf %17, %16 : vector<64x32xf32>
    %19 = arith.mulf %6, %18 : vector<64x32xf32>
    %c0_9 = arith.constant 0 : index
    %c0_10 = arith.constant 0 : index
    %20 = vector.load %arg3[%c0_9, %c0_10] : memref<64x32xf32, #tpu.memory_space<vmem>>, vector<64x32xf32>
    %21 = arith.addf %20, %19 : vector<64x32xf32>
    %c1 = arith.constant 1 : index
    %c0_11 = arith.constant 0 : index
    %22 = vector.load %arg4[%c1, %c0_11] : memref<3x32xf32, #tpu.memory_space<vmem>>, vector<1x32xf32>
    %c2 = arith.constant 2 : index
    %c0_12 = arith.constant 0 : index
    %23 = vector.load %arg4[%c2, %c0_12] : memref<3x32xf32, #tpu.memory_space<vmem>>, vector<1x32xf32>
    %cst_13 = arith.constant dense<0.000000e+00> : vector<64xf32>
    %24 = vector.multi_reduction <add>, %21, %cst_13 [1] : vector<64x32xf32> to vector<64xf32>
    %25 = vector.shape_cast %24 : vector<64xf32> to vector<64x1xf32>
    %cst_14 = arith.constant 3.200000e+01 : f32
    %26 = vector.broadcast %cst_14 : f32 to vector<64x1xf32>
    %27 = arith.divf %25, %26 : vector<64x1xf32>
    %28 = vector.broadcast %27 : vector<64x1xf32> to vector<64x32xf32>
    %29 = arith.subf %21, %28 : vector<64x32xf32>
    %30 = arith.mulf %29, %29 : vector<64x32xf32>
    %cst_15 = arith.constant dense<0.000000e+00> : vector<64xf32>
    %31 = vector.multi_reduction <add>, %30, %cst_15 [1] : vector<64x32xf32> to vector<64xf32>
    %32 = vector.shape_cast %31 : vector<64xf32> to vector<64x1xf32>
    %cst_16 = arith.constant 3.200000e+01 : f32
    %33 = vector.broadcast %cst_16 : f32 to vector<64x1xf32>
    %34 = arith.divf %32, %33 : vector<64x1xf32>
    %35 = vector.broadcast %27 : vector<64x1xf32> to vector<64x32xf32>
    %36 = arith.subf %21, %35 : vector<64x32xf32>
    %cst_17 = arith.constant 9.99999974E-6 : f32
    %37 = vector.broadcast %cst_17 : f32 to vector<64x1xf32>
    %38 = arith.addf %34, %37 : vector<64x1xf32>
    %39 = math.rsqrt %38 : vector<64x1xf32>
    %40 = vector.broadcast %39 : vector<64x1xf32> to vector<64x32xf32>
    %41 = arith.mulf %36, %40 : vector<64x32xf32>
    %42 = vector.broadcast %22 : vector<1x32xf32> to vector<64x32xf32>
    %43 = arith.mulf %41, %42 : vector<64x32xf32>
    %44 = vector.broadcast %23 : vector<1x32xf32> to vector<64x32xf32>
    %45 = arith.addf %43, %44 : vector<64x32xf32>
    %c0_18 = arith.constant 0 : index
    %c0_19 = arith.constant 0 : index
    %46 = vector.load %arg5[%c0_18, %c0_19] : memref<64x32xf32, #tpu.memory_space<vmem>>, vector<64x32xf32>
    tpu.vector_store %arg5[%c0_18, %c0_19], %45 {strides = array<i32>} : memref<64x32xf32, #tpu.memory_space<vmem>>, vector<64x32xf32>,
    return
  }
  func.func @transform_0(%arg0: i32) -> (i32, i32) {
    %c0_i32 = arith.constant 0 : i32
    %c0_i32_0 = arith.constant 0 : i32
    %c0_i32_1 = arith.constant 0 : i32
    return %c0_i32, %c0_i32_0 : i32, i32
  }
  func.func @transform_1(%arg0: i32) -> (i32, i32) {
    %c0_i32 = arith.constant 0 : i32
    %c0_i32_0 = arith.constant 0 : i32
    %c0_i32_1 = arith.constant 0 : i32
    return %c0_i32, %c0_i32_0 : i32, i32
  }
  func.func @transform_2(%arg0: i32) -> (i32, i32) {
    %c0_i32 = arith.constant 0 : i32
    %c0_i32_0 = arith.constant 0 : i32
    %c0_i32_1 = arith.constant 0 : i32
    return %c0_i32, %c0_i32_0 : i32, i32
  }
  func.func @transform_3(%arg0: i32) -> (i32, i32) {
    %c0_i32 = arith.constant 0 : i32
    %c0_i32_0 = arith.constant 0 : i32
    %c0_i32_1 = arith.constant 0 : i32
    return %c0_i32, %c0_i32_0 : i32, i32
  }
  func.func @transform_4(%arg0: i32) -> (i32, i32) {
    %c0_i32 = arith.constant 0 : i32
    %c0_i32_0 = arith.constant 0 : i32
    %c0_i32_1 = arith.constant 0 : i32
    return %c0_i32, %c0_i32_0 : i32, i32
  }
}

module attributes {stable_mosaic.version = 11 : i64} {
  func.func @_encoder_stack_kernel(%arg0: i32, %arg1: i32, %arg2: memref<1x32x32xf32, #tpu.memory_space<vmem>>, %arg3: memref<1x32x96xbf16, #tpu.memory_space<vmem>>, %arg4: memref<1x32x32xbf16, #tpu.memory_space<vmem>>, %arg5: memref<1x32x64xbf16, #tpu.memory_space<vmem>>, %arg6: memref<1x64x32xbf16, #tpu.memory_space<vmem>>, %arg7: memref<1x8x96xf32, #tpu.memory_space<vmem>>, %arg8: memref<1x32x32xf32, #tpu.memory_space<vmem>>, %arg9: memref<32x32xf32, #tpu.memory_space<vmem>>) attributes {dimension_semantics = [#tpu.dimension_semantics<parallel>, #tpu.dimension_semantics<arbitrary>], iteration_bounds = array<i64: 2, 2>, scalar_prefetch = 0 : i64, scratch_operands = 1 : i64, tpu.core_type = #tpu.core_type<tc>, window_params = [{transform_indices = @transform_0, window_bounds = array<i64: 1, 32, 32>}, {transform_indices = @transform_1, window_bounds = array<i64: 1, 32, 96>}, {transform_indices = @transform_2, window_bounds = array<i64: 1, 32, 32>}, {transform_indices = @transform_3, window_bounds = array<i64: 1, 32, 64>}, {transform_indices = @transform_4, window_bounds = array<i64: 1, 64, 32>}, {transform_indices = @transform_5, window_bounds = array<i64: 1, 8, 96>}, {transform_indices = @transform_6, window_bounds = array<i64: 1, 32, 32>}]} {
    %c0_i32 = arith.constant 0 : i32
    %0 = arith.cmpi eq, %arg1, %c0_i32 : i32
    %1 = arith.extui %0 : i1 to i32
    %c0_i32_0 = arith.constant 0 : i32
    %2 = arith.cmpi ne, %1, %c0_i32_0 : i32
    scf.if %2 {
      %c0_45 = arith.constant 0 : index
      %c0_46 = arith.constant 0 : index
      %c0_47 = arith.constant 0 : index
      %143 = vector.load %arg2[%c0_45, %c0_46, %c0_47] : memref<1x32x32xf32, #tpu.memory_space<vmem>>, vector<1x32x32xf32>
      %144 = vector.shape_cast %143 : vector<1x32x32xf32> to vector<32x32xf32>
      %c0_48 = arith.constant 0 : index
      %c0_49 = arith.constant 0 : index
      %145 = vector.load %arg9[%c0_48, %c0_49] : memref<32x32xf32, #tpu.memory_space<vmem>>, vector<32x32xf32>
      tpu.vector_store %arg9[%c0_48, %c0_49], %144 {strides = array<i32>} : memref<32x32xf32, #tpu.memory_space<vmem>>, vector<32x32xf32>,
    } else {
    }
    %c0 = arith.constant 0 : index
    %c0_1 = arith.constant 0 : index
    %3 = vector.load %arg9[%c0, %c0_1] : memref<32x32xf32, #tpu.memory_space<vmem>>, vector<32x32xf32>
    %c0_2 = arith.constant 0 : index
    %c0_3 = arith.constant 0 : index
    %c0_4 = arith.constant 0 : index
    %4 = vector.load %arg7[%c0_2, %c0_3, %c0_4] : memref<1x8x96xf32, #tpu.memory_space<vmem>>, vector<1x8x96xf32>
    %5 = vector.shape_cast %4 : vector<1x8x96xf32> to vector<8x96xf32>
    %c0_5 = arith.constant 0 : index
    %c0_6 = arith.constant 0 : index
    %c0_7 = arith.constant 0 : index
    %6 = vector.load %arg3[%c0_5, %c0_6, %c0_7] : memref<1x32x96xbf16, #tpu.memory_space<vmem>>, vector<1x32x96xbf16>
    %7 = vector.shape_cast %6 : vector<1x32x96xbf16> to vector<32x96xbf16>
    %8 = arith.truncf %3 : vector<32x32xf32> to vector<32x32xbf16>
    %cst = arith.constant dense<0.000000e+00> : vector<32x96xf32>
    %9 = tpu.matmul %8, %7, %cst {dimension_numbers = #tpu.dot_dimension_numbers<[1], [0], [0], [1], [0, 0, 1, 1], [], []>} : vector<32x32xbf16>, vector<32x96xbf16>, vector<32x96xf32> -> vector<32x96xf32>
    %10 = vector.extract_strided_slice %5 {offsets = [0, 0], sizes = [1, 96], strides = [1, 1]} : vector<8x96xf32> to vector<1x96xf32>
    %11 = vector.broadcast %10 : vector<1x96xf32> to vector<32x96xf32>
    %12 = arith.addf %9, %11 : vector<32x96xf32>
    %13 = vector.extract_strided_slice %12 {offsets = [0, 0], sizes = [32, 32], strides = [1, 1]} : vector<32x96xf32> to vector<32x32xf32>
    %14 = vector.extract_strided_slice %12 {offsets = [0, 32], sizes = [32, 32], strides = [1, 1]} : vector<32x96xf32> to vector<32x32xf32>
    %15 = vector.extract_strided_slice %12 {offsets = [0, 64], sizes = [32, 32], strides = [1, 1]} : vector<32x96xf32> to vector<32x32xf32>
    %16 = vector.extract_strided_slice %13 {offsets = [0, 0], sizes = [32, 16], strides = [1, 1]} : vector<32x32xf32> to vector<32x16xf32>
    %17 = arith.truncf %16 : vector<32x16xf32> to vector<32x16xbf16>
    %18 = vector.extract_strided_slice %14 {offsets = [0, 0], sizes = [32, 16], strides = [1, 1]} : vector<32x32xf32> to vector<32x16xf32>
    %19 = arith.truncf %18 : vector<32x16xf32> to vector<32x16xbf16>
    %cst_8 = arith.constant dense<0.000000e+00> : vector<32x32xf32>
    %20 = tpu.matmul %17, %19, %cst_8 {dimension_numbers = #tpu.dot_dimension_numbers<[1], [1], [0], [0], [0, 0, 1, 0], [], []>} : vector<32x16xbf16>, vector<32x16xbf16>, vector<32x32xf32> -> vector<32x32xf32>
    %cst_9 = arith.constant dense<0xFF800000> : vector<32xf32>
    %21 = vector.multi_reduction <maximumf>, %20, %cst_9 [1] : vector<32x32xf32> to vector<32xf32>
    %22 = vector.shape_cast %21 : vector<32xf32> to vector<32x1xf32>
    %23 = vector.broadcast %22 : vector<32x1xf32> to vector<32x32xf32>
    %24 = arith.subf %20, %23 : vector<32x32xf32>
    %25 = math.exp %24 : vector<32x32xf32>
    %26 = vector.extract_strided_slice %15 {offsets = [0, 0], sizes = [32, 16], strides = [1, 1]} : vector<32x32xf32> to vector<32x16xf32>
    %27 = arith.truncf %25 : vector<32x32xf32> to vector<32x32xbf16>
    %28 = arith.truncf %26 : vector<32x16xf32> to vector<32x16xbf16>
    %cst_10 = arith.constant dense<0.000000e+00> : vector<32x16xf32>
    %29 = tpu.matmul %27, %28, %cst_10 {dimension_numbers = #tpu.dot_dimension_numbers<[1], [0], [0], [1], [0, 0, 1, 1], [], []>} : vector<32x32xbf16>, vector<32x16xbf16>, vector<32x16xf32> -> vector<32x16xf32>
    %cst_11 = arith.constant dense<0.000000e+00> : vector<32xf32>
    %30 = vector.multi_reduction <add>, %25, %cst_11 [1] : vector<32x32xf32> to vector<32xf32>
    %31 = vector.shape_cast %30 : vector<32xf32> to vector<32x1xf32>
    %32 = tpu.reciprocal %31 {approx = true} : vector<32x1xf32> -> vector<32x1xf32>
    %33 = vector.broadcast %32 : vector<32x1xf32> to vector<32x16xf32>
    %34 = arith.mulf %29, %33 : vector<32x16xf32>
    %35 = vector.extract_strided_slice %13 {offsets = [0, 16], sizes = [32, 16], strides = [1, 1]} : vector<32x32xf32> to vector<32x16xf32>
    %36 = arith.truncf %35 : vector<32x16xf32> to vector<32x16xbf16>
    %37 = vector.extract_strided_slice %14 {offsets = [0, 16], sizes = [32, 16], strides = [1, 1]} : vector<32x32xf32> to vector<32x16xf32>
    %38 = arith.truncf %37 : vector<32x16xf32> to vector<32x16xbf16>
    %cst_12 = arith.constant dense<0.000000e+00> : vector<32x32xf32>
    %39 = tpu.matmul %36, %38, %cst_12 {dimension_numbers = #tpu.dot_dimension_numbers<[1], [1], [0], [0], [0, 0, 1, 0], [], []>} : vector<32x16xbf16>, vector<32x16xbf16>, vector<32x32xf32> -> vector<32x32xf32>
    %cst_13 = arith.constant dense<0xFF800000> : vector<32xf32>
    %40 = vector.multi_reduction <maximumf>, %39, %cst_13 [1] : vector<32x32xf32> to vector<32xf32>
    %41 = vector.shape_cast %40 : vector<32xf32> to vector<32x1xf32>
    %42 = vector.broadcast %41 : vector<32x1xf32> to vector<32x32xf32>
    %43 = arith.subf %39, %42 : vector<32x32xf32>
    %44 = math.exp %43 : vector<32x32xf32>
    %45 = vector.extract_strided_slice %15 {offsets = [0, 16], sizes = [32, 16], strides = [1, 1]} : vector<32x32xf32> to vector<32x16xf32>
    %46 = arith.truncf %44 : vector<32x32xf32> to vector<32x32xbf16>
    %47 = arith.truncf %45 : vector<32x16xf32> to vector<32x16xbf16>
    %cst_14 = arith.constant dense<0.000000e+00> : vector<32x16xf32>
    %48 = tpu.matmul %46, %47, %cst_14 {dimension_numbers = #tpu.dot_dimension_numbers<[1], [0], [0], [1], [0, 0, 1, 1], [], []>} : vector<32x32xbf16>, vector<32x16xbf16>, vector<32x16xf32> -> vector<32x16xf32>
    %cst_15 = arith.constant dense<0.000000e+00> : vector<32xf32>
    %49 = vector.multi_reduction <add>, %44, %cst_15 [1] : vector<32x32xf32> to vector<32xf32>
    %50 = vector.shape_cast %49 : vector<32xf32> to vector<32x1xf32>
    %51 = tpu.reciprocal %50 {approx = true} : vector<32x1xf32> -> vector<32x1xf32>
    %52 = vector.broadcast %51 : vector<32x1xf32> to vector<32x16xf32>
    %53 = arith.mulf %48, %52 : vector<32x16xf32>
    %54 = tpu.concatenate %34, %53 in 1 : vector<32x16xf32>, vector<32x16xf32> -> vector<32x32xf32>
    %c0_16 = arith.constant 0 : index
    %c0_17 = arith.constant 0 : index
    %c0_18 = arith.constant 0 : index
    %55 = vector.load %arg4[%c0_16, %c0_17, %c0_18] : memref<1x32x32xbf16, #tpu.memory_space<vmem>>, vector<1x32x32xbf16>
    %56 = vector.shape_cast %55 : vector<1x32x32xbf16> to vector<32x32xbf16>
    %57 = arith.truncf %54 : vector<32x32xf32> to vector<32x32xbf16>
    %cst_19 = arith.constant dense<0.000000e+00> : vector<32x32xf32>
    %58 = tpu.matmul %57, %56, %cst_19 {dimension_numbers = #tpu.dot_dimension_numbers<[1], [0], [0], [1], [0, 0, 1, 1], [], []>} : vector<32x32xbf16>, vector<32x32xbf16>, vector<32x32xf32> -> vector<32x32xf32>
    %59 = vector.extract_strided_slice %5 {offsets = [1, 0], sizes = [1, 32], strides = [1, 1]} : vector<8x96xf32> to vector<1x32xf32>
    %60 = vector.broadcast %59 : vector<1x32xf32> to vector<32x32xf32>
    %61 = arith.addf %58, %60 : vector<32x32xf32>
    %62 = arith.addf %3, %61 : vector<32x32xf32>
    %63 = vector.extract_strided_slice %5 {offsets = [2, 0], sizes = [1, 32], strides = [1, 1]} : vector<8x96xf32> to vector<1x32xf32>
    %64 = vector.extract_strided_slice %5 {offsets = [3, 0], sizes = [1, 32], strides = [1, 1]} : vector<8x96xf32> to vector<1x32xf32>
    %cst_20 = arith.constant dense<0.000000e+00> : vector<32xf32>
    %65 = vector.multi_reduction <add>, %62, %cst_20 [1] : vector<32x32xf32> to vector<32xf32>
    %66 = vector.shape_cast %65 : vector<32xf32> to vector<32x1xf32>
    %cst_21 = arith.constant 3.200000e+01 : f32
    %67 = vector.broadcast %cst_21 : f32 to vector<32x1xf32>
    %68 = arith.divf %66, %67 : vector<32x1xf32>
    %69 = vector.broadcast %68 : vector<32x1xf32> to vector<32x32xf32>
    %70 = arith.subf %62, %69 : vector<32x32xf32>
    %71 = arith.mulf %70, %70 : vector<32x32xf32>
    %cst_22 = arith.constant dense<0.000000e+00> : vector<32xf32>
    %72 = vector.multi_reduction <add>, %71, %cst_22 [1] : vector<32x32xf32> to vector<32xf32>
    %73 = vector.shape_cast %72 : vector<32xf32> to vector<32x1xf32>
    %cst_23 = arith.constant 3.200000e+01 : f32
    %74 = vector.broadcast %cst_23 : f32 to vector<32x1xf32>
    %75 = arith.divf %73, %74 : vector<32x1xf32>
    %76 = vector.broadcast %68 : vector<32x1xf32> to vector<32x32xf32>
    %77 = arith.subf %62, %76 : vector<32x32xf32>
    %cst_24 = arith.constant 9.99999974E-6 : f32
    %78 = vector.broadcast %cst_24 : f32 to vector<32x1xf32>
    %79 = arith.addf %75, %78 : vector<32x1xf32>
    %80 = math.rsqrt %79 : vector<32x1xf32>
    %81 = vector.broadcast %80 : vector<32x1xf32> to vector<32x32xf32>
    %82 = arith.mulf %77, %81 : vector<32x32xf32>
    %83 = vector.broadcast %63 : vector<1x32xf32> to vector<32x32xf32>
    %84 = arith.mulf %82, %83 : vector<32x32xf32>
    %85 = vector.broadcast %64 : vector<1x32xf32> to vector<32x32xf32>
    %86 = arith.addf %84, %85 : vector<32x32xf32>
    %c0_25 = arith.constant 0 : index
    %c0_26 = arith.constant 0 : index
    %c0_27 = arith.constant 0 : index
    %87 = vector.load %arg5[%c0_25, %c0_26, %c0_27] : memref<1x32x64xbf16, #tpu.memory_space<vmem>>, vector<1x32x64xbf16>
    %88 = vector.shape_cast %87 : vector<1x32x64xbf16> to vector<32x64xbf16>
    %89 = arith.truncf %86 : vector<32x32xf32> to vector<32x32xbf16>
    %cst_28 = arith.constant dense<0.000000e+00> : vector<32x64xf32>
    %90 = tpu.matmul %89, %88, %cst_28 {dimension_numbers = #tpu.dot_dimension_numbers<[1], [0], [0], [1], [0, 0, 1, 1], [], []>} : vector<32x32xbf16>, vector<32x64xbf16>, vector<32x64xf32> -> vector<32x64xf32>
    %91 = vector.extract_strided_slice %5 {offsets = [4, 0], sizes = [1, 64], strides = [1, 1]} : vector<8x96xf32> to vector<1x64xf32>
    %92 = vector.broadcast %91 : vector<1x64xf32> to vector<32x64xf32>
    %93 = arith.addf %90, %92 : vector<32x64xf32>
    %94 = arith.mulf %93, %93 : vector<32x64xf32>
    %95 = arith.mulf %93, %94 : vector<32x64xf32>
    %cst_29 = arith.constant 4.471500e-02 : f32
    %96 = vector.broadcast %cst_29 : f32 to vector<32x64xf32>
    %97 = arith.mulf %96, %95 : vector<32x64xf32>
    %98 = arith.addf %93, %97 : vector<32x64xf32>
    %cst_30 = arith.constant 0.797884583 : f32
    %99 = vector.broadcast %cst_30 : f32 to vector<32x64xf32>
    %100 = arith.mulf %99, %98 : vector<32x64xf32>
    %101 = math.tanh %100 : vector<32x64xf32>
    %cst_31 = arith.constant 1.000000e+00 : f32
    %102 = vector.broadcast %cst_31 : f32 to vector<32x64xf32>
    %103 = arith.addf %102, %101 : vector<32x64xf32>
    %cst_32 = arith.constant 5.000000e-01 : f32
    %104 = vector.broadcast %cst_32 : f32 to vector<32x64xf32>
    %105 = arith.mulf %104, %103 : vector<32x64xf32>
    %106 = arith.mulf %93, %105 : vector<32x64xf32>
    %c0_33 = arith.constant 0 : index
    %c0_34 = arith.constant 0 : index
    %c0_35 = arith.constant 0 : index
    %107 = vector.load %arg6[%c0_33, %c0_34, %c0_35] : memref<1x64x32xbf16, #tpu.memory_space<vmem>>, vector<1x64x32xbf16>
    %108 = vector.shape_cast %107 : vector<1x64x32xbf16> to vector<64x32xbf16>
    %109 = arith.truncf %106 : vector<32x64xf32> to vector<32x64xbf16>
    %cst_36 = arith.constant dense<0.000000e+00> : vector<32x32xf32>
    %110 = tpu.matmul %109, %108, %cst_36 {dimension_numbers = #tpu.dot_dimension_numbers<[1], [0], [0], [1], [0, 0, 1, 1], [], []>} : vector<32x64xbf16>, vector<64x32xbf16>, vector<32x32xf32> -> vector<32x32xf32>
    %111 = vector.extract_strided_slice %5 {offsets = [5, 0], sizes = [1, 32], strides = [1, 1]} : vector<8x96xf32> to vector<1x32xf32>
    %112 = vector.broadcast %111 : vector<1x32xf32> to vector<32x32xf32>
    %113 = arith.addf %110, %112 : vector<32x32xf32>
    %114 = arith.addf %86, %113 : vector<32x32xf32>
    %115 = vector.extract_strided_slice %5 {offsets = [6, 0], sizes = [1, 32], strides = [1, 1]} : vector<8x96xf32> to vector<1x32xf32>
    %116 = vector.extract_strided_slice %5 {offsets = [7, 0], sizes = [1, 32], strides = [1, 1]} : vector<8x96xf32> to vector<1x32xf32>
    %cst_37 = arith.constant dense<0.000000e+00> : vector<32xf32>
    %117 = vector.multi_reduction <add>, %114, %cst_37 [1] : vector<32x32xf32> to vector<32xf32>
    %118 = vector.shape_cast %117 : vector<32xf32> to vector<32x1xf32>
    %cst_38 = arith.constant 3.200000e+01 : f32
    %119 = vector.broadcast %cst_38 : f32 to vector<32x1xf32>
    %120 = arith.divf %118, %119 : vector<32x1xf32>
    %121 = vector.broadcast %120 : vector<32x1xf32> to vector<32x32xf32>
    %122 = arith.subf %114, %121 : vector<32x32xf32>
    %123 = arith.mulf %122, %122 : vector<32x32xf32>
    %cst_39 = arith.constant dense<0.000000e+00> : vector<32xf32>
    %124 = vector.multi_reduction <add>, %123, %cst_39 [1] : vector<32x32xf32> to vector<32xf32>
    %125 = vector.shape_cast %124 : vector<32xf32> to vector<32x1xf32>
    %cst_40 = arith.constant 3.200000e+01 : f32
    %126 = vector.broadcast %cst_40 : f32 to vector<32x1xf32>
    %127 = arith.divf %125, %126 : vector<32x1xf32>
    %128 = vector.broadcast %120 : vector<32x1xf32> to vector<32x32xf32>
    %129 = arith.subf %114, %128 : vector<32x32xf32>
    %cst_41 = arith.constant 9.99999974E-6 : f32
    %130 = vector.broadcast %cst_41 : f32 to vector<32x1xf32>
    %131 = arith.addf %127, %130 : vector<32x1xf32>
    %132 = math.rsqrt %131 : vector<32x1xf32>
    %133 = vector.broadcast %132 : vector<32x1xf32> to vector<32x32xf32>
    %134 = arith.mulf %129, %133 : vector<32x32xf32>
    %135 = vector.broadcast %115 : vector<1x32xf32> to vector<32x32xf32>
    %136 = arith.mulf %134, %135 : vector<32x32xf32>
    %137 = vector.broadcast %116 : vector<1x32xf32> to vector<32x32xf32>
    %138 = arith.addf %136, %137 : vector<32x32xf32>
    %c0_42 = arith.constant 0 : index
    %c0_43 = arith.constant 0 : index
    %139 = vector.load %arg9[%c0_42, %c0_43] : memref<32x32xf32, #tpu.memory_space<vmem>>, vector<32x32xf32>
    tpu.vector_store %arg9[%c0_42, %c0_43], %138 {strides = array<i32>} : memref<32x32xf32, #tpu.memory_space<vmem>>, vector<32x32xf32>,
    %c1_i32 = arith.constant 1 : i32
    %140 = arith.cmpi eq, %arg1, %c1_i32 : i32
    %141 = arith.extui %140 : i1 to i32
    %c0_i32_44 = arith.constant 0 : i32
    %142 = arith.cmpi ne, %141, %c0_i32_44 : i32
    scf.if %142 {
      %c0_45 = arith.constant 0 : index
      %c0_46 = arith.constant 0 : index
      %c0_47 = arith.constant 0 : index
      %143 = vector.load %arg8[%c0_45, %c0_46, %c0_47] : memref<1x32x32xf32, #tpu.memory_space<vmem>>, vector<1x32x32xf32>
      %144 = vector.shape_cast %143 : vector<1x32x32xf32> to vector<32x32xf32>
      %145 = vector.shape_cast %138 : vector<32x32xf32> to vector<1x32x32xf32>
      tpu.vector_store %arg8[%c0_45, %c0_46, %c0_47], %145 {strides = array<i32>} : memref<1x32x32xf32, #tpu.memory_space<vmem>>, vector<1x32x32xf32>,
    } else {
    }
    return
  }
  func.func @transform_0(%arg0: i32, %arg1: i32) -> (i32, i32, i32) {
    %c0_i32 = arith.constant 0 : i32
    %c0_i32_0 = arith.constant 0 : i32
    %c0_i32_1 = arith.constant 0 : i32
    return %arg0, %c0_i32, %c0_i32_0 : i32, i32, i32
  }
  func.func @transform_1(%arg0: i32, %arg1: i32) -> (i32, i32, i32) {
    %c0_i32 = arith.constant 0 : i32
    %c0_i32_0 = arith.constant 0 : i32
    %c0_i32_1 = arith.constant 0 : i32
    return %arg1, %c0_i32, %c0_i32_0 : i32, i32, i32
  }
  func.func @transform_2(%arg0: i32, %arg1: i32) -> (i32, i32, i32) {
    %c0_i32 = arith.constant 0 : i32
    %c0_i32_0 = arith.constant 0 : i32
    %c0_i32_1 = arith.constant 0 : i32
    return %arg1, %c0_i32, %c0_i32_0 : i32, i32, i32
  }
  func.func @transform_3(%arg0: i32, %arg1: i32) -> (i32, i32, i32) {
    %c0_i32 = arith.constant 0 : i32
    %c0_i32_0 = arith.constant 0 : i32
    %c0_i32_1 = arith.constant 0 : i32
    return %arg1, %c0_i32, %c0_i32_0 : i32, i32, i32
  }
  func.func @transform_4(%arg0: i32, %arg1: i32) -> (i32, i32, i32) {
    %c0_i32 = arith.constant 0 : i32
    %c0_i32_0 = arith.constant 0 : i32
    %c0_i32_1 = arith.constant 0 : i32
    return %arg1, %c0_i32, %c0_i32_0 : i32, i32, i32
  }
  func.func @transform_5(%arg0: i32, %arg1: i32) -> (i32, i32, i32) {
    %c0_i32 = arith.constant 0 : i32
    %c0_i32_0 = arith.constant 0 : i32
    %c0_i32_1 = arith.constant 0 : i32
    return %arg1, %c0_i32, %c0_i32_0 : i32, i32, i32
  }
  func.func @transform_6(%arg0: i32, %arg1: i32) -> (i32, i32, i32) {
    %c0_i32 = arith.constant 0 : i32
    %c0_i32_0 = arith.constant 0 : i32
    %c0_i32_1 = arith.constant 0 : i32
    return %arg0, %c0_i32, %c0_i32_0 : i32, i32, i32
  }
}

module attributes {stable_mosaic.version = 11 : i64} {
  func.func @_global_ln_kernel(%arg0: i32, %arg1: memref<2x1024xf32, #tpu.memory_space<vmem>>, %arg2: memref<2x1024xf32, #tpu.memory_space<vmem>>) attributes {dimension_semantics = [#tpu.dimension_semantics<arbitrary>], iteration_bounds = array<i64: 1>, scalar_prefetch = 0 : i64, scratch_operands = 0 : i64, tpu.core_type = #tpu.core_type<tc>, window_params = [{pipeline_mode = #tpu.pipeline_mode<synchronous>, transform_indices = @transform_0, window_bounds = array<i64: 2, 1024>}, {pipeline_mode = #tpu.pipeline_mode<synchronous>, transform_indices = @transform_1, window_bounds = array<i64: 2, 1024>}]} {
    %c0 = arith.constant 0 : index
    %c0_0 = arith.constant 0 : index
    %0 = vector.load %arg1[%c0, %c0_0] : memref<2x1024xf32, #tpu.memory_space<vmem>>, vector<2x1024xf32>
    %1 = vector.shape_cast %0 : vector<2x1024xf32> to vector<1x2x1024xf32>
    %cst = arith.constant dense<0.000000e+00> : vector<1xf32>
    %2 = vector.multi_reduction <add>, %1, %cst [1, 2] : vector<1x2x1024xf32> to vector<1xf32>
    %3 = vector.shape_cast %2 : vector<1xf32> to vector<1x1x1xf32>
    %4 = vector.extract %3[0, 0, 0] : f32 from vector<1x1x1xf32>
    %cst_1 = arith.constant 2.048000e+03 : f32
    %5 = arith.divf %4, %cst_1 : f32
    %6 = vector.broadcast %5 : f32 to vector<2x1024xf32>
    %7 = arith.subf %0, %6 : vector<2x1024xf32>
    %8 = arith.mulf %7, %7 : vector<2x1024xf32>
    %9 = vector.shape_cast %8 : vector<2x1024xf32> to vector<1x2x1024xf32>
    %cst_2 = arith.constant dense<0.000000e+00> : vector<1xf32>
    %10 = vector.multi_reduction <add>, %9, %cst_2 [1, 2] : vector<1x2x1024xf32> to vector<1xf32>
    %11 = vector.shape_cast %10 : vector<1xf32> to vector<1x1x1xf32>
    %12 = vector.extract %11[0, 0, 0] : f32 from vector<1x1x1xf32>
    %cst_3 = arith.constant 2.048000e+03 : f32
    %13 = arith.divf %12, %cst_3 : f32
    %14 = vector.broadcast %5 : f32 to vector<2x1024xf32>
    %15 = arith.subf %0, %14 : vector<2x1024xf32>
    %cst_4 = arith.constant 9.99999974E-6 : f32
    %16 = arith.addf %13, %cst_4 : f32
    %17 = math.rsqrt %16 : f32
    %18 = vector.broadcast %17 : f32 to vector<2x1024xf32>
    %19 = arith.mulf %15, %18 : vector<2x1024xf32>
    %c0_5 = arith.constant 0 : index
    %c0_6 = arith.constant 0 : index
    %20 = vector.load %arg2[%c0_5, %c0_6] : memref<2x1024xf32, #tpu.memory_space<vmem>>, vector<2x1024xf32>
    tpu.vector_store %arg2[%c0_5, %c0_6], %19 {strides = array<i32>} : memref<2x1024xf32, #tpu.memory_space<vmem>>, vector<2x1024xf32>,
    return
  }
  func.func @transform_0(%arg0: i32) -> (i32, i32) {
    %c0_i32 = arith.constant 0 : i32
    %c0_i32_0 = arith.constant 0 : i32
    %c0_i32_1 = arith.constant 0 : i32
    return %c0_i32, %c0_i32_0 : i32, i32
  }
  func.func @transform_1(%arg0: i32) -> (i32, i32) {
    %c0_i32 = arith.constant 0 : i32
    %c0_i32_0 = arith.constant 0 : i32
    %c0_i32_1 = arith.constant 0 : i32
    return %c0_i32, %c0_i32_0 : i32, i32
  }
}

</mosaic_0001>

<bundles_post_ra>
// kernel: transformers_encoder_forward.6
= control target key start
LH: loop header
LB: loop body
LE: loop exit
PB: predicated region body
PF: predicated region fallthrough
CT: control target
= control target key end

     0   :  { %6 = vsyncpa [#allocation3], 0  ;;  %s155_s9 = smov [#allocation2]   ;;  %s180_s0 = inlined_call_operand.hbm [shape: f32[2,330], index: 0, kind: input, shape index: {}]   ;;  %s181_s1 = inlined_call_operand.vmem [shape: f32[2,330], index: 1, kind: output, shape index: {}]  }
   0x1   :  { %s12_s8 = sshll.u32 %s180_s0, 4  ;;  %s14_s10 = sshll.u32 %s155_s9, 4  ;;  %s13_s8 = int_to_ptr.hbm [resolvable:$true] %s12_s8  ;;  %s15_s10 = int_to_ptr.vmem [resolvable:$true] %s14_s10 }
   0x2   :  { %17 = dma.hbm_to_vmem [thread:$0]  %s13_s8, 96, %s15_s10, [#allocation3]  }
   0x3   :  { %153 = dma.done.wait [#allocation3], 96  }
   0x4   :  { %154 = vsyncadd [#allocation3], 4294967200  ;;  %v22_v0 = vld [vmem:[#allocation2] sm:$0x3f]  ;;  %vm31_vm0 = vcmask 1041408   ;;  %vm35_vm1 = vcmask 599040  }
   0x5   :  { %24 = vst [vmem:[#allocation1] ss:$4 sm:$0xff] %v22_v0  ;;  %v156_v9 = vmov 660.0   ;;  %vm105_vm6 = vcmask 1043458   ;;  %vm107_vm8 = vcmask 603140  }
   0x6   :  { %125 = vrcp.f32 %v156_v9  ;;  %vm106_vm7 = vmor %vm105_vm6, %vm31_vm0 }
   0x7   :  { %vm108_vm9 = vmor %vm107_vm8, %vm106_vm7 }
   0xc   :  { %v25_v1 = vld.sshfl [vmem:[#allocation1] sm:$0xff pattern:$0x73625140]  ;;  %v26_v2 = vld.sshfl [vmem:[#allocation1 + $0x8] sm:$0xff pattern:$0x73625140]  ;;  %v126_v10 = vpop.eup %125 }
   0xd   :  { %v27_v3 = vld.sshfl [vmem:[#allocation1 + $0x10] sm:$0xff pattern:$0x73625140]  ;;  %v32_v4 = vsel %vm31_vm0, %v25_v1, 0.0  ;;  %v33_v5 = vsel %vm31_vm0, %v26_v2, 0.0  ;;  %v48_v11 = vmul.f32 660.0, %v126_v10  ;;  %vm52_vm2 = vweird.f32 %v126_v10 }
   0xe   :  { %v34_v6 = vadd.f32 %v33_v5, %v32_v4  ;;  %v36_v7 = vsel %vm35_vm1, %v27_v3, 0.0 }
   0xf   :  { %v49_v12 = vsub.f32 1.0, %v48_v11 }
  0x10   :  { %v37_v8 = vadd.f32 %v36_v7, %v34_v6 }
  0x11   :  { %v50_v16 = vmul.f32 %v126_v10, %v49_v12 }
  0x12   :  { %38 = vadd.xlane.f32.xlu0 %v37_v8 }
  0x13   :  { %v51_v19 = vadd.f32 %v126_v10, %v50_v16 }
  0x15   :  { %v53_v22 = vsel %vm52_vm2, %v126_v10, %v51_v19 }
  0x85   :  { %v39_v13 = vpop.xlane.xlu0 %38 }
  0x86   :  { %v40_v14 = vrot.slane %v39_v13, 4 }
  0x88   :  { %v41_v15 = vadd.f32 %v40_v14, %v39_v13 }
  0x8a   :  { %v42_v17 = vrot.slane %v41_v15, 2 }
  0x8c   :  { %v43_v18 = vadd.f32 %v42_v17, %v41_v15 }
  0x8e   :  { %v44_v20 = vrot.slane %v43_v18, 1 }
  0x90   :  { %v45_v21 = vadd.f32 %v44_v20, %v43_v18 }
  0x92   :  { %115 = vpush %v45_v21 }
  0x93   :  { %117 = vpush %v53_v22 }
  0xc3   :  { %s116_s0 = spop %115 }
  0xc4   :  { %s118_s11 = spop %117 }
  0xc5   :  { %s55_s12 = smul.f32 %s118_s11, %s116_s0 }
  0xc7   :  { %v56_v23 = vstv %s55_s12 }
  0xc8   :  { %v57_v24 = vsub.f32 %v22_v0, %v56_v23 }
  0xca   :  { %v58_v25 = vmul.f32 %v57_v24, %v57_v24 }
  0xcc   :  { %60 = vst [vmem:[#allocation1] ss:$4 sm:$0xff] %v58_v25 }
  0xd3   :  { %v61_v26 = vld.sshfl [vmem:[#allocation1] sm:$0xff pattern:$0x73625140]  ;;  %v62_v27 = vld.sshfl [vmem:[#allocation1 + $0x8] sm:$0xff pattern:$0x73625140] }
  0xd4   :  { %v63_v28 = vld.sshfl [vmem:[#allocation1 + $0x10] sm:$0xff pattern:$0x73625140]  ;;  %v67_v29 = vsel %vm31_vm0, %v61_v26, 0.0  ;;  %v68_v30 = vsel %vm31_vm0, %v62_v27, 0.0 }
  0xd5   :  { %v69_v31 = vadd.f32 %v68_v30, %v67_v29  ;;  %v70_v32 = vsel %vm35_vm1, %v63_v28, 0.0 }
  0xd7   :  { %v71_v33 = vadd.f32 %v70_v32, %v69_v31 }
  0xd9   :  { %72 = vadd.xlane.f32.xlu0 %v71_v33 }
 0x14c   :  { %v73_v34 = vpop.xlane.xlu0 %72 }
 0x14d   :  { %v74_v35 = vrot.slane %v73_v34, 4 }
 0x14f   :  { %v75_v36 = vadd.f32 %v74_v35, %v73_v34 }
 0x151   :  { %v76_v37 = vrot.slane %v75_v36, 2 }
 0x153   :  { %v77_v38 = vadd.f32 %v76_v37, %v75_v36 }
 0x155   :  { %v78_v39 = vrot.slane %v77_v38, 1 }
 0x157   :  { %v79_v40 = vadd.f32 %v78_v39, %v77_v38 }
 0x159   :  { %119 = vpush %v79_v40 }
 0x18a   :  { %s120_s13 = spop %119 }
 0x18b   :  { %s89_s14 = smul.f32 %s120_s13, %s118_s11 }
 0x18d   :  { %s90_s15 = sadd.f32 1e-05, %s89_s14 }
 0x18f   :  { %v91_v41 = vstv %s90_s15 }
 0x190   :  { %127 = vrsqrt.f32 %v91_v41  ;;  %vm98_vm4 = vweird.f32 %v91_v41 }
 0x196   :  { %v128_v42 = vpop.eup %127 }
 0x197   :  { %v93_v43 = vmul.f32 %v128_v42, %v91_v41  ;;  %vm99_vm3 = vweird.f32 %v128_v42 }
 0x198   :  { %vm100_vm5 = vmor %vm98_vm4, %vm99_vm3 }
 0x199   :  { %v94_v44 = vmul.f32 %v128_v42, %v93_v43 }
 0x19b   :  { %v95_v45 = vmul.f32 0.5, %v94_v44 }
 0x19d   :  { %v96_v46 = vsub.f32 1.5, %v95_v45 }
 0x19f   :  { %v97_v47 = vmul.f32 %v128_v42, %v96_v46 }
 0x1a1   :  { %v101_v48 = vsel %vm100_vm5, %v128_v42, %v97_v47 }
 0x1a2   :  { %121 = vpush %v101_v48 }
 0x1d3   :  { %s122_s16 = spop %121 }
 0x1d4   :  { %v103_v49 = vstv %s122_s16 }
 0x1d5   :  { %v104_v50 = vmul.f32 %v103_v49, %v57_v24 }
 0x1d7   :  { %109 = vst.msk [vmem:[%s181_s1] sm:$0x3f] %vm108_vm9, %v104_v50 }
 0x1d8   :  { %114 = vsyncpa [#allocation3], 1 }

// kernel: transformers_encoder_forward.7
= control target key start
LH: loop header
LB: loop body
LE: loop exit
PB: predicated region body
PF: predicated region fallthrough
CT: control target
= control target key end

     0   :  { %s593_s12 = smov 0   ;;  %s735_s0 = inlined_call_operand.vmem [shape: f32[2,65,10], index: 0, kind: input, shape index: {}]   ;;  %s736_s1 = inlined_call_operand.vmem [shape: bf16[10,32], index: 1, kind: input, shape index: {}]   ;;  %s737_s2 = inlined_call_operand.vmem [shape: f32[2,32], index: 2, kind: input, shape index: {}]   ;;  %s738_s3 = inlined_call_operand.vmem [shape: f32[2,65,32], index: 3, kind: output, shape index: {}]  }
   0x1 LB: > { %s508_s13 = sadd.s32 4294967295, %s570_s12   ;;  %p512_p0 = scmp.ge.s32.totalorder %s570_s12, 1  ;;  %s570_s12 = sphi %s593_s12, %s13_s12  }
   0x2   : > { %p137_p1 = scmp.lt.s32.totalorder %s570_s12, 3 }
   0x4   : > { %p138_p2 = pnand %p512_p0, %p137_p1 }
   0x5   : > { %p161_p3 = scmp.lt.s32.totalorder (!%p138_p2), %s508_s13, 1 }
   0x6   : > { %141 = sbr.rel (%p138_p2) target bundleno = 288 (0x120), region = 32 }
   0xb   : > { %v517_v0 = vld [vmem:[%s736_s1] sm:$0xf]  ;;  %v526_v1 = vld [vmem:[%s736_s1] sm:$0x10]  ;;  %vm209_vm0 = vcmask 1044480   ;;  %s740_s13 = smov (!%p161_p3, %s508_s13), 1 }
   0xc   : > { %v518_v2 = vor.u32 %v526_v1, %v517_v0  ;;  %s530_s18 = smul.u32 72, %s740_s13  ;;  %vm193_vm1 = vcmask 80896   ;;  %vm246_vm2 = vcmask 261120   ;;  %v572_v33 = vmov 65.0  }
   0xd   : > { %542 = vrcp.f32 %v572_v33  ;;  %vm262_vm3 = vcmask 253952  }
   0xe   : > { %v211_v3 = vsel %vm209_vm0, %v518_v2, 0  ;;  %s165_s21 = scalar_lea.vmem %s735_s0, %s530_s18  ;;  %s703_s28 = scalar_lea.vmem %s738_s3, %s530_s18 }
   0xf   : > { %220 = vmatpush.bf16.msra.mxu0 %v211_v3  ;;  %528 = vmatpush.bf16.msra.mxu2 %v211_v3  ;;  %v172_v4 = vld [vmem:[%s165_s21] sm:$0xff]  ;;  %v173_v5 = vld [vmem:[%s165_s21 + $0x8] sm:$0xff]  ;;  %v174_v9 = vld [vmem:[%s165_s21 + $0x10] sm:$0xff] }
  0x10   : > { %527 = vmatpush.bf16.msra.mxu1 %v211_v3  ;;  %529 = vmatpush.bf16.msra.mxu3 %v211_v3  ;;  %v176_v6 = vld [vmem:[%s165_s21 + $0x20] sm:$0xff]  ;;  %v183_v7 = vpack.c.bf16 %v173_v5, %v172_v4  ;;  %v177_v8 = vld [vmem:[%s165_s21 + $0x28] sm:$0xff]  ;;  %v175_v10 = vld [vmem:[%s165_s21 + $0x18] sm:$0xff] }
  0x11   : > { %v185_v11 = vpack.c.bf16 %v177_v8, %v176_v6  ;;  %v184_v12 = vpack.c.bf16 %v175_v10, %v174_v9  ;;  %v180_v13 = vld [vmem:[%s165_s21 + $0x40] sm:$0x1]  ;;  %v178_v15 = vld [vmem:[%s165_s21 + $0x30] sm:$0xff]  ;;  %v179_v16 = vld [vmem:[%s165_s21 + $0x38] sm:$0xff] }
  0x12   : > { %519 = vmatmul.msk.bf16.vlgmr.msra.gmra.mxu0 %vm193_vm1, %v183_v7  ;;  %v187_v14 = vpack.c.bf16 %v180_v13, %v180_v13  ;;  %v186_v17 = vpack.c.bf16 %v179_v16, %v178_v15 }
  0x13   : > { %521 = vmatmul.msk.bf16.vlgmr.msra.gmra.mxu2 %vm193_vm1, %v185_v11  ;;  %520 = vmatmul.msk.bf16.vlgmr.msra.gmra.mxu1 %vm193_vm1, %v184_v12  ;;  %v543_v37 = vpop.eup %542 }
  0x14   : > { %523 = vmatmul.msk.bf16.vlgmr.msra.gmra.mxu3 %vm193_vm1, %v187_v14  ;;  %v272_v41 = vmul.f32 65.0, %v543_v37  ;;  %vm276_vm4 = vweird.f32 %v543_v37 }
  0x16   : > { %v273_v47 = vsub.f32 1.0, %v272_v41 }
  0x18   : > { %v274_v50 = vmul.f32 %v543_v37, %v273_v47 }
  0x1a   : > { %v275_v53 = vadd.f32 %v543_v37, %v274_v50  ;;  %v541_v50 = vld [vmem:[%s737_s2 + $0x1] ss:$0 sm:$0xff] }
  0x1c   : > { %v277_v56 = vsel %vm276_vm4, %v543_v37, %v275_v53 }
  0x23   : > { %522 = vmatmul.msk.bf16.gmra.mxu2 %vm193_vm1, %v186_v17 }
  0x8f   : > { %v222_v18 = vpop.f32.mrf.mxu0 }
  0x90   : > { %v227_v19 = vpop.f32.mrf.mxu1  ;;  %v247_v23 = vsel %vm246_vm2, %v222_v18, 0.0 }
  0x91   : > { %v250_v26 = vsel %vm246_vm2, %v227_v19, 0.0 }
  0x96   : > { %v232_v20 = vpop.f32.mrf.mxu2 }
  0x97   : > { %v224_v21 = vpop.f32.mrf.mxu0  ;;  %v242_v22 = vpop.f32.mrf.mxu3  ;;  %v254_v35 = vsel %vm246_vm2, %v232_v20, 0.0 }
  0x98   : > { %v248_v24 = vsel %vm246_vm2, %v224_v21, 0.0  ;;  %v229_v27 = vpop.f32.mrf.mxu1  ;;  %v263_v44 = vsel %vm262_vm3, %v242_v22, 0.0 }
  0x99   : > { %v249_v25 = vadd.f32 %v248_v24, %v247_v23  ;;  %v252_v31 = vsel %vm246_vm2, %v229_v27, 0.0 }
  0x9b   : > { %v251_v30 = vadd.f32 %v250_v26, %v249_v25 }
  0x9d   : > { %v253_v32 = vadd.f32 %v252_v31, %v251_v30 }
  0x9e   : > { %v234_v28 = vpop.f32.mrf.mxu2 }
  0x9f   : > { %v244_v29 = vpop.f32.mrf.mxu3  ;;  %v255_v36 = vadd.f32 %v254_v35, %v253_v32  ;;  %v256_v38 = vsel %vm246_vm2, %v234_v28, 0.0 }
  0xa1   : > { %v257_v40 = vadd.f32 %v256_v38, %v255_v36 }
  0xa6   : > { %v237_v34 = vpop.f32.mrf.mxu2 }
  0xa7   : > { %v258_v39 = vsel %vm246_vm2, %v237_v34, 0.0 }
  0xa8   : > { %v259_v42 = vadd.f32 %v258_v39, %v257_v40 }
  0xae   : > { %v239_v43 = vpop.f32.mrf.mxu2 }
  0xaf   : > { %v260_v45 = vsel %vm246_vm2, %v239_v43, 0.0 }
  0xb0   : > { %v261_v46 = vadd.f32 %v260_v45, %v259_v42 }
  0xb2   : > { %v264_v48 = vadd.f32 %v263_v44, %v261_v46  ;;  %v540_v44 = vld [vmem:[%s737_s2] ss:$0 sm:$0xff] }
  0xb4   : > { %v265_v49 = vrot.slane %v264_v48, 4 }
  0xb6   : > { %v266_v51 = vadd.f32 %v265_v49, %v264_v48 }
  0xb8   : > { %v267_v52 = vrot.slane %v266_v51, 2 }
  0xba   : > { %v268_v54 = vadd.f32 %v267_v52, %v266_v51 }
  0xbc   : > { %v269_v55 = vrot.slane %v268_v54, 1 }
  0xbe   : > { %v270_v57 = vadd.f32 %v269_v55, %v268_v54 }
  0xc0   : > { %v278_v58 = vmul.f32 %v277_v56, %v270_v57 }
  0xc2   : > { %v279_v59 = vsub.f32 %v222_v18, %v278_v58  ;;  %v280_v60 = vsub.f32 %v224_v21, %v278_v58  ;;  %v281_v61 = vsub.f32 %v227_v19, %v278_v58  ;;  %v282_v62 = vsub.f32 %v229_v27, %v278_v58 }
  0xc3   : > { %v283_v63 = vsub.f32 %v232_v20, %v278_v58  ;;  %v284_v3 = vsub.f32 %v234_v28, %v278_v58  ;;  %v285_v8 = vsub.f32 %v237_v34, %v278_v58  ;;  %v286_v12 = vsub.f32 %v239_v43, %v278_v58 }
  0xc4   : > { %v288_v0 = vmul.f32 %v279_v59, %v279_v59  ;;  %v289_v1 = vmul.f32 %v280_v60, %v280_v60  ;;  %v290_v2 = vmul.f32 %v281_v61, %v281_v61  ;;  %v291_v4 = vmul.f32 %v282_v62, %v282_v62 }
  0xc5   : > { %v292_v9 = vmul.f32 %v283_v63, %v283_v63  ;;  %v293_v13 = vmul.f32 %v284_v3, %v284_v3  ;;  %v287_v16 = vsub.f32 %v242_v22, %v278_v58  ;;  %v294_v17 = vmul.f32 %v285_v8, %v285_v8 }
  0xc6   : > { %v297_v5 = vsel %vm246_vm2, %v288_v0, 0.0  ;;  %v298_v6 = vsel %vm246_vm2, %v289_v1, 0.0  ;;  %v300_v10 = vsel %vm246_vm2, %v290_v2, 0.0  ;;  %v302_v14 = vsel %vm246_vm2, %v291_v4, 0.0 }
  0xc7   : > { %v299_v7 = vadd.f32 %v298_v6, %v297_v5  ;;  %v304_v18 = vsel %vm246_vm2, %v292_v9, 0.0  ;;  %v295_v20 = vmul.f32 %v286_v12, %v286_v12  ;;  %v306_v21 = vsel %vm246_vm2, %v293_v13, 0.0 }
  0xc8   : > { %v296_v24 = vmul.f32 %v287_v16, %v287_v16  ;;  %v308_v25 = vsel %vm246_vm2, %v294_v17, 0.0 }
  0xc9   : > { %v301_v11 = vadd.f32 %v300_v10, %v299_v7  ;;  %v310_v27 = vsel %vm246_vm2, %v295_v20, 0.0 }
  0xca   : > { %v312_v29 = vsel %vm262_vm3, %v296_v24, 0.0 }
  0xcb   : > { %v303_v15 = vadd.f32 %v302_v14, %v301_v11 }
  0xcd   : > { %v305_v19 = vadd.f32 %v304_v18, %v303_v15 }
  0xcf   : > { %v307_v23 = vadd.f32 %v306_v21, %v305_v19 }
  0xd1   : > { %v309_v26 = vadd.f32 %v308_v25, %v307_v23 }
  0xd3   : > { %v311_v28 = vadd.f32 %v310_v27, %v309_v26 }
  0xd5   : > { %v313_v30 = vadd.f32 %v312_v29, %v311_v28 }
  0xd7   : > { %v314_v31 = vrot.slane %v313_v30, 4 }
  0xd9   : > { %v315_v22 = vadd.f32 %v314_v31, %v313_v30 }
  0xdb   : > { %v316_v32 = vrot.slane %v315_v22, 2 }
  0xdd   : > { %v317_v33 = vadd.f32 %v316_v32, %v315_v22 }
  0xdf   : > { %v318_v34 = vrot.slane %v317_v33, 1 }
  0xe1   : > { %v319_v35 = vadd.f32 %v318_v34, %v317_v33 }
  0xe3   : > { %v320_v36 = vmul.f32 %v319_v35, %v277_v56 }
  0xe5   : > { %v321_v37 = vadd.f32 1e-05, %v320_v36 }
  0xe7   : > { %544 = vrsqrt.f32 %v321_v37  ;;  %vm328_vm6 = vweird.f32 %v321_v37 }
  0xed   : > { %v545_v38 = vpop.eup %544 }
  0xee   : > { %v323_v39 = vmul.f32 %v545_v38, %v321_v37  ;;  %vm329_vm5 = vweird.f32 %v545_v38 }
  0xef   : > { %vm330_vm7 = vmor %vm328_vm6, %vm329_vm5 }
  0xf0   : > { %v324_v40 = vmul.f32 %v545_v38, %v323_v39 }
  0xf2   : > { %v325_v41 = vmul.f32 0.5, %v324_v40 }
  0xf4   : > { %v326_v42 = vsub.f32 1.5, %v325_v41 }
  0xf6   : > { %v327_v43 = vmul.f32 %v545_v38, %v326_v42 }
  0xf8   : > { %v331_v45 = vsel %vm330_vm7, %v545_v38, %v327_v43 }
  0xf9   : > { %v332_v46 = vmul.f32 %v331_v45, %v279_v59  ;;  %v333_v47 = vmul.f32 %v331_v45, %v280_v60  ;;  %v334_v48 = vmul.f32 %v331_v45, %v281_v61  ;;  %v335_v49 = vmul.f32 %v331_v45, %v282_v62 }
  0xfa   : > { %v336_v51 = vmul.f32 %v331_v45, %v283_v63  ;;  %v337_v52 = vmul.f32 %v331_v45, %v284_v3  ;;  %v338_v53 = vmul.f32 %v331_v45, %v285_v8  ;;  %v339_v54 = vmul.f32 %v331_v45, %v286_v12 }
  0xfb   : > { %v340_v55 = vmul.f32 %v331_v45, %v287_v16  ;;  %v343_v56 = vmul.f32 %v540_v44, %v332_v46  ;;  %v344_v57 = vmul.f32 %v540_v44, %v333_v47  ;;  %v345_v58 = vmul.f32 %v540_v44, %v334_v48 }
  0xfc   : > { %v346_v0 = vmul.f32 %v540_v44, %v335_v49  ;;  %v347_v1 = vmul.f32 %v540_v44, %v336_v51  ;;  %v348_v2 = vmul.f32 %v540_v44, %v337_v52  ;;  %v349_v4 = vmul.f32 %v540_v44, %v338_v53 }
  0xfd   : > { %v350_v59 = vmul.f32 %v540_v44, %v339_v54  ;;  %v351_v60 = vmul.f32 %v540_v44, %v340_v55  ;;  %v644_v61 = vadd.f32 %v541_v50, %v343_v56  ;;  %v646_v62 = vadd.f32 %v541_v50, %v344_v57 }
  0xfe   : > { %v648_v5 = vadd.f32 %v541_v50, %v345_v58  ;;  %v650_v63 = vadd.f32 %v541_v50, %v346_v0  ;;  %v652_v3 = vadd.f32 %v541_v50, %v347_v1  ;;  %v654_v6 = vadd.f32 %v541_v50, %v348_v2 }
  0xff   : > { %v656_v7 = vadd.f32 %v541_v50, %v349_v4  ;;  %v658_v8 = vadd.f32 %v541_v50, %v350_v59  ;;  %v660_v9 = vadd.f32 %v541_v50, %v351_v60  ;;  %v363_v10 = vmul.f32 %v644_v61, %v644_v61 }
 0x100   : > { %v364_v11 = vmul.f32 %v646_v62, %v646_v62  ;;  %v365_v12 = vmul.f32 %v648_v5, %v648_v5  ;;  %v366_v13 = vmul.f32 %v650_v63, %v650_v63  ;;  %v367_v14 = vmul.f32 %v652_v3, %v652_v3 }
 0x101   : > { %v368_v15 = vmul.f32 %v654_v6, %v654_v6  ;;  %v369_v16 = vmul.f32 %v656_v7, %v656_v7  ;;  %v370_v17 = vmul.f32 %v658_v8, %v658_v8  ;;  %v371_v18 = vmul.f32 %v660_v9, %v660_v9 }
 0x102   : > { %v372_v19 = vmul.f32 %v363_v10, %v644_v61  ;;  %v373_v20 = vmul.f32 %v364_v11, %v646_v62  ;;  %v374_v21 = vmul.f32 %v365_v12, %v648_v5  ;;  %v375_v23 = vmul.f32 %v366_v13, %v650_v63 }
 0x103   : > { %v376_v24 = vmul.f32 %v367_v14, %v652_v3  ;;  %v377_v25 = vmul.f32 %v368_v15, %v654_v6  ;;  %v378_v26 = vmul.f32 %v369_v16, %v656_v7  ;;  %v379_v27 = vmul.f32 %v370_v17, %v658_v8 }
 0x104   : > { %v380_v28 = vmul.f32 %v371_v18, %v660_v9  ;;  %v381_v29 = vmul.f32 0.044715, %v372_v19  ;;  %v382_v30 = vmul.f32 0.044715, %v373_v20  ;;  %v383_v31 = vmul.f32 0.044715, %v374_v21 }
 0x105   : > { %v384_v22 = vmul.f32 0.044715, %v375_v23  ;;  %v385_v32 = vmul.f32 0.044715, %v376_v24  ;;  %v386_v33 = vmul.f32 0.044715, %v377_v25 }
 0x106   : > { %v387_v34 = vmul.f32 0.044715, %v378_v26  ;;  %v388_v35 = vmul.f32 0.044715, %v379_v27  ;;  %v389_v36 = vmul.f32 0.044715, %v380_v28  ;;  %v390_v37 = vadd.f32 %v381_v29, %v644_v61 }
 0x107   : > { %v391_v38 = vadd.f32 %v382_v30, %v646_v62  ;;  %v392_v39 = vadd.f32 %v383_v31, %v648_v5  ;;  %v393_v40 = vadd.f32 %v384_v22, %v650_v63  ;;  %v394_v41 = vadd.f32 %v385_v32, %v652_v3 }
 0x108   : > { %v395_v42 = vadd.f32 %v386_v33, %v654_v6  ;;  %v396_v43 = vadd.f32 %v387_v34, %v656_v7  ;;  %v399_v44 = vmul.f32 0.7978846, %v390_v37  ;;  %v397_v47 = vadd.f32 %v388_v35, %v658_v8 }
 0x109   : > { %v400_v45 = vmul.f32 0.7978846, %v391_v38  ;;  %v401_v46 = vmul.f32 0.7978846, %v392_v39  ;;  %v402_v48 = vmul.f32 0.7978846, %v393_v40  ;;  %v398_v49 = vadd.f32 %v389_v36, %v660_v9 }
 0x10a   : > { %v403_v50 = vmul.f32 0.7978846, %v394_v41  ;;  %546 = vtanh.f32 %v399_v44  ;;  %v404_v51 = vmul.f32 0.7978846, %v395_v42  ;;  %v405_v52 = vmul.f32 0.7978846, %v396_v43 }
 0x10b   : > { %548 = vtanh.f32 %v400_v45  ;;  %v406_v53 = vmul.f32 0.7978846, %v397_v47  ;;  %v407_v54 = vmul.f32 0.7978846, %v398_v49 }
 0x10c   : > { %550 = vtanh.f32 %v401_v46 }
 0x10d   : > { %552 = vtanh.f32 %v402_v48 }
 0x10e   : > { %554 = vtanh.f32 %v403_v50 }
 0x10f   : > { %556 = vtanh.f32 %v404_v51 }
 0x110   : > { %v547_v55 = vpop.eup %546  ;;  %558 = vtanh.f32 %v405_v52 }
 0x111   : > { %v549_v56 = vpop.eup %548  ;;  %560 = vtanh.f32 %v406_v53  ;;  %v417_v57 = vadd.f32 1.0, %v547_v55 }
 0x112   : > { %v551_v58 = vpop.eup %550  ;;  %562 = vtanh.f32 %v407_v54  ;;  %v418_v0 = vadd.f32 1.0, %v549_v56 }
 0x113   : > { %v553_v1 = vpop.eup %552  ;;  %v419_v2 = vadd.f32 1.0, %v551_v58  ;;  %v426_v4 = vmul.f32 0.5, %v417_v57 }
 0x114   : > { %v555_v59 = vpop.eup %554  ;;  %v420_v60 = vadd.f32 1.0, %v553_v1  ;;  %v427_v10 = vmul.f32 0.5, %v418_v0 }
 0x115   : > { %v557_v11 = vpop.eup %556  ;;  %v421_v12 = vadd.f32 1.0, %v555_v59  ;;  %v428_v13 = vmul.f32 0.5, %v419_v2  ;;  %v435_v14 = vmul.f32 %v426_v4, %v644_v61 }
 0x116   : > { %v559_v15 = vpop.eup %558  ;;  %v422_v16 = vadd.f32 1.0, %v557_v11  ;;  %v429_v17 = vmul.f32 0.5, %v420_v60  ;;  %v436_v18 = vmul.f32 %v427_v10, %v646_v62 }
 0x117   : > { %v561_v19 = vpop.eup %560  ;;  %v423_v20 = vadd.f32 1.0, %v559_v15  ;;  %v430_v21 = vmul.f32 0.5, %v421_v12  ;;  %v437_v23 = vmul.f32 %v428_v13, %v648_v5  ;;  %444 = vst.msk [vmem:[%s703_s28] sm:$0xff] %vm246_vm2, %v435_v14 }
 0x118   : > { %v563_v24 = vpop.eup %562  ;;  %v424_v25 = vadd.f32 1.0, %v561_v19  ;;  %v431_v26 = vmul.f32 0.5, %v422_v16  ;;  %v438_v61 = vmul.f32 %v429_v17, %v650_v63  ;;  %445 = vst.msk [vmem:[%s703_s28 + $0x8] sm:$0xff] %vm246_vm2, %v436_v18 }
 0x119   : > { %v425_v62 = vadd.f32 1.0, %v563_v24  ;;  %v432_v27 = vmul.f32 0.5, %v423_v20  ;;  %v439_v28 = vmul.f32 %v430_v21, %v652_v3  ;;  %446 = vst.msk [vmem:[%s703_s28 + $0x10] sm:$0xff] %vm246_vm2, %v437_v23 }
 0x11a   : > { %v433_v5 = vmul.f32 0.5, %v424_v25  ;;  %v440_v29 = vmul.f32 %v431_v26, %v654_v6  ;;  %447 = vst.msk [vmem:[%s703_s28 + $0x18] sm:$0xff] %vm246_vm2, %v438_v61 }
 0x11b   : > { %v434_v30 = vmul.f32 0.5, %v425_v62  ;;  %v441_v31 = vmul.f32 %v432_v27, %v656_v7  ;;  %448 = vst.msk [vmem:[%s703_s28 + $0x20] sm:$0xff] %vm246_vm2, %v439_v28 }
 0x11c   : > { %v442_v63 = vmul.f32 %v433_v5, %v658_v8  ;;  %449 = vst.msk [vmem:[%s703_s28 + $0x28] sm:$0xff] %vm246_vm2, %v440_v29 }
 0x11d   : > { %v443_v22 = vmul.f32 %v434_v30, %v660_v9  ;;  %450 = vst.msk [vmem:[%s703_s28 + $0x30] sm:$0xff] %vm246_vm2, %v441_v31 }
 0x11e   : > { %451 = vst.msk [vmem:[%s703_s28 + $0x38] sm:$0xff] %vm246_vm2, %v442_v63 }
 0x11f   : > { %452 = vst.msk [vmem:[%s703_s28 + $0x40] sm:$0x1] %vm262_vm3, %v443_v22 }
 0x120 PF: > { %s13_s12 = sadd.s32 1, %s570_s12  }
 0x121   : > { %p10_p4 = scmp.ge.s32.totalorder %s13_s12, 4  }
 0x123   :  { %12 = sbr.rel (!%p10_p4) target bundleno = 1 (0x1), region = 62 }

// kernel: transformers_encoder_forward.8
= control target key start
LH: loop header
LB: loop body
LE: loop exit
PB: predicated region body
PF: predicated region fallthrough
CT: control target
= control target key end

     0   :  { %vm78_vm0 = vcmask 785408   ;;  %vm194_vm1 = vcmask 261120   ;;  %s861_s1 = inlined_call_operand.vmem [shape: bf16[96,32], index: 1, kind: input, shape index: {}]   ;;  %s862_s0 = inlined_call_operand.vmem [shape: f32[64,96], index: 0, kind: input, shape index: {}]   ;;  %s863_s3 = inlined_call_operand.vmem [shape: f32[3,32], index: 3, kind: input, shape index: {}]   ;;  %s864_s2 = inlined_call_operand.vmem [shape: bf16[32,32], index: 2, kind: input, shape index: {}]   ;;  %s865_s4 = inlined_call_operand.vmem [shape: f32[64,32], index: 4, kind: output, shape index: {}]  }
   0x1   :  { %v516_v0 = vld [vmem:[%s861_s1 + $0x28] sm:$0xff]  ;;  %v515_v1 = vld [vmem:[%s861_s1 + $0x20] sm:$0xff]  ;;  %v514_v2 = vld [vmem:[%s861_s1 + $0x18] sm:$0xff] }
   0x2   :  { %93 = vmatpush.bf16.msra.mxu0 %v516_v0  ;;  %519 = vmatpush.bf16.msra.mxu2 %v516_v0  ;;  %v513_v3 = vld [vmem:[%s861_s1 + $0x10] sm:$0xff]  ;;  %v512_v4 = vld [vmem:[%s861_s1 + $0x8] sm:$0xff]  ;;  %v511_v5 = vld [vmem:[%s861_s1] sm:$0xff] }
   0x3   :  { %v18_v6 = vld [vmem:[%s862_s0] sm:$0xff]  ;;  %v19_v7 = vld [vmem:[%s862_s0 + $0x8] sm:$0xff]  ;;  %v20_v12 = vld [vmem:[%s862_s0 + $0x10] sm:$0xff] }
   0x4   :  { %v22_v8 = vld [vmem:[%s862_s0 + $0x20] sm:$0xff]  ;;  %v23_v9 = vld [vmem:[%s862_s0 + $0x28] sm:$0xff]  ;;  %v38_v10 = vpack.c.bf16 %v19_v7, %v18_v6  ;;  %v21_v13 = vld [vmem:[%s862_s0 + $0x18] sm:$0xff] }
   0x5   :  { %v40_v11 = vpack.c.bf16 %v23_v9, %v22_v8  ;;  %v24_v14 = vld [vmem:[%s862_s0 + $0x30] sm:$0xff]  ;;  %v25_v15 = vld [vmem:[%s862_s0 + $0x38] sm:$0xff]  ;;  %v39_v16 = vpack.c.bf16 %v21_v13, %v20_v12 }
   0x6   :  { %94 = vmatpush.bf16.msra.mxu0 %v515_v1  ;;  %520 = vmatpush.bf16.msra.mxu2 %v515_v1  ;;  %v41_v17 = vpack.c.bf16 %v25_v15, %v24_v14 }
   0xa   :  { %95 = vmatpush.bf16.msra.mxu0 %v514_v2  ;;  %521 = vmatpush.bf16.msra.mxu2 %v514_v2 }
   0xe   :  { %96 = vmatpush.bf16.msra.mxu0 %v513_v3  ;;  %522 = vmatpush.bf16.msra.mxu2 %v513_v3 }
  0x12   :  { %97 = vmatpush.bf16.msra.mxu0 %v512_v4  ;;  %523 = vmatpush.bf16.msra.mxu2 %v512_v4 }
  0x16   :  { %98 = vmatpush.bf16.msra.mxu0 %v511_v5  ;;  %524 = vmatpush.bf16.msra.mxu2 %v511_v5 }
  0x19   :  { %495 = vmatmul.msk.bf16.vlgmr.msra.gmra.mxu0 %vm78_vm0, %v38_v10  ;;  %497 = vmatmul.msk.bf16.vlgmr.msra.gmra.mxu2 %vm78_vm0, %v40_v11 }
  0x29   :  { %496 = vmatmul.msk.bf16.gmra.mxu0 %vm78_vm0, %v39_v16  ;;  %498 = vmatmul.msk.bf16.gmra.mxu2 %vm78_vm0, %v41_v17 }
  0x96   :  { %v633_v18 = vpop.f32.mrf.mxu0 }
  0x97   :  { %v120_v28 = vmul.f32 %v633_v18, %v633_v18 }
  0x99   :  { %v128_v36 = vmul.f32 %v120_v28, %v633_v18 }
  0x9b   :  { %v136_v42 = vmul.f32 0.044715, %v128_v36 }
  0x9c   :  { %v110_v19 = vpop.f32.mrf.mxu2 }
  0x9d   :  { %v124_v20 = vmul.f32 %v110_v19, %v110_v19  ;;  %v144_v53 = vadd.f32 %v136_v42, %v633_v18 }
  0x9e   :  { %v635_v21 = vpop.f32.mrf.mxu0 }
  0x9f   :  { %v132_v22 = vmul.f32 %v124_v20, %v110_v19  ;;  %v121_v23 = vmul.f32 %v635_v21, %v635_v21  ;;  %v152_v61 = vmul.f32 0.7978846, %v144_v53 }
  0xa1   :  { %v140_v24 = vmul.f32 0.044715, %v132_v22  ;;  %v129_v25 = vmul.f32 %v121_v23, %v635_v21 }
  0xa3   :  { %v148_v26 = vadd.f32 %v140_v24, %v110_v19  ;;  %v137_v27 = vmul.f32 0.044715, %v129_v25 }
  0xa4   :  { %v112_v29 = vpop.f32.mrf.mxu2 }
  0xa5   :  { %v156_v30 = vmul.f32 0.7978846, %v148_v26  ;;  %v125_v31 = vmul.f32 %v112_v29, %v112_v29  ;;  %v145_v32 = vadd.f32 %v137_v27, %v635_v21 }
  0xa6   :  { %v105_v33 = vpop.f32.mrf.mxu0 }
  0xa7   :  { %v133_v34 = vmul.f32 %v125_v31, %v112_v29  ;;  %v122_v35 = vmul.f32 %v105_v33, %v105_v33  ;;  %531 = vtanh.f32 %v156_v30  ;;  %v153_v39 = vmul.f32 0.7978846, %v145_v32 }
  0xa9   :  { %v141_v37 = vmul.f32 0.044715, %v133_v34  ;;  %v130_v38 = vmul.f32 %v122_v35, %v105_v33  ;;  %533 = vtanh.f32 %v153_v39 }
  0xab   :  { %v149_v40 = vadd.f32 %v141_v37, %v112_v29  ;;  %v138_v41 = vmul.f32 0.044715, %v130_v38 }
  0xac   :  { %v115_v43 = vpop.f32.mrf.mxu2 }
  0xad   :  { %v532_v44 = vpop.eup %531  ;;  %v157_v45 = vmul.f32 0.7978846, %v149_v40  ;;  %v146_v46 = vadd.f32 %v138_v41, %v105_v33  ;;  %v126_v47 = vmul.f32 %v115_v43, %v115_v43 }
  0xae   :  { %v107_v48 = vpop.f32.mrf.mxu0  ;;  %v172_v49 = vadd.f32 1.0, %v532_v44 }
  0xaf   :  { %v154_v50 = vmul.f32 0.7978846, %v146_v46  ;;  %v134_v51 = vmul.f32 %v126_v47, %v115_v43  ;;  %v123_v52 = vmul.f32 %v107_v48, %v107_v48  ;;  %535 = vtanh.f32 %v157_v45  ;;  %v534_v60 = vpop.eup %533 }
  0xb0   :  { %v180_v54 = vmul.f32 0.5, %v172_v49  ;;  %v169_v10 = vadd.f32 1.0, %v534_v60 }
  0xb1   :  { %v142_v55 = vmul.f32 0.044715, %v134_v51  ;;  %v131_v56 = vmul.f32 %v123_v52, %v107_v48  ;;  %537 = vtanh.f32 %v154_v50 }
  0xb2   :  { %v645_v57 = vmul.f32 %v180_v54, %v110_v19  ;;  %v177_v17 = vmul.f32 0.5, %v169_v10 }
  0xb3   :  { %v150_v58 = vadd.f32 %v142_v55, %v115_v43  ;;  %v139_v59 = vmul.f32 0.044715, %v131_v56 }
  0xb4   :  { %v117_v62 = vpop.f32.mrf.mxu2  ;;  %v207_v63 = vsel %vm194_vm1, %v645_v57, 0.0  ;;  %v652_v27 = vmul.f32 %v177_v17, %v635_v21 }
  0xb5   :  { %v536_v0 = vpop.eup %535  ;;  %v158_v1 = vmul.f32 0.7978846, %v150_v58  ;;  %v147_v2 = vadd.f32 %v139_v59, %v107_v48  ;;  %v127_v3 = vmul.f32 %v117_v62, %v117_v62  ;;  %208 = vadd.xlane.f32.xlu1 %v207_v63 }
  0xb6   :  { %v173_v4 = vadd.f32 1.0, %v536_v0 }
  0xb7   :  { %v538_v5 = vpop.eup %537  ;;  %v155_v6 = vmul.f32 0.7978846, %v147_v2  ;;  %v135_v7 = vmul.f32 %v127_v3, %v117_v62  ;;  %539 = vtanh.f32 %v158_v1 }
  0xb8   :  { %v181_v8 = vmul.f32 0.5, %v173_v4  ;;  %v170_v9 = vadd.f32 1.0, %v538_v5  ;;  %541 = vtanh.f32 %v152_v61 }
  0xb9   :  { %543 = vtanh.f32 %v155_v6  ;;  %v143_v11 = vmul.f32 0.044715, %v135_v7 }
  0xba   :  { %v189_v12 = vmul.f32 %v181_v8, %v112_v29  ;;  %v178_v13 = vmul.f32 0.5, %v170_v9 }
  0xbb   :  { %v151_v14 = vadd.f32 %v143_v11, %v117_v62 }
  0xbc   :  { %v210_v15 = vsel %vm194_vm1, %v189_v12, 0.0  ;;  %v186_v16 = vmul.f32 %v178_v13, %v105_v33  ;;  %v198_v33 = vsel %vm194_vm1, %v652_v27, 0.0 }
  0xbd   :  { %v540_v19 = vpop.eup %539  ;;  %v159_v20 = vmul.f32 0.7978846, %v151_v14  ;;  %211 = vadd.xlane.f32.xlu1 %v210_v15 }
  0xbe   :  { %v542_v22 = vpop.eup %541  ;;  %v201_v23 = vsel %vm194_vm1, %v186_v16, 0.0  ;;  %v174_v24 = vadd.f32 1.0, %v540_v19 }
  0xbf   :  { %v544_v25 = vpop.eup %543  ;;  %545 = vtanh.f32 %v159_v20  ;;  %202 = vadd.xlane.f32.xlu0 %v201_v23  ;;  %v168_v31 = vadd.f32 1.0, %v542_v22 }
  0xc0   :  { %v182_v26 = vmul.f32 0.5, %v174_v24  ;;  %v171_v28 = vadd.f32 1.0, %v544_v25 }
  0xc1   :  { %v176_v38 = vmul.f32 0.5, %v168_v31 }
  0xc2   :  { %v190_v29 = vmul.f32 %v182_v26, %v115_v43  ;;  %v179_v30 = vmul.f32 0.5, %v171_v28  ;;  %v565_v43 = vmov 32.0   ;;  %v518_v28 = vld [vmem:[%s864_s2 + $0x8] sm:$0xff] }
  0xc3   :  { %v184_v40 = vmul.f32 %v176_v38, %v633_v18  ;;  %547 = vrcp.f32 %v565_v43  ;;  %525 = vmatpush.bf16.msra.mxu3 %v518_v28  ;;  %436 = vmatpush.bf16.msra.mxu1 %v518_v28 }
  0xc4   :  { %v213_v32 = vsel %vm194_vm1, %v190_v29, 0.0  ;;  %v187_v34 = vmul.f32 %v179_v30, %v107_v48 }
  0xc5   :  { %v546_v35 = vpop.eup %545  ;;  %214 = vadd.xlane.f32.xlu2 %v213_v32  ;;  %199 = vadd.xlane.f32.xlu1 %v198_v33  ;;  %v195_v42 = vsel %vm194_vm1, %v184_v40, 0.0  ;;  %v517_v32 = vld [vmem:[%s864_s2] sm:$0xff] }
  0xc6   :  { %v204_v36 = vsel %vm194_vm1, %v187_v34, 0.0  ;;  %v175_v37 = vadd.f32 1.0, %v546_v35 }
  0xc7   :  { %205 = vadd.xlane.f32.xlu0 %v204_v36  ;;  %526 = vmatpush.bf16.msra.mxu3 %v517_v32 }
  0xc8   :  { %v183_v21 = vmul.f32 0.5, %v175_v37  ;;  %437 = vmatpush.bf16.msra.mxu1 %v517_v32 }
  0xc9   :  { %v548_v44 = vpop.eup %547 }
  0xca   :  { %v191_v39 = vmul.f32 %v183_v21, %v117_v62  ;;  %v220_v45 = vmul.f32 32.0, %v548_v44  ;;  %vm224_vm2 = vweird.f32 %v548_v44 }
  0xcc   :  { %v216_v41 = vsel %vm194_vm1, %v191_v39, 0.0  ;;  %v221_v46 = vsub.f32 1.0, %v220_v45 }
  0xcd   :  { %217 = vadd.xlane.f32.xlu2 %v216_v41 }
  0xce   :  { %v222_v47 = vmul.f32 %v548_v44, %v221_v46 }
  0xcf   :  { %196 = vadd.xlane.f32.xlu0 %v195_v42 }
  0xd0   :  { %v223_v48 = vadd.f32 %v548_v44, %v222_v47 }
  0xd2   :  { %v661_v49 = vsel %vm224_vm2, %v548_v44, %v223_v48 }
 0x128   :  { %v209_v50 = vpop.xlane.xlu1 %208 }
 0x129   :  { %v230_v51 = vmul.f32 %v661_v49, %v209_v50 }
 0x12b   :  { %v665_v18 = vsub.f32 %v645_v57, %v230_v51 }
 0x12d   :  { %v246_v52 = vmul.f32 %v665_v18, %v665_v18 }
 0x12f   :  { %v262_v53 = vsel %vm194_vm1, %v246_v52, 0.0 }
 0x130   :  { %263 = vadd.xlane.f32.xlu1 %v262_v53  ;;  %v212_v54 = vpop.xlane.xlu1 %211 }
 0x131   :  { %v231_v58 = vmul.f32 %v661_v49, %v212_v54 }
 0x132   :  { %v203_v55 = vpop.xlane.xlu0 %202 }
 0x133   :  { %v228_v56 = vmul.f32 %v661_v49, %v203_v55  ;;  %v676_v57 = vsub.f32 %v189_v12, %v231_v58 }
 0x135   :  { %v672_v59 = vsub.f32 %v186_v16, %v228_v56  ;;  %v247_v3 = vmul.f32 %v676_v57, %v676_v57 }
 0x137   :  { %v244_v60 = vmul.f32 %v672_v59, %v672_v59  ;;  %v265_v8 = vsel %vm194_vm1, %v247_v3, 0.0 }
 0x138   :  { %v215_v61 = vpop.xlane.xlu2 %214  ;;  %v200_v10 = vpop.xlane.xlu1 %199 }
 0x139   :  { %v256_v62 = vsel %vm194_vm1, %v244_v60, 0.0  ;;  %v232_v1 = vmul.f32 %v661_v49, %v215_v61  ;;  %v227_v14 = vmul.f32 %v661_v49, %v200_v10 }
 0x13a   :  { %257 = vadd.xlane.f32.xlu2 %v256_v62  ;;  %v206_v63 = vpop.xlane.xlu0 %205 }
 0x13b   :  { %v229_v0 = vmul.f32 %v661_v49, %v206_v63  ;;  %v687_v6 = vsub.f32 %v190_v29, %v232_v1  ;;  %v706_v22 = vsub.f32 %v652_v27, %v227_v14 }
 0x13d   :  { %v681_v2 = vsub.f32 %v187_v34, %v229_v0  ;;  %v248_v17 = vmul.f32 %v687_v6, %v687_v6  ;;  %v243_v25 = vmul.f32 %v706_v22, %v706_v22 }
 0x13f   :  { %v245_v4 = vmul.f32 %v681_v2, %v681_v2  ;;  %v268_v23 = vsel %vm194_vm1, %v248_v17, 0.0  ;;  %v253_v26 = vsel %vm194_vm1, %v243_v25, 0.0 }
 0x140   :  { %v218_v5 = vpop.xlane.xlu2 %217 }
 0x141   :  { %v233_v7 = vmul.f32 %v661_v49, %v218_v5  ;;  %v259_v9 = vsel %vm194_vm1, %v245_v4, 0.0 }
 0x142   :  { %266 = vadd.xlane.f32.xlu2 %v265_v8  ;;  %260 = vadd.xlane.f32.xlu0 %v259_v9  ;;  %v197_v11 = vpop.xlane.xlu0 %196 }
 0x143   :  { %v692_v12 = vsub.f32 %v191_v39, %v233_v7  ;;  %v226_v13 = vmul.f32 %v661_v49, %v197_v11 }
 0x145   :  { %v696_v15 = vsub.f32 %v184_v40, %v226_v13  ;;  %v249_v16 = vmul.f32 %v692_v12, %v692_v12 }
 0x147   :  { %v271_v19 = vsel %vm194_vm1, %v249_v16, 0.0  ;;  %v242_v20 = vmul.f32 %v696_v15, %v696_v15 }
 0x148   :  { %272 = vadd.xlane.f32.xlu1 %v271_v19 }
 0x149   :  { %v250_v24 = vsel %vm194_vm1, %v242_v20, 0.0 }
 0x14a   :  { %269 = vadd.xlane.f32.xlu0 %v268_v23  ;;  %251 = vadd.xlane.f32.xlu2 %v250_v24  ;;  %v757_v24 = vld [vmem:[%s863_s3] ss:$0 sm:$0xff] }
 0x152   :  { %254 = vadd.xlane.f32.xlu0 %v253_v26 }
 0x1a3   :  { %v264_v30 = vpop.xlane.xlu1 %263 }
 0x1a4   :  { %v278_v33 = vmul.f32 %v264_v30, %v661_v49 }
 0x1a6   :  { %v721_v34 = vadd.f32 1e-05, %v278_v33 }
 0x1a8   :  { %vm336_vm15 = vweird.f32 %v721_v34 }
 0x1ad   :  { %v258_v29 = vpop.xlane.xlu2 %257 }
 0x1ae   :  { %v276_v27 = vmul.f32 %v258_v29, %v661_v49 }
 0x1b0   :  { %v284_v31 = vadd.f32 1e-05, %v276_v27 }
 0x1b2   :  { %549 = vrsqrt.f32 %v284_v31  ;;  %vm316_vm4 = vweird.f32 %v284_v31 }
 0x1b3   :  { %551 = vrsqrt.f32 %v721_v34 }
 0x1b5   :  { %v267_v35 = vpop.xlane.xlu2 %266  ;;  %v261_v36 = vpop.xlane.xlu0 %260 }
 0x1b6   :  { %v279_v37 = vmul.f32 %v267_v35, %v661_v49  ;;  %v277_v38 = vmul.f32 %v261_v36, %v661_v49 }
 0x1b8   :  { %v550_v21 = vpop.eup %549  ;;  %v725_v39 = vadd.f32 1e-05, %v279_v37  ;;  %v285_v40 = vadd.f32 1e-05, %v277_v38 }
 0x1b9   :  { %v311_v41 = vmul.f32 %v550_v21, %v284_v31  ;;  %v730_v48 = vpop.eup %551  ;;  %vm317_vm3 = vweird.f32 %v550_v21 }
 0x1ba   :  { %553 = vrsqrt.f32 %v725_v39  ;;  %v331_v60 = vmul.f32 %v730_v48, %v721_v34  ;;  %vm318_vm5 = vmor %vm316_vm4, %vm317_vm3  ;;  %vm326_vm7 = vweird.f32 %v285_v40  ;;  %vm337_vm11 = vweird.f32 %v730_v48 }
 0x1bb   :  { %v312_v42 = vmul.f32 %v550_v21, %v311_v41  ;;  %555 = vrsqrt.f32 %v285_v40  ;;  %v273_v46 = vpop.xlane.xlu1 %272  ;;  %vm346_vm12 = vweird.f32 %v725_v39  ;;  %vm338_vm2 = vmor %vm336_vm15, %vm337_vm11 }
 0x1bc   :  { %v281_v56 = vmul.f32 %v273_v46, %v661_v49  ;;  %v332_v7 = vmul.f32 %v730_v48, %v331_v60 }
 0x1bd   :  { %v313_v43 = vmul.f32 0.5, %v312_v42  ;;  %v252_v44 = vpop.xlane.xlu2 %251  ;;  %v270_v45 = vpop.xlane.xlu0 %269 }
 0x1be   :  { %v274_v47 = vmul.f32 %v252_v44, %v661_v49  ;;  %v280_v53 = vmul.f32 %v270_v45, %v661_v49  ;;  %v746_v1 = vadd.f32 1e-05, %v281_v56 }
 0x1bf   :  { %v314_v50 = vsub.f32 1.5, %v313_v43 }
 0x1c0   :  { %v732_v51 = vpop.eup %553  ;;  %v734_v52 = vadd.f32 1e-05, %v274_v47  ;;  %v744_v0 = vadd.f32 1e-05, %v280_v53 }
 0x1c1   :  { %v556_v54 = vpop.eup %555  ;;  %v341_v55 = vmul.f32 %v732_v51, %v725_v39  ;;  %v315_v61 = vmul.f32 %v550_v21, %v314_v50  ;;  %vm347_vm9 = vweird.f32 %v732_v51 }
 0x1c2   :  { %v321_v58 = vmul.f32 %v556_v54, %v285_v40  ;;  %557 = vrsqrt.f32 %v734_v52  ;;  %vm327_vm6 = vweird.f32 %v556_v54  ;;  %vm780_vm13 = vmor %vm346_vm12, %vm347_vm9  ;;  %vm296_vm14 = vweird.f32 %v734_v52 }
 0x1c3   :  { %v342_v62 = vmul.f32 %v732_v51, %v341_v55  ;;  %v319_v8 = vsel %vm318_vm5, %v550_v21, %v315_v61  ;;  %559 = vrsqrt.f32 %v744_v0  ;;  %vm328_vm8 = vmor %vm326_vm7, %vm327_vm6 }
 0x1c4   :  { %v322_v63 = vmul.f32 %v556_v54, %v321_v58  ;;  %561 = vrsqrt.f32 %v746_v1  ;;  %v372_v16 = vmul.f32 %v319_v8, %v672_v59 }
 0x1c5   :  { %v255_v3 = vpop.xlane.xlu0 %254  ;;  %v343_v10 = vmul.f32 0.5, %v342_v62 }
 0x1c6   :  { %v323_v4 = vmul.f32 0.5, %v322_v63  ;;  %v275_v5 = vmul.f32 %v255_v3, %v661_v49  ;;  %v333_v49 = vmul.f32 0.5, %v332_v7  ;;  %v381_v59 = vmul.f32 %v757_v24, %v372_v16 }
 0x1c7   :  { %v344_v20 = vsub.f32 1.5, %v343_v10 }
 0x1c8   :  { %v558_v9 = vpop.eup %557  ;;  %v324_v11 = vsub.f32 1.5, %v323_v4  ;;  %v283_v13 = vadd.f32 1e-05, %v275_v5  ;;  %v334_v30 = vsub.f32 1.5, %v333_v49 }
 0x1c9   :  { %v291_v14 = vmul.f32 %v558_v9, %v734_v52  ;;  %v760_v28 = vpop.eup %559  ;;  %v345_v33 = vmul.f32 %v732_v51, %v344_v20  ;;  %vm297_vm10 = vweird.f32 %v558_v9  ;;  %v530_v20 = vld [vmem:[%s863_s3 + $0x2] ss:$0 sm:$0xff] }
 0x1ca   :  { %v325_v17 = vmul.f32 %v556_v54, %v324_v11  ;;  %563 = vrsqrt.f32 %v283_v13  ;;  %v763_v29 = vpop.eup %561  ;;  %v351_v36 = vmul.f32 %v760_v28, %v744_v0  ;;  %v335_v40 = vmul.f32 %v730_v48, %v334_v30  ;;  %vm298_vm0 = vmor %vm296_vm14, %vm297_vm10 }
 0x1cb   :  { %v292_v19 = vmul.f32 %v558_v9, %v291_v14  ;;  %v361_v42 = vmul.f32 %v763_v29, %v746_v1  ;;  %v349_v44 = vsel %vm780_vm13, %v732_v51, %v345_v33  ;;  %vm306_vm4 = vweird.f32 %v283_v13 }
 0x1cc   :  { %v329_v23 = vsel %vm328_vm8, %v556_v54, %v325_v17  ;;  %v352_v46 = vmul.f32 %v760_v28, %v351_v36  ;;  %v339_v50 = vsel %vm338_vm2, %v730_v48, %v335_v40  ;;  %v375_v53 = vmul.f32 %v349_v44, %v676_v57 }
 0x1cd   :  { %v373_v25 = vmul.f32 %v329_v23, %v681_v2  ;;  %v293_v26 = vmul.f32 0.5, %v292_v19  ;;  %v771_v2 = vld [vmem:[%s863_s3 + $0x1] ss:$0 sm:$0xff]  ;;  %v362_v52 = vmul.f32 %v763_v29, %v361_v42  ;;  %v374_v56 = vmul.f32 %v339_v50, %v665_v18 }
 0x1ce   :  { %v390_v38 = vadd.f32 %v771_v2, %v381_v59  ;;  %v353_v51 = vmul.f32 0.5, %v352_v46  ;;  %v384_v62 = vmul.f32 %v757_v24, %v375_v53  ;;  %vm357_vm6 = vweird.f32 %v760_v28 }
 0x1cf   :  { %v294_v27 = vsub.f32 1.5, %v293_v26  ;;  %v382_v31 = vmul.f32 %v757_v24, %v373_v25  ;;  %v363_v58 = vmul.f32 0.5, %v362_v52  ;;  %v383_v57 = vmul.f32 %v757_v24, %v374_v56 }
 0x1d0   :  { %v564_v32 = vpop.eup %563  ;;  %v354_v63 = vsub.f32 1.5, %v353_v51  ;;  %v393_v18 = vadd.f32 %v771_v2, %v384_v62  ;;  %vm367_vm7 = vweird.f32 %v763_v29  ;;  %vm356_vm8 = vweird.f32 %v744_v0 }
 0x1d1   :  { %v295_v35 = vmul.f32 %v558_v9, %v294_v27  ;;  %v301_v37 = vmul.f32 %v564_v32, %v283_v13  ;;  %v391_v21 = vadd.f32 %v771_v2, %v382_v31  ;;  %vm307_vm3 = vweird.f32 %v564_v32  ;;  %vm358_vm9 = vmor %vm356_vm8, %vm357_vm6 }
 0x1d2   :  { %vm308_vm5 = vmor %vm306_vm4, %vm307_vm3  ;;  %v355_v7 = vmul.f32 %v760_v28, %v354_v63  ;;  %v392_v8 = vadd.f32 %v771_v2, %v383_v57  ;;  %vm366_vm10 = vweird.f32 %v746_v1 }
 0x1d3   :  { %v302_v43 = vmul.f32 %v564_v32, %v301_v37  ;;  %v401_v39 = vpack.c.bf16 %v391_v21, %v390_v38  ;;  %v299_v45 = vsel %vm298_vm0, %v558_v9, %v295_v35  ;;  %vm368_vm11 = vmor %vm366_vm10, %vm367_vm7 }
 0x1d4   :  { %v370_v54 = vmul.f32 %v299_v45, %v696_v15  ;;  %v364_v15 = vsub.f32 1.5, %v363_v58  ;;  %v402_v10 = vpack.c.bf16 %v393_v18, %v392_v8  ;;  %v359_v11 = vsel %vm358_vm9, %v760_v28, %v355_v7 }
 0x1d5   :  { %v303_v47 = vmul.f32 0.5, %v302_v43  ;;  %508 = vmatmul.msk.bf16.vlgmr.msra.gmra.mxu3 %vm194_vm1, %v401_v39  ;;  %v376_v14 = vmul.f32 %v359_v11, %v687_v6 }
 0x1d6   :  { %v379_v48 = vmul.f32 %v757_v24, %v370_v54  ;;  %v365_v9 = vmul.f32 %v763_v29, %v364_v15 }
 0x1d7   :  { %v304_v34 = vsub.f32 1.5, %v303_v47  ;;  %v385_v17 = vmul.f32 %v757_v24, %v376_v14 }
 0x1d8   :  { %v388_v4 = vadd.f32 %v771_v2, %v379_v48  ;;  %v369_v13 = vsel %vm368_vm11, %v763_v29, %v365_v9 }
 0x1d9   :  { %v305_v55 = vmul.f32 %v564_v32, %v304_v34  ;;  %v377_v16 = vmul.f32 %v369_v13, %v692_v12  ;;  %v394_v49 = vadd.f32 %v771_v2, %v385_v17 }
 0x1db   :  { %v309_v60 = vsel %vm308_vm5, %v564_v32, %v305_v55  ;;  %v386_v0 = vmul.f32 %v757_v24, %v377_v16 }
 0x1dc   :  { %v371_v61 = vmul.f32 %v309_v60, %v706_v22 }
 0x1dd   :  { %v395_v19 = vadd.f32 %v771_v2, %v386_v0 }
 0x1de   :  { %v380_v3 = vmul.f32 %v757_v24, %v371_v61 }
 0x1df   :  { %v403_v1 = vpack.c.bf16 %v395_v19, %v394_v49 }
 0x1e0   :  { %v389_v5 = vadd.f32 %v771_v2, %v380_v3 }
 0x1e2   :  { %v400_v22 = vpack.c.bf16 %v389_v5, %v388_v4 }
 0x1e4   :  { %507 = vmatmul.msk.bf16.vlgmr.msra.gmra.mxu1 %vm194_vm1, %v400_v22 }
 0x1e5   :  { %509 = vmatmul.msk.bf16.gmra.mxu3 %vm194_vm1, %v402_v10 }
 0x1f5   :  { %510 = vmatmul.msk.bf16.gmra.mxu3 %vm194_vm1, %v403_v1 }
 0x258   :  { %v444_v23 = vpop.f32.mrf.mxu3 }
 0x259   :  { %v445_v25 = vadd.f32 %v530_v20, %v444_v23 }
 0x25b   :  { %461 = vst.msk [vmem:[%s865_s4 + $0x10] sm:$0xff] %vm194_vm1, %v445_v25 }
 0x260   :  { %v446_v6 = vpop.f32.mrf.mxu3 }
 0x261   :  { %v439_v12 = vpop.f32.mrf.mxu1  ;;  %v447_v24 = vadd.f32 %v530_v20, %v446_v6 }
 0x262   :  { %v440_v26 = vadd.f32 %v530_v20, %v439_v12 }
 0x263   :  { %462 = vst.msk [vmem:[%s865_s4 + $0x18] sm:$0xff] %vm194_vm1, %v447_v24 }
 0x264   :  { %459 = vst.msk [vmem:[%s865_s4] sm:$0xff] %vm194_vm1, %v440_v26 }
 0x268   :  { %v449_v28 = vpop.f32.mrf.mxu3 }
 0x269   :  { %v441_v59 = vpop.f32.mrf.mxu1  ;;  %v450_v29 = vadd.f32 %v530_v20, %v449_v28 }
 0x26a   :  { %v442_v30 = vadd.f32 %v530_v20, %v441_v59 }
 0x26b   :  { %463 = vst.msk [vmem:[%s865_s4 + $0x20] sm:$0xff] %vm194_vm1, %v450_v29 }
 0x26c   :  { %460 = vst.msk [vmem:[%s865_s4 + $0x8] sm:$0xff] %vm194_vm1, %v442_v30 }
 0x270   :  { %v451_v27 = vpop.f32.mrf.mxu3 }
 0x271   :  { %v452_v31 = vadd.f32 %v530_v20, %v451_v27 }
 0x273   :  { %464 = vst.msk [vmem:[%s865_s4 + $0x28] sm:$0xff] %vm194_vm1, %v452_v31 }
 0x278   :  { %v454_v32 = vpop.f32.mrf.mxu3 }
 0x279   :  { %v455_v33 = vadd.f32 %v530_v20, %v454_v32 }
 0x27b   :  { %465 = vst.msk [vmem:[%s865_s4 + $0x30] sm:$0xff] %vm194_vm1, %v455_v33 }
 0x280   :  { %v456_v2 = vpop.f32.mrf.mxu3 }
 0x281   :  { %v457_v35 = vadd.f32 %v530_v20, %v456_v2 }
 0x283   :  { %466 = vst.msk [vmem:[%s865_s4 + $0x38] sm:$0xff] %vm194_vm1, %v457_v35 }

// kernel: transformers_encoder_forward.9
= control target key start
LH: loop header
LB: loop body
LE: loop exit
PB: predicated region body
PF: predicated region fallthrough
CT: control target
= control target key end

     0   :  { %vm214_vm0 = vcmask 261120   ;;  %s859_s1 = inlined_call_operand.vmem [shape: bf16[128,32], index: 1, kind: input, shape index: {}]   ;;  %s860_s3 = inlined_call_operand.vmem [shape: f32[3,32], index: 3, kind: input, shape index: {}]   ;;  %s861_s0 = inlined_call_operand.vmem [shape: f32[64,128], index: 0, kind: input, shape index: {}]   ;;  %s862_s2 = inlined_call_operand.vmem [shape: f32[64,32], index: 2, kind: input, shape index: {}]   ;;  %s863_s4 = inlined_call_operand.vmem [shape: f32[64,32], index: 4, kind: output, shape index: {}]  }
   0x1   :  { %v467_v0 = vld [vmem:[%s859_s1 + $0x38] sm:$0xff]  ;;  %v466_v1 = vld [vmem:[%s859_s1 + $0x30] sm:$0xff]  ;;  %v465_v2 = vld [vmem:[%s859_s1 + $0x28] sm:$0xff] }
   0x2   :  { %95 = vmatpush.bf16.msra.mxu0 %v467_v0  ;;  %468 = vmatpush.bf16.msra.mxu1 %v467_v0  ;;  %v464_v3 = vld [vmem:[%s859_s1 + $0x20] sm:$0xff]  ;;  %v463_v4 = vld [vmem:[%s859_s1 + $0x18] sm:$0xff]  ;;  %v462_v5 = vld [vmem:[%s859_s1 + $0x10] sm:$0xff] }
   0x3   :  { %469 = vmatpush.bf16.msra.mxu2 %v467_v0  ;;  %470 = vmatpush.bf16.msra.mxu3 %v467_v0  ;;  %v461_v6 = vld [vmem:[%s859_s1 + $0x8] sm:$0xff]  ;;  %v460_v7 = vld [vmem:[%s859_s1] sm:$0xff]  ;;  %v19_v10 = vld [vmem:[%s861_s0 + $0x10] sm:$0xff] }
   0x4   :  { %v17_v8 = vld [vmem:[%s861_s0] sm:$0xff]  ;;  %v18_v9 = vld [vmem:[%s861_s0 + $0x8] sm:$0xff]  ;;  %v20_v11 = vld [vmem:[%s861_s0 + $0x18] sm:$0xff] }
   0x5   :  { %v21_v12 = vld [vmem:[%s861_s0 + $0x20] sm:$0xff]  ;;  %v22_v13 = vld [vmem:[%s861_s0 + $0x28] sm:$0xff]  ;;  %v23_v14 = vld [vmem:[%s861_s0 + $0x30] sm:$0xff]  ;;  %v41_v16 = vpack.c.bf16 %v18_v9, %v17_v8  ;;  %v42_v17 = vpack.c.bf16 %v20_v11, %v19_v10 }
   0x6   :  { %96 = vmatpush.bf16.msra.mxu0 %v466_v1  ;;  %471 = vmatpush.bf16.msra.mxu1 %v466_v1  ;;  %v24_v15 = vld [vmem:[%s861_s0 + $0x38] sm:$0xff]  ;;  %v43_v18 = vpack.c.bf16 %v22_v13, %v21_v12  ;;  %v493_v20 = vld [vmem:[%s860_s3] ss:$0 sm:$0xff] }
   0x7   :  { %472 = vmatpush.bf16.msra.mxu2 %v466_v1  ;;  %473 = vmatpush.bf16.msra.mxu3 %v466_v1  ;;  %v44_v19 = vpack.c.bf16 %v24_v15, %v23_v14  ;;  %v198_v14 = vld [vmem:[%s862_s2 + $0x10] sm:$0xff] }
   0xa   :  { %97 = vmatpush.bf16.msra.mxu0 %v465_v2  ;;  %474 = vmatpush.bf16.msra.mxu1 %v465_v2 }
   0xb   :  { %475 = vmatpush.bf16.msra.mxu2 %v465_v2  ;;  %476 = vmatpush.bf16.msra.mxu3 %v465_v2 }
   0xe   :  { %98 = vmatpush.bf16.msra.mxu0 %v464_v3  ;;  %477 = vmatpush.bf16.msra.mxu1 %v464_v3 }
   0xf   :  { %478 = vmatpush.bf16.msra.mxu2 %v464_v3  ;;  %479 = vmatpush.bf16.msra.mxu3 %v464_v3 }
  0x12   :  { %99 = vmatpush.bf16.msra.mxu0 %v463_v4  ;;  %480 = vmatpush.bf16.msra.mxu1 %v463_v4 }
  0x13   :  { %481 = vmatpush.bf16.msra.mxu2 %v463_v4  ;;  %482 = vmatpush.bf16.msra.mxu3 %v463_v4 }
  0x16   :  { %100 = vmatpush.bf16.msra.mxu0 %v462_v5  ;;  %483 = vmatpush.bf16.msra.mxu1 %v462_v5 }
  0x17   :  { %484 = vmatpush.bf16.msra.mxu2 %v462_v5  ;;  %485 = vmatpush.bf16.msra.mxu3 %v462_v5 }
  0x1a   :  { %101 = vmatpush.bf16.msra.mxu0 %v461_v6  ;;  %486 = vmatpush.bf16.msra.mxu1 %v461_v6 }
  0x1b   :  { %487 = vmatpush.bf16.msra.mxu2 %v461_v6  ;;  %488 = vmatpush.bf16.msra.mxu3 %v461_v6 }
  0x1e   :  { %102 = vmatpush.bf16.msra.mxu0 %v460_v7  ;;  %489 = vmatpush.bf16.msra.mxu1 %v460_v7 }
  0x1f   :  { %490 = vmatpush.bf16.msra.mxu2 %v460_v7  ;;  %491 = vmatpush.bf16.msra.mxu3 %v460_v7 }
  0x21   :  { %103 = vmatmul.bf16.vlgmr.msra.gmra.mxu0 %v41_v16  ;;  %108 = vmatmul.bf16.vlgmr.msra.gmra.mxu1 %v42_v17 }
  0x22   :  { %113 = vmatmul.bf16.vlgmr.msra.gmra.mxu2 %v43_v18  ;;  %118 = vmatmul.bf16.vlgmr.msra.gmra.mxu3 %v44_v19  ;;  %v196_v19 = vld [vmem:[%s862_s2] sm:$0xff] }
  0x9e   :  { %v104_v21 = vpop.f32.mrf.mxu0  ;;  %v109_v22 = vpop.f32.mrf.mxu1 }
  0x9f   :  { %v607_v23 = vadd.f32 %v493_v20, %v104_v21  ;;  %v609_v24 = vadd.f32 %v493_v20, %v109_v22 }
  0xa1   :  { %v124_v25 = vmul.f32 %v607_v23, %v607_v23  ;;  %v126_v26 = vmul.f32 %v609_v24, %v609_v24 }
  0xa3   :  { %v132_v27 = vmul.f32 %v124_v25, %v607_v23  ;;  %v134_v28 = vmul.f32 %v126_v26, %v609_v24 }
  0xa5   :  { %v140_v29 = vmul.f32 0.044715, %v132_v27  ;;  %v142_v30 = vmul.f32 0.044715, %v134_v28  ;;  %v114_v31 = vpop.f32.mrf.mxu2  ;;  %v119_v32 = vpop.f32.mrf.mxu3 }
  0xa6   :  { %v617_v33 = vadd.f32 %v493_v20, %v114_v31  ;;  %v619_v34 = vadd.f32 %v493_v20, %v119_v32  ;;  %v106_v35 = vpop.f32.mrf.mxu0  ;;  %v111_v36 = vpop.f32.mrf.mxu1 }
  0xa7   :  { %v148_v37 = vadd.f32 %v140_v29, %v607_v23  ;;  %v150_v38 = vadd.f32 %v142_v30, %v609_v24  ;;  %v623_v39 = vadd.f32 %v493_v20, %v106_v35  ;;  %v625_v40 = vadd.f32 %v493_v20, %v111_v36 }
  0xa8   :  { %v128_v41 = vmul.f32 %v617_v33, %v617_v33  ;;  %v130_v42 = vmul.f32 %v619_v34, %v619_v34 }
  0xa9   :  { %v125_v43 = vmul.f32 %v623_v39, %v623_v39  ;;  %v127_v44 = vmul.f32 %v625_v40, %v625_v40  ;;  %v158_v45 = vmul.f32 0.7978846, %v150_v38  ;;  %v156_v46 = vmul.f32 0.7978846, %v148_v37  ;;  %v200_v37 = vld [vmem:[%s862_s2 + $0x20] sm:$0xff] }
  0xaa   :  { %v136_v47 = vmul.f32 %v128_v41, %v617_v33  ;;  %v138_v48 = vmul.f32 %v130_v42, %v619_v34 }
  0xab   :  { %v133_v49 = vmul.f32 %v125_v43, %v623_v39  ;;  %v135_v50 = vmul.f32 %v127_v44, %v625_v40  ;;  %496 = vtanh.f32 %v158_v45  ;;  %v199_v43 = vld [vmem:[%s862_s2 + $0x18] sm:$0xff] }
  0xac   :  { %v144_v51 = vmul.f32 0.044715, %v136_v47  ;;  %v146_v52 = vmul.f32 0.044715, %v138_v48  ;;  %498 = vtanh.f32 %v156_v46  ;;  %v197_v46 = vld [vmem:[%s862_s2 + $0x8] sm:$0xff] }
  0xad   :  { %v141_v53 = vmul.f32 0.044715, %v133_v49  ;;  %v143_v54 = vmul.f32 0.044715, %v135_v50  ;;  %v116_v55 = vpop.f32.mrf.mxu2  ;;  %v121_v56 = vpop.f32.mrf.mxu3 }
  0xae   :  { %v152_v57 = vadd.f32 %v144_v51, %v617_v33  ;;  %v154_v58 = vadd.f32 %v146_v52, %v619_v34  ;;  %v641_v59 = vadd.f32 %v493_v20, %v116_v55  ;;  %v643_v60 = vadd.f32 %v493_v20, %v121_v56 }
  0xaf   :  { %v149_v61 = vadd.f32 %v141_v53, %v623_v39  ;;  %v151_v62 = vadd.f32 %v143_v54, %v625_v40 }
  0xb0   :  { %v129_v63 = vmul.f32 %v641_v59, %v641_v59  ;;  %v131_v0 = vmul.f32 %v643_v60, %v643_v60  ;;  %v160_v1 = vmul.f32 0.7978846, %v152_v57  ;;  %v162_v3 = vmul.f32 0.7978846, %v154_v58 }
  0xb1   :  { %v497_v2 = vpop.eup %496  ;;  %v157_v4 = vmul.f32 0.7978846, %v149_v61  ;;  %v159_v5 = vmul.f32 0.7978846, %v151_v62  ;;  %v202_v62 = vld [vmem:[%s862_s2 + $0x30] sm:$0xff] }
  0xb2   :  { %v499_v6 = vpop.eup %498  ;;  %v137_v7 = vmul.f32 %v129_v63, %v641_v59  ;;  %v139_v8 = vmul.f32 %v131_v0, %v643_v60  ;;  %v174_v9 = vadd.f32 1.0, %v497_v2  ;;  %500 = vtanh.f32 %v160_v1  ;;  %v203_v0 = vld [vmem:[%s862_s2 + $0x38] sm:$0xff] }
  0xb3   :  { %v172_v10 = vadd.f32 1.0, %v499_v6  ;;  %502 = vtanh.f32 %v159_v5 }
  0xb4   :  { %v145_v11 = vmul.f32 0.044715, %v137_v7  ;;  %v147_v12 = vmul.f32 0.044715, %v139_v8  ;;  %v182_v13 = vmul.f32 0.5, %v174_v9  ;;  %504 = vtanh.f32 %v157_v4 }
  0xb5   :  { %v180_v15 = vmul.f32 0.5, %v172_v10  ;;  %506 = vtanh.f32 %v162_v3  ;;  %v530_v7 = vmov 32.0  }
  0xb6   :  { %v153_v16 = vadd.f32 %v145_v11, %v641_v59  ;;  %v155_v17 = vadd.f32 %v147_v12, %v643_v60  ;;  %v190_v18 = vmul.f32 %v182_v13, %v609_v24 }
  0xb7   :  { %v188_v20 = vmul.f32 %v180_v15, %v607_v23 }
  0xb8   :  { %v501_v21 = vpop.eup %500  ;;  %v161_v22 = vmul.f32 0.7978846, %v153_v16  ;;  %v163_v25 = vmul.f32 0.7978846, %v155_v17  ;;  %v663_v26 = vadd.f32 %v198_v14, %v190_v18 }
  0xb9   :  { %v503_v27 = vpop.eup %502  ;;  %v665_v28 = vadd.f32 %v196_v19, %v188_v20  ;;  %v176_v29 = vadd.f32 1.0, %v501_v21 }
  0xba   :  { %v505_v30 = vpop.eup %504  ;;  %v221_v24 = vsel %vm214_vm0, %v663_v26, 0.0  ;;  %v175_v31 = vadd.f32 1.0, %v503_v27  ;;  %508 = vtanh.f32 %v161_v22 }
  0xbb   :  { %v507_v32 = vpop.eup %506  ;;  %222 = vadd.xlane.f32.xlu1 %v221_v24  ;;  %v215_v23 = vsel %vm214_vm0, %v665_v28, 0.0  ;;  %v184_v35 = vmul.f32 0.5, %v176_v29  ;;  %v173_v36 = vadd.f32 1.0, %v505_v30  ;;  %510 = vtanh.f32 %v163_v25 }
  0xbc   :  { %216 = vadd.xlane.f32.xlu0 %v215_v23  ;;  %v183_v38 = vmul.f32 0.5, %v175_v31  ;;  %v178_v41 = vadd.f32 1.0, %v507_v32  ;;  %512 = vrcp.f32 %v530_v7 }
  0xbd   :  { %v192_v42 = vmul.f32 %v184_v35, %v617_v33  ;;  %v181_v44 = vmul.f32 0.5, %v173_v36 }
  0xbe   :  { %v191_v45 = vmul.f32 %v183_v38, %v625_v40  ;;  %v186_v49 = vmul.f32 0.5, %v178_v41 }
  0xbf   :  { %v208_v47 = vadd.f32 %v200_v37, %v192_v42  ;;  %v189_v48 = vmul.f32 %v181_v44, %v623_v39  ;;  %v201_v39 = vld [vmem:[%s862_s2 + $0x28] sm:$0xff] }
  0xc0   :  { %v509_v50 = vpop.eup %508  ;;  %v207_v51 = vadd.f32 %v199_v43, %v191_v45  ;;  %v194_v58 = vmul.f32 %v186_v49, %v619_v34 }
  0xc1   :  { %v511_v52 = vpop.eup %510  ;;  %v227_v33 = vsel %vm214_vm0, %v208_v47, 0.0  ;;  %v205_v53 = vadd.f32 %v197_v46, %v189_v48  ;;  %v177_v54 = vadd.f32 1.0, %v509_v50 }
  0xc2   :  { %228 = vadd.xlane.f32.xlu2 %v227_v33  ;;  %v224_v55 = vsel %vm214_vm0, %v207_v51, 0.0  ;;  %v179_v56 = vadd.f32 1.0, %v511_v52  ;;  %v210_v34 = vadd.f32 %v202_v62, %v194_v58 }
  0xc3   :  { %225 = vadd.xlane.f32.xlu1 %v224_v55  ;;  %v218_v40 = vsel %vm214_vm0, %v205_v53, 0.0  ;;  %v185_v57 = vmul.f32 0.5, %v177_v54 }
  0xc4   :  { %219 = vadd.xlane.f32.xlu0 %v218_v40  ;;  %v187_v61 = vmul.f32 0.5, %v179_v56  ;;  %v233_v6 = vsel %vm214_vm0, %v210_v34, 0.0 }
  0xc5   :  { %v193_v63 = vmul.f32 %v185_v57, %v641_v59  ;;  %v513_v59 = vpop.eup %512 }
  0xc6   :  { %v195_v1 = vmul.f32 %v187_v61, %v643_v60  ;;  %v240_v8 = vmul.f32 32.0, %v513_v59  ;;  %vm244_vm1 = vweird.f32 %v513_v59 }
  0xc7   :  { %v209_v2 = vadd.f32 %v201_v39, %v193_v63 }
  0xc8   :  { %v211_v3 = vadd.f32 %v203_v0, %v195_v1  ;;  %v241_v9 = vsub.f32 1.0, %v240_v8 }
  0xc9   :  { %v230_v4 = vsel %vm214_vm0, %v209_v2, 0.0 }
  0xca   :  { %231 = vadd.xlane.f32.xlu2 %v230_v4  ;;  %v236_v5 = vsel %vm214_vm0, %v211_v3, 0.0  ;;  %v242_v10 = vmul.f32 %v513_v59, %v241_v9 }
  0xcb   :  { %237 = vadd.xlane.f32.xlu1 %v236_v5 }
  0xcc   :  { %234 = vadd.xlane.f32.xlu0 %v233_v6  ;;  %v243_v11 = vadd.f32 %v513_v59, %v242_v10 }
  0xce   :  { %v701_v60 = vsel %vm244_vm1, %v513_v59, %v243_v11 }
 0x12e   :  { %v223_v12 = vpop.xlane.xlu1 %222 }
 0x12f   :  { %v248_v13 = vmul.f32 %v701_v60, %v223_v12  ;;  %v217_v14 = vpop.xlane.xlu0 %216 }
 0x130   :  { %v246_v15 = vmul.f32 %v701_v60, %v217_v14 }
 0x131   :  { %v706_v16 = vsub.f32 %v663_v26, %v248_v13 }
 0x132   :  { %v709_v17 = vsub.f32 %v665_v28, %v246_v15 }
 0x133   :  { %v264_v18 = vmul.f32 %v706_v16, %v706_v16 }
 0x134   :  { %v262_v19 = vmul.f32 %v709_v17, %v709_v17 }
 0x135   :  { %v229_v20 = vpop.xlane.xlu2 %228  ;;  %v276_v21 = vsel %vm214_vm0, %v264_v18, 0.0 }
 0x136   :  { %v250_v22 = vmul.f32 %v701_v60, %v229_v20  ;;  %277 = vadd.xlane.f32.xlu1 %v276_v21  ;;  %v226_v25 = vpop.xlane.xlu1 %225  ;;  %v270_v27 = vsel %vm214_vm0, %v262_v19, 0.0 }
 0x137   :  { %v249_v26 = vmul.f32 %v701_v60, %v226_v25  ;;  %271 = vadd.xlane.f32.xlu2 %v270_v27  ;;  %v220_v28 = vpop.xlane.xlu0 %219 }
 0x138   :  { %v719_v29 = vsub.f32 %v208_v47, %v250_v22  ;;  %v247_v30 = vmul.f32 %v701_v60, %v220_v28 }
 0x139   :  { %v722_v24 = vsub.f32 %v207_v51, %v249_v26  ;;  %v775_v26 = vld [vmem:[%s860_s3 + $0x1] ss:$0 sm:$0xff] }
 0x13a   :  { %v266_v31 = vmul.f32 %v719_v29, %v719_v29  ;;  %v728_v23 = vsub.f32 %v205_v53, %v247_v30 }
 0x13b   :  { %v265_v32 = vmul.f32 %v722_v24, %v722_v24 }
 0x13c   :  { %v282_v35 = vsel %vm214_vm0, %v266_v31, 0.0  ;;  %v263_v46 = vmul.f32 %v728_v23, %v728_v23 }
 0x13d   :  { %v232_v36 = vpop.xlane.xlu2 %231  ;;  %283 = vadd.xlane.f32.xlu0 %v282_v35  ;;  %v279_v37 = vsel %vm214_vm0, %v265_v32, 0.0 }
 0x13e   :  { %v251_v38 = vmul.f32 %v701_v60, %v232_v36  ;;  %v238_v41 = vpop.xlane.xlu1 %237  ;;  %v273_v51 = vsel %vm214_vm0, %v263_v46, 0.0  ;;  %v785_v36 = vld [vmem:[%s860_s3 + $0x2] ss:$0 sm:$0xff] }
 0x13f   :  { %280 = vadd.xlane.f32.xlu2 %v279_v37  ;;  %v235_v42 = vpop.xlane.xlu0 %234  ;;  %v253_v44 = vmul.f32 %v701_v60, %v238_v41 }
 0x140   :  { %v733_v43 = vsub.f32 %v209_v2, %v251_v38  ;;  %v252_v45 = vmul.f32 %v701_v60, %v235_v42 }
 0x141   :  { %v743_v49 = vsub.f32 %v211_v3, %v253_v44 }
 0x142   :  { %v739_v47 = vsub.f32 %v210_v34, %v252_v45  ;;  %v267_v48 = vmul.f32 %v733_v43, %v733_v43 }
 0x143   :  { %v269_v53 = vmul.f32 %v743_v49, %v743_v49 }
 0x144   :  { %v285_v50 = vsel %vm214_vm0, %v267_v48, 0.0  ;;  %v268_v52 = vmul.f32 %v739_v47, %v739_v47 }
 0x145   :  { %286 = vadd.xlane.f32.xlu1 %v285_v50  ;;  %274 = vadd.xlane.f32.xlu0 %v273_v51  ;;  %v291_v54 = vsel %vm214_vm0, %v269_v53, 0.0 }
 0x146   :  { %v288_v33 = vsel %vm214_vm0, %v268_v52, 0.0 }
 0x147   :  { %289 = vadd.xlane.f32.xlu2 %v288_v33 }
 0x14d   :  { %292 = vadd.xlane.f32.xlu0 %v291_v54 }
 0x1a9   :  { %v278_v55 = vpop.xlane.xlu1 %277 }
 0x1aa   :  { %v296_v56 = vmul.f32 %v278_v55, %v701_v60  ;;  %v272_v40 = vpop.xlane.xlu2 %271 }
 0x1ab   :  { %v294_v57 = vmul.f32 %v272_v40, %v701_v60 }
 0x1ac   :  { %v304_v58 = vadd.f32 1e-05, %v296_v56 }
 0x1ad   :  { %v302_v39 = vadd.f32 1e-05, %v294_v57 }
 0x1ae   :  { %514 = vrsqrt.f32 %v304_v58  ;;  %vm336_vm4 = vweird.f32 %v304_v58 }
 0x1af   :  { %516 = vrsqrt.f32 %v302_v39  ;;  %vm316_vm5 = vweird.f32 %v302_v39 }
 0x1b0   :  { %v284_v61 = vpop.xlane.xlu0 %283 }
 0x1b1   :  { %v298_v62 = vmul.f32 %v284_v61, %v701_v60 }
 0x1b2   :  { %v281_v63 = vpop.xlane.xlu2 %280 }
 0x1b3   :  { %v756_v0 = vadd.f32 1e-05, %v298_v62  ;;  %v297_v1 = vmul.f32 %v281_v63, %v701_v60 }
 0x1b4   :  { %v515_v2 = vpop.eup %514 }
 0x1b5   :  { %v517_v34 = vpop.eup %516  ;;  %v331_v3 = vmul.f32 %v515_v2, %v304_v58  ;;  %518 = vrsqrt.f32 %v756_v0  ;;  %v760_v5 = vadd.f32 1e-05, %v297_v1  ;;  %vm337_vm2 = vweird.f32 %v515_v2 }
 0x1b6   :  { %v311_v4 = vmul.f32 %v517_v34, %v302_v39  ;;  %vm317_vm3 = vweird.f32 %v517_v34  ;;  %vm338_vm6 = vmor %vm336_vm4, %vm337_vm2  ;;  %vm356_vm9 = vweird.f32 %v756_v0 }
 0x1b7   :  { %v332_v6 = vmul.f32 %v515_v2, %v331_v3  ;;  %520 = vrsqrt.f32 %v760_v5  ;;  %vm318_vm7 = vmor %vm316_vm5, %vm317_vm3  ;;  %vm346_vm12 = vweird.f32 %v760_v5 }
 0x1b8   :  { %v312_v7 = vmul.f32 %v517_v34, %v311_v4  ;;  %v287_v59 = vpop.xlane.xlu1 %286  ;;  %v275_v8 = vpop.xlane.xlu0 %274 }
 0x1b9   :  { %v333_v9 = vmul.f32 0.5, %v332_v6  ;;  %v299_v10 = vmul.f32 %v287_v59, %v701_v60  ;;  %v295_v11 = vmul.f32 %v275_v8, %v701_v60 }
 0x1ba   :  { %v313_v12 = vmul.f32 0.5, %v312_v7  ;;  %v290_v13 = vpop.xlane.xlu2 %289 }
 0x1bb   :  { %v519_v14 = vpop.eup %518  ;;  %v334_v15 = vsub.f32 1.5, %v333_v9  ;;  %v765_v18 = vadd.f32 1e-05, %v299_v10  ;;  %v767_v19 = vadd.f32 1e-05, %v295_v11  ;;  %v300_v20 = vmul.f32 %v290_v13, %v701_v60 }
 0x1bc   :  { %v314_v21 = vsub.f32 1.5, %v313_v12  ;;  %v351_v22 = vmul.f32 %v519_v14, %v756_v0  ;;  %vm357_vm8 = vweird.f32 %v519_v14 }
 0x1bd   :  { %v335_v25 = vmul.f32 %v515_v2, %v334_v15  ;;  %522 = vrsqrt.f32 %v765_v18  ;;  %v521_v27 = vpop.eup %520  ;;  %v779_v31 = vadd.f32 1e-05, %v300_v20  ;;  %vm358_vm10 = vmor %vm356_vm9, %vm357_vm8  ;;  %vm366_vm1 = vweird.f32 %v765_v18 }
 0x1be   :  { %v315_v28 = vmul.f32 %v517_v34, %v314_v21  ;;  %v352_v30 = vmul.f32 %v519_v14, %v351_v22  ;;  %524 = vrsqrt.f32 %v767_v19  ;;  %v341_v35 = vmul.f32 %v521_v27, %v760_v5 }
 0x1bf   :  { %v339_v32 = vsel %vm338_vm6, %v515_v2, %v335_v25  ;;  %526 = vrsqrt.f32 %v779_v31  ;;  %vm347_vm11 = vweird.f32 %v521_v27  ;;  %vm326_vm2 = vweird.f32 %v767_v19 }
 0x1c0   :  { %v392_v37 = vmul.f32 %v339_v32, %v706_v16  ;;  %v319_v38 = vsel %vm318_vm7, %v517_v34, %v315_v28  ;;  %v353_v41 = vmul.f32 0.5, %v352_v30  ;;  %v293_v42 = vpop.xlane.xlu0 %292  ;;  %v342_v45 = vmul.f32 %v521_v27, %v341_v35  ;;  %vm348_vm13 = vmor %vm346_vm12, %vm347_vm11 }
 0x1c1   :  { %v390_v44 = vmul.f32 %v319_v38, %v709_v17  ;;  %v301_v46 = vmul.f32 %v293_v42, %v701_v60  ;;  %vm376_vm6 = vweird.f32 %v779_v31 }
 0x1c2   :  { %v401_v48 = vmul.f32 %v775_v26, %v392_v37  ;;  %v354_v50 = vsub.f32 1.5, %v353_v41  ;;  %v343_v33 = vmul.f32 0.5, %v342_v45 }
 0x1c3   :  { %v523_v51 = vpop.eup %522  ;;  %v399_v52 = vmul.f32 %v775_v26, %v390_v44  ;;  %v793_v53 = vadd.f32 1e-05, %v301_v46 }
 0x1c4   :  { %v525_v16 = vpop.eup %524  ;;  %v410_v54 = vadd.f32 %v785_v36, %v401_v48  ;;  %v355_v55 = vmul.f32 %v519_v14, %v354_v50  ;;  %v361_v17 = vmul.f32 %v523_v51, %v765_v18  ;;  %v344_v56 = vsub.f32 1.5, %v343_v33 }
 0x1c5   :  { %v408_v60 = vadd.f32 %v785_v36, %v399_v52  ;;  %v321_v40 = vmul.f32 %v525_v16, %v767_v19  ;;  %v527_v57 = vpop.eup %526  ;;  %528 = vrsqrt.f32 %v793_v53  ;;  %vm367_vm14 = vweird.f32 %v523_v51 }
 0x1c6   :  { %418 = vst.msk [vmem:[%s863_s4 + $0x10] sm:$0xff] %vm214_vm0, %v410_v54  ;;  %v359_v58 = vsel %vm358_vm10, %v519_v14, %v355_v55  ;;  %v362_v39 = vmul.f32 %v523_v51, %v361_v17  ;;  %v345_v62 = vmul.f32 %v521_v27, %v344_v56  ;;  %v371_v0 = vmul.f32 %v527_v57, %v779_v31  ;;  %vm368_vm3 = vmor %vm366_vm1, %vm367_vm14 }
 0x1c7   :  { %416 = vst.msk [vmem:[%s863_s4] sm:$0xff] %vm214_vm0, %v408_v60  ;;  %v394_v61 = vmul.f32 %v359_v58, %v719_v29  ;;  %v322_v63 = vmul.f32 %v525_v16, %v321_v40  ;;  %vm327_vm15 = vweird.f32 %v525_v16  ;;  %vm377_vm4 = vweird.f32 %v527_v57 }
 0x1c8   :  { %v363_v1 = vmul.f32 0.5, %v362_v39  ;;  %v349_v34 = vsel %vm348_vm13, %v521_v27, %v345_v62  ;;  %v372_v4 = vmul.f32 %v527_v57, %v371_v0  ;;  %vm328_vm5 = vmor %vm326_vm2, %vm327_vm15  ;;  %vm386_vm9 = vweird.f32 %v793_v53 }
 0x1c9   :  { %v403_v2 = vmul.f32 %v775_v26, %v394_v61  ;;  %v323_v3 = vmul.f32 0.5, %v322_v63  ;;  %v393_v5 = vmul.f32 %v349_v34, %v722_v24  ;;  %vm378_vm7 = vmor %vm376_vm6, %vm377_vm4 }
 0x1ca   :  { %v364_v6 = vsub.f32 1.5, %v363_v1  ;;  %v373_v29 = vmul.f32 0.5, %v372_v4 }
 0x1cb   :  { %v412_v7 = vadd.f32 %v785_v36, %v403_v2  ;;  %v324_v59 = vsub.f32 1.5, %v323_v3  ;;  %v529_v8 = vpop.eup %528  ;;  %v402_v9 = vmul.f32 %v775_v26, %v393_v5 }
 0x1cc   :  { %v365_v10 = vmul.f32 %v523_v51, %v364_v6  ;;  %v374_v11 = vsub.f32 1.5, %v373_v29  ;;  %v381_v12 = vmul.f32 %v529_v8, %v793_v53  ;;  %vm387_vm8 = vweird.f32 %v529_v8 }
 0x1cd   :  { %420 = vst.msk [vmem:[%s863_s4 + $0x20] sm:$0xff] %vm214_vm0, %v412_v7  ;;  %v325_v24 = vmul.f32 %v525_v16, %v324_v59  ;;  %v411_v13 = vadd.f32 %v785_v36, %v402_v9  ;;  %vm388_vm10 = vmor %vm386_vm9, %vm387_vm8 }
 0x1ce   :  { %v369_v14 = vsel %vm368_vm3, %v523_v51, %v365_v10  ;;  %v375_v19 = vmul.f32 %v527_v57, %v374_v11  ;;  %v382_v20 = vmul.f32 %v529_v8, %v381_v12 }
 0x1cf   :  { %v395_v15 = vmul.f32 %v369_v14, %v733_v43  ;;  %v329_v18 = vsel %vm328_vm5, %v525_v16, %v325_v24  ;;  %419 = vst.msk [vmem:[%s863_s4 + $0x18] sm:$0xff] %vm214_vm0, %v411_v13 }
 0x1d0   :  { %v391_v21 = vmul.f32 %v329_v18, %v728_v23  ;;  %v379_v25 = vsel %vm378_vm7, %v527_v57, %v375_v19  ;;  %v383_v27 = vmul.f32 0.5, %v382_v20 }
 0x1d1   :  { %v404_v22 = vmul.f32 %v775_v26, %v395_v15  ;;  %v396_v30 = vmul.f32 %v379_v25, %v739_v47 }
 0x1d2   :  { %v400_v28 = vmul.f32 %v775_v26, %v391_v21  ;;  %v384_v31 = vsub.f32 1.5, %v383_v27 }
 0x1d3   :  { %v413_v43 = vadd.f32 %v785_v36, %v404_v22  ;;  %v405_v35 = vmul.f32 %v775_v26, %v396_v30 }
 0x1d4   :  { %v409_v32 = vadd.f32 %v785_v36, %v400_v28  ;;  %v385_v23 = vmul.f32 %v529_v8, %v384_v31 }
 0x1d5   :  { %421 = vst.msk [vmem:[%s863_s4 + $0x28] sm:$0xff] %vm214_vm0, %v413_v43  ;;  %v414_v47 = vadd.f32 %v785_v36, %v405_v35 }
 0x1d6   :  { %417 = vst.msk [vmem:[%s863_s4 + $0x8] sm:$0xff] %vm214_vm0, %v409_v32  ;;  %v389_v37 = vsel %vm388_vm10, %v529_v8, %v385_v23 }
 0x1d7   :  { %422 = vst.msk [vmem:[%s863_s4 + $0x30] sm:$0xff] %vm214_vm0, %v414_v47  ;;  %v397_v38 = vmul.f32 %v389_v37, %v743_v49 }
 0x1d9   :  { %v406_v41 = vmul.f32 %v775_v26, %v397_v38 }
 0x1db   :  { %v415_v42 = vadd.f32 %v785_v36, %v406_v41 }
 0x1dd   :  { %423 = vst.msk [vmem:[%s863_s4 + $0x38] sm:$0xff] %vm214_vm0, %v415_v42 }

// kernel: transformers_encoder_forward.11
= control target key start
LH: loop header
LB: loop body
LE: loop exit
PB: predicated region body
PF: predicated region fallthrough
CT: control target
= control target key end

     0   :  { %vm31_vm0 = vcmask 1041408   ;;  %v159_v25 = vmov 2048.0   ;;  %s202_s0 = inlined_call_operand.vmem [shape: f32[2,1024], index: 0, kind: input, shape index: {}]   ;;  %s203_s1 = inlined_call_operand.vmem [shape: f32[2,1024], index: 1, kind: output, shape index: {}]  }
   0x1   :  { %v8_v0 = vld [vmem:[%s202_s0] sm:$0xff]  ;;  %v9_v1 = vld [vmem:[%s202_s0 + $0x8] sm:$0xff]  ;;  %155 = vrcp.f32 %v159_v25 }
   0x2   :  { %12 = vst [vmem:[#allocation1] ss:$4 sm:$0xff] %v8_v0 }
   0x3   :  { %14 = vst [vmem:[#allocation1 + $0x20] ss:$4 sm:$0xff] %v9_v1 }
   0x7   :  { %v156_v26 = vpop.eup %155 }
   0x8   :  { %v57_v27 = vmul.f32 2048.0, %v156_v26  ;;  %vm61_vm1 = vweird.f32 %v156_v26 }
   0x9   :  { %v15_v2 = vld.sshfl [vmem:[#allocation1] sm:$0xff pattern:$0x73625140]  ;;  %v16_v3 = vld.sshfl [vmem:[#allocation1 + $0x8] sm:$0xff pattern:$0x73625140] }
   0xa   :  { %v17_v4 = vld.sshfl [vmem:[#allocation1 + $0x10] sm:$0xff pattern:$0x73625140]  ;;  %v18_v5 = vld.sshfl [vmem:[#allocation1 + $0x18] sm:$0xff pattern:$0x73625140] }
   0xb   :  { %v32_v6 = vsel %vm31_vm0, %v15_v2, 0.0  ;;  %v33_v7 = vsel %vm31_vm0, %v16_v3, 0.0  ;;  %v35_v8 = vsel %vm31_vm0, %v17_v4, 0.0  ;;  %v19_v9 = vld.sshfl [vmem:[#allocation1 + $0x20] sm:$0xff pattern:$0x73625140] }
   0xc   :  { %v34_v10 = vadd.f32 %v33_v7, %v32_v6  ;;  %v37_v11 = vsel %vm31_vm0, %v18_v5, 0.0  ;;  %v20_v12 = vld.sshfl [vmem:[#allocation1 + $0x28] sm:$0xff pattern:$0x73625140]  ;;  %v39_v14 = vsel %vm31_vm0, %v19_v9, 0.0  ;;  %v58_v28 = vsub.f32 1.0, %v57_v27 }
   0xd   :  { %v21_v15 = vld.sshfl [vmem:[#allocation1 + $0x30] sm:$0xff pattern:$0x73625140]  ;;  %v41_v17 = vsel %vm31_vm0, %v20_v12, 0.0 }
   0xe   :  { %v36_v13 = vadd.f32 %v35_v8, %v34_v10  ;;  %v22_v18 = vld.sshfl [vmem:[#allocation1 + $0x38] sm:$0xff pattern:$0x73625140]  ;;  %v43_v20 = vsel %vm31_vm0, %v21_v15, 0.0  ;;  %v59_v32 = vmul.f32 %v156_v26, %v58_v28 }
   0xf   :  { %v45_v22 = vsel %vm31_vm0, %v22_v18, 0.0 }
  0x10   :  { %v38_v16 = vadd.f32 %v37_v11, %v36_v13  ;;  %v60_v35 = vadd.f32 %v156_v26, %v59_v32 }
  0x12   :  { %v40_v19 = vadd.f32 %v39_v14, %v38_v16  ;;  %v62_v38 = vsel %vm61_vm1, %v156_v26, %v60_v35 }
  0x14   :  { %v42_v21 = vadd.f32 %v41_v17, %v40_v19 }
  0x16   :  { %v44_v23 = vadd.f32 %v43_v20, %v42_v21 }
  0x18   :  { %v46_v24 = vadd.f32 %v45_v22, %v44_v23 }
  0x1a   :  { %47 = vadd.xlane.f32.xlu0 %v46_v24 }
  0x8d   :  { %v48_v29 = vpop.xlane.xlu0 %47 }
  0x8e   :  { %v49_v30 = vrot.slane %v48_v29, 4 }
  0x90   :  { %v50_v31 = vadd.f32 %v49_v30, %v48_v29 }
  0x92   :  { %v51_v33 = vrot.slane %v50_v31, 2 }
  0x94   :  { %v52_v34 = vadd.f32 %v51_v33, %v50_v31 }
  0x96   :  { %v53_v36 = vrot.slane %v52_v34, 1 }
  0x98   :  { %v54_v37 = vadd.f32 %v53_v36, %v52_v34 }
  0x9a   :  { %146 = vpush %v54_v37 }
  0x9b   :  { %148 = vpush %v62_v38 }
  0xcb   :  { %s147_s0 = spop %146 }
  0xcc   :  { %s184_s10 = spop %148 }
  0xcd   :  { %s64_s11 = smul.f32 %s184_s10, %s147_s0 }
  0xcf   :  { %v65_v39 = vstv %s64_s11 }
  0xd0   :  { %v66_v40 = vsub.f32 %v8_v0, %v65_v39  ;;  %v67_v41 = vsub.f32 %v9_v1, %v65_v39 }
  0xd2   :  { %v68_v42 = vmul.f32 %v66_v40, %v66_v40  ;;  %v69_v43 = vmul.f32 %v67_v41, %v67_v41 }
  0xd4   :  { %72 = vst [vmem:[#allocation1] ss:$4 sm:$0xff] %v68_v42 }
  0xd5   :  { %74 = vst [vmem:[#allocation1 + $0x20] ss:$4 sm:$0xff] %v69_v43 }
  0xdb   :  { %v75_v44 = vld.sshfl [vmem:[#allocation1] sm:$0xff pattern:$0x73625140]  ;;  %v76_v45 = vld.sshfl [vmem:[#allocation1 + $0x8] sm:$0xff pattern:$0x73625140] }
  0xdc   :  { %v77_v46 = vld.sshfl [vmem:[#allocation1 + $0x10] sm:$0xff pattern:$0x73625140]  ;;  %v91_v47 = vsel %vm31_vm0, %v75_v44, 0.0  ;;  %v92_v48 = vsel %vm31_vm0, %v76_v45, 0.0 }
  0xdd   :  { %v78_v49 = vld.sshfl [vmem:[#allocation1 + $0x18] sm:$0xff pattern:$0x73625140]  ;;  %v93_v50 = vadd.f32 %v92_v48, %v91_v47  ;;  %v94_v51 = vsel %vm31_vm0, %v77_v46, 0.0 }
  0xde   :  { %v79_v52 = vld.sshfl [vmem:[#allocation1 + $0x20] sm:$0xff pattern:$0x73625140]  ;;  %v96_v54 = vsel %vm31_vm0, %v78_v49, 0.0 }
  0xdf   :  { %v95_v53 = vadd.f32 %v94_v51, %v93_v50  ;;  %v80_v55 = vld.sshfl [vmem:[#allocation1 + $0x28] sm:$0xff pattern:$0x73625140]  ;;  %v98_v57 = vsel %vm31_vm0, %v79_v52, 0.0 }
  0xe0   :  { %v81_v58 = vld.sshfl [vmem:[#allocation1 + $0x30] sm:$0xff pattern:$0x73625140]  ;;  %v100_v60 = vsel %vm31_vm0, %v80_v55, 0.0 }
  0xe1   :  { %v97_v56 = vadd.f32 %v96_v54, %v95_v53  ;;  %v82_v61 = vld.sshfl [vmem:[#allocation1 + $0x38] sm:$0xff pattern:$0x73625140]  ;;  %v102_v63 = vsel %vm31_vm0, %v81_v58, 0.0 }
  0xe2   :  { %v104_v1 = vsel %vm31_vm0, %v82_v61, 0.0 }
  0xe3   :  { %v99_v59 = vadd.f32 %v98_v57, %v97_v56 }
  0xe5   :  { %v101_v62 = vadd.f32 %v100_v60, %v99_v59 }
  0xe7   :  { %v103_v0 = vadd.f32 %v102_v63, %v101_v62 }
  0xe9   :  { %v105_v2 = vadd.f32 %v104_v1, %v103_v0 }
  0xeb   :  { %106 = vadd.xlane.f32.xlu0 %v105_v2 }
 0x15e   :  { %v107_v3 = vpop.xlane.xlu0 %106 }
 0x15f   :  { %v108_v4 = vrot.slane %v107_v3, 4 }
 0x161   :  { %v109_v5 = vadd.f32 %v108_v4, %v107_v3 }
 0x163   :  { %v110_v6 = vrot.slane %v109_v5, 2 }
 0x165   :  { %v111_v7 = vadd.f32 %v110_v6, %v109_v5 }
 0x167   :  { %v112_v8 = vrot.slane %v111_v7, 1 }
 0x169   :  { %v113_v9 = vadd.f32 %v112_v8, %v111_v7 }
 0x16b   :  { %150 = vpush %v113_v9 }
 0x19c   :  { %s151_s12 = spop %150 }
 0x19d   :  { %s123_s13 = smul.f32 %s151_s12, %s184_s10 }
 0x19f   :  { %s124_s14 = sadd.f32 1e-05, %s123_s13 }
 0x1a1   :  { %v125_v10 = vstv %s124_s14 }
 0x1a2   :  { %157 = vrsqrt.f32 %v125_v10  ;;  %vm132_vm3 = vweird.f32 %v125_v10 }
 0x1a8   :  { %v158_v11 = vpop.eup %157 }
 0x1a9   :  { %v127_v12 = vmul.f32 %v158_v11, %v125_v10  ;;  %vm133_vm2 = vweird.f32 %v158_v11 }
 0x1aa   :  { %vm134_vm4 = vmor %vm132_vm3, %vm133_vm2 }
 0x1ab   :  { %v128_v13 = vmul.f32 %v158_v11, %v127_v12 }
 0x1ad   :  { %v129_v14 = vmul.f32 0.5, %v128_v13 }
 0x1af   :  { %v130_v15 = vsub.f32 1.5, %v129_v14 }
 0x1b1   :  { %v131_v16 = vmul.f32 %v158_v11, %v130_v15 }
 0x1b3   :  { %v135_v17 = vsel %vm134_vm4, %v158_v11, %v131_v16 }
 0x1b4   :  { %152 = vpush %v135_v17 }
 0x1e5   :  { %s153_s15 = spop %152 }
 0x1e6   :  { %v137_v18 = vstv %s153_s15 }
 0x1e7   :  { %v138_v19 = vmul.f32 %v137_v18, %v66_v40  ;;  %v139_v20 = vmul.f32 %v137_v18, %v67_v41 }
 0x1e9   :  { %140 = vst [vmem:[%s203_s1] sm:$0xff] %v138_v19 }
 0x1ea   :  { %141 = vst [vmem:[%s203_s1 + $0x8] sm:$0xff] %v139_v20 }

// kernel: transformers_encoder_forward.10
= control target key start
LH: loop header
LB: loop body
LE: loop exit
PB: predicated region body
PF: predicated region fallthrough
CT: control target
= control target key end

     0   :  { %s1503_s21 = smov 0   ;;  %s1505_s22 = smov 0   ;;  %s1739_s0 = inlined_call_operand.vmem [shape: f32[2,32,32], index: 0, kind: input, shape index: {}]   ;;  %s1740_s1 = inlined_call_operand.vmem [shape: bf16[2,32,96], index: 1, kind: input, shape index: {}]   ;;  %s1741_s2 = inlined_call_operand.vmem [shape: bf16[2,32,32], index: 2, kind: input, shape index: {}]   ;;  %s1742_s3 = inlined_call_operand.vmem [shape: bf16[2,32,64], index: 3, kind: input, shape index: {}]   ;;  %s1743_s4 = inlined_call_operand.vmem [shape: bf16[2,64,32], index: 4, kind: input, shape index: {}]   ;;  %s1744_s5 = inlined_call_operand.vmem [shape: f32[2,8,96], index: 5, kind: input, shape index: {}]   ;;  %s1745_s6 = inlined_call_operand.vmem [shape: f32[2,32,32], index: 6, kind: output, shape index: {}]  }
   0x1   :  { %1746 = sst [smem:[#allocation3_spill]] %s1739_s0  ;;  %s1507_s23 = smov 0  }
   0x2   :  { %1747 = sst [smem:[#allocation4_spill]] %s1740_s1  ;;  %s1509_s24 = smov 0  }
   0x3   :  { %s1511_s25 = smov 0  }
   0x4 LB: > { %s25_s26 = sadd.s32 1, %s1451_s23  ;;  %s28_s27 = sadd.s32 1, %s1455_s24  ;;  %s1459_s25 = sphi %s1511_s25, %s16_s25   ;;  %s1455_s24 = sphi %s1509_s24, %s1753_s24   ;;  %s1451_s23 = sphi %s1507_s23, %s1752_s23   ;;  %s1447_s22 = sphi %s1505_s22, %s1751_s22   ;;  %s1443_s21 = sphi %s1503_s21, %s1750_s21  }
   0x5   : > { %p26_p0 = scmp.ge.s32.totalorder %s25_s26, 2  ;;  %p1216_p1 = scmp.ge.s32.totalorder %s1459_s25, 1 }
   0x6   : > { %p273_p2 = scmp.lt.s32.totalorder %s1459_s25, 5 }
   0x7   : > { %s1755_s26 = smov (%p26_p0, %s25_s26), 0  ;;  %s1757_s27 = smov (!%p26_p0, %s28_s27), %s1455_s24 }
   0x8   : > { %p274_p3 = pnand %p1216_p1, %p273_p2  ;;  %p30_p4 = scmp.ge.s32.totalorder %s1757_s27, 2 }
   0x9   : > { %p327_p5 = scmp.lt.s32.totalorder (!%p274_p3), %s1447_s22, 1  ;;  %p332_p6 = scmp.lt.s32.totalorder (!%p274_p3), %s1443_s21, 1 }
   0xa   : > { %s1759_s27 = smov (%p30_p4, %s1757_s27), 0  ;;  %277 = sbr.rel (%p274_p3) target bundleno = 1866 (0x74a), region = 44 }
   0xb   : > { %s1748_s0 = sld [smem:[#allocation3_spill]] (!%p274_p3)  ;;  %p1230_p7 = scmp.ne.s32.totalorder (!%p274_p3), %s1443_s21, 0 }
   0xc   : > { %s1749_s1 = sld [smem:[#allocation4_spill]] (!%p274_p3) }
   0xf   : > { %s1761_s22 = smov (!%p327_p5, %s1447_s22), 1 }
  0x10   : > { %s333_s28 = scalar_select %p332_p6, %s1443_s21, 1 }
  0x11   : > { %s1290_s29 = sshll.u32 %s1761_s22, 5 }
  0x12   : > { %s331_s8 = scalar_lea.vmem %s1748_s0, %s1290_s29  ;;  %s1291_s9 = sshll.u32 %s333_s28, 4 }
  0x13   : > { %s336_s12 = scalar_lea.vmem %s1749_s1, %s1291_s9  ;;  %s1546_s15 = scalar_lea.vmem %s1741_s2, %s1291_s9 }
  0x14   : > { %s1551_s18 = scalar_lea.vmem %s1742_s3, %s1291_s9  ;;  %s1294_s19 = sshll.u32 %s333_s28, 5 }
  0x15   : > { %s1556_s30 = scalar_lea.vmem %s1743_s4, %s1294_s19  ;;  %s1227_s7 = sshll.u32 %s333_s28, 3 }
  0x16   : > { %s355_s11 = scalar_lea.vmem %s1744_s5, %s1227_s7  ;;  %s1564_s14 = scalar_lea.vmem %s1745_s6, %s1290_s29 }
  0x17   : > { %365 = sbr.rel (%p1230_p7) target bundleno = 33 (0x21), region = 48 }
  0x1c   : > { %v366_v0 = vld [vmem:[%s331_s8] sm:$0xff]  ;;  %vm370_vm0 = vcmask 261120   ;;  %v367_v1 = vld [vmem:[%s331_s8 + $0x8] sm:$0xff]  ;;  %v368_v2 = vld [vmem:[%s331_s8 + $0x10] sm:$0xff] }
  0x1d   : > { %371 = vst.msk [vmem:[#allocation2] sm:$0xff] %vm370_vm0, %v366_v0  ;;  %v369_v3 = vld [vmem:[%s331_s8 + $0x18] sm:$0xff] }
  0x1e   : > { %372 = vst.msk [vmem:[#allocation2 + $0x8] sm:$0xff] %vm370_vm0, %v367_v1 }
  0x1f   : > { %373 = vst.msk [vmem:[#allocation2 + $0x10] sm:$0xff] %vm370_vm0, %v368_v2 }
  0x20   : > { %374 = vst.msk [vmem:[#allocation2 + $0x18] sm:$0xff] %vm370_vm0, %v369_v3 }
  0x21 PF: > { %v1297_v4 = vld [vmem:[%s336_s12 + $0x8] sm:$0xff]  ;;  %v1296_v5 = vld [vmem:[%s336_s12] sm:$0xff]  ;;  %vm399_vm1 = vcmask 261120   ;;  %s1461_s0 = smov 112   ;;  %s1462_s1 = smov 96   ;;  %vm433_vm2 = vcmask 130048  }
  0x22   : > { %412 = vmatpush.bf16.msra.mxu0 %v1297_v4  ;;  %v1581_v13 = vld [vmem:[%s355_s11] sm:$0xff]  ;;  %s1463_s28 = smov 80   ;;  %s1464_s29 = smov 48   ;;  %vm946_vm0 = vcmask 523264  }
  0x23   : > { %v386_v14 = vperm.slane %v1581_v13, 0  ;;  %s1465_s8 = smov 64   ;;  %s1466_s9 = smov 16  }
  0x24   : > { %v1567_v6 = vld [vmem:[#allocation2] sm:$0xff]  ;;  %p1287_p8 = scmp.ne.s32.totalorder %s1443_s21, 1 }
  0x25   : > { %v1569_v7 = vld [vmem:[#allocation2 + $0x8] sm:$0xff] }
  0x26   : > { %v384_v8 = vpack.c.bf16 %v1569_v7, %v1567_v6  ;;  %413 = vmatpush.bf16.msra.mxu0 %v1296_v5  ;;  %v1574_v9 = vld [vmem:[#allocation2 + $0x10] sm:$0xff] }
  0x27   : > { %v1576_v10 = vld [vmem:[#allocation2 + $0x18] sm:$0xff] }
  0x28   : > { %v385_v11 = vpack.c.bf16 %v1576_v10, %v1574_v9 }
  0x29   : > { %1239 = vmatmul.msk.bf16.vlgmr.msra.gmra.mxu0 %vm399_vm1, %v384_v8 }
  0x39   : > { %1240 = vmatmul.msk.bf16.gmra.mxu0 %vm399_vm1, %v385_v11 }
  0xa6   : > { %v415_v12 = vpop.f32.mrf.mxu0 }
  0xa7   : > { %v416_v16 = vadd.f32 %v415_v12, %v386_v14 }
  0xae   : > { %v417_v15 = vpop.f32.mrf.mxu0 }
  0xaf   : > { %v418_v17 = vadd.f32 %v417_v15, %v386_v14 }
  0xb1   : > { %v425_v18 = vpack.c.bf16 %v418_v17, %v416_v16 }
  0xb3   : > { %542 = vrot.lane.b32.xlu1 %v425_v18, %s1461_s0 }
  0xb6   : > { %v420_v19 = vpop.f32.mrf.mxu0 }
  0xb7   : > { %v421_v21 = vadd.f32 %v420_v19, %v386_v14 }
  0xbe   : > { %v422_v20 = vpop.f32.mrf.mxu0 }
  0xbf   : > { %v423_v22 = vadd.f32 %v422_v20, %v386_v14 }
  0xc1   : > { %v426_v23 = vpack.c.bf16 %v423_v22, %v421_v21 }
  0xc3   : > { %431 = vrot.lane.b32.xlu2 %v426_v23, %s1462_s1  ;;  %548 = vrot.lane.b32.xlu0 %v426_v23, %s1463_s28 }
  0xc4   : > { %544 = vrot.lane.b32.xlu1 %v426_v23, %s1461_s0 }
  0xcb   : > { %429 = vrot.lane.b32.xlu2 %v425_v18, %s1462_s1  ;;  %546 = vrot.lane.b32.xlu0 %v425_v18, %s1463_s28 }
  0xd3   : > { %609 = vrot.lane.b32.xlu2 %v426_v23, %s1464_s29 }
  0xdb   : > { %607 = vrot.lane.b32.xlu2 %v425_v18, %s1464_s29 }
 0x11d   : > { %v432_v24 = vpop.permute.xlu2 %431 }
 0x11e   : > { %v444_v25 = vsel %vm433_vm2, %v432_v24, 0 }
 0x11f   : > { %452 = vmatpush.bf16.xpose.msra.mxu1 %v444_v25 }
 0x125   : > { %v430_v26 = vpop.permute.xlu2 %429  ;;  %v543_v34 = vpop.permute.xlu1 %542 }
 0x126   : > { %v441_v27 = vsel %vm433_vm2, %v430_v26, 0 }
 0x127   : > { %453 = vmatpush.bf16.xpose.msra.mxu1 %v441_v27 }
 0x12d   : > { %v610_v28 = vpop.permute.xlu2 %609 }
 0x12e   : > { %1241 = vmatmul.msk.bf16.vlgmr.msra.gmra.mxu1 %vm433_vm2, %v425_v18  ;;  %625 = vmatpush.bf16.msrb.mxu0 %v610_v28 }
 0x135   : > { %v549_v29 = vpop.permute.xlu0 %548  ;;  %v608_v30 = vpop.permute.xlu2 %607 }
 0x136   : > { %626 = vmatpush.bf16.msrb.mxu0 %v608_v30  ;;  %v560_v31 = vsel %vm433_vm2, %v549_v29, 0  ;;  %v545_v35 = vpop.permute.xlu1 %544 }
 0x137   : > { %568 = vmatpush.bf16.xpose.msra.mxu3 %v560_v31 }
 0x13d   : > { %v547_v32 = vpop.permute.xlu0 %546 }
 0x13e   : > { %1242 = vmatmul.msk.bf16.gmra.mxu1 %vm433_vm2, %v426_v23  ;;  %v557_v33 = vsel %vm433_vm2, %v547_v32, 0 }
 0x13f   : > { %569 = vmatpush.bf16.xpose.msra.mxu3 %v557_v33 }
 0x146   : > { %1245 = vmatmul.msk.bf16.vlgmr.msra.gmra.mxu3 %vm433_vm2, %v543_v34 }
 0x156   : > { %1246 = vmatmul.msk.bf16.gmra.mxu3 %vm433_vm2, %v545_v35 }
 0x1ab   : > { %v455_v40 = vpop.f32.mrf.mxu1 }
 0x1ac   : > { %v465_v42 = vsel %vm399_vm1, %v455_v40, -inf }
 0x1b3   : > { %v457_v46 = vpop.f32.mrf.mxu1 }
 0x1b4   : > { %v468_v47 = vsel %vm399_vm1, %v457_v46, -inf }
 0x1bb   : > { %v460_v48 = vpop.f32.mrf.mxu1 }
 0x1bc   : > { %v471_v49 = vsel %vm399_vm1, %v460_v48, -inf }
 0x1c3   : > { %v462_v50 = vpop.f32.mrf.mxu1 }
 0x1c4   : > { %v474_v51 = vsel %vm399_vm1, %v462_v50, -inf }
 0x1c9   : > { %v571_v36 = vpop.f32.mrf.mxu3 }
 0x1ca   : > { %v581_v37 = vsel %vm399_vm1, %v571_v36, -inf }
 0x1cb   : > { %582 = vmax.xlane.f32.xlu0 %v581_v37 }
 0x1d1   : > { %v573_v38 = vpop.f32.mrf.mxu3 }
 0x1d2   : > { %v584_v39 = vsel %vm399_vm1, %v573_v38, -inf }
 0x1d3   : > { %585 = vmax.xlane.f32.xlu1 %v584_v39 }
 0x1d9   : > { %v576_v41 = vpop.f32.mrf.mxu3 }
 0x1da   : > { %v587_v43 = vsel %vm399_vm1, %v576_v41, -inf }
 0x1db   : > { %466 = vmax.xlane.f32.xlu1 %v465_v42  ;;  %588 = vmax.xlane.f32.xlu2 %v587_v43 }
 0x1e1   : > { %v578_v44 = vpop.f32.mrf.mxu3 }
 0x1e2   : > { %v590_v45 = vsel %vm399_vm1, %v578_v44, -inf }
 0x1e3   : > { %591 = vmax.xlane.f32.xlu0 %v590_v45 }
 0x1eb   : > { %469 = vmax.xlane.f32.xlu0 %v468_v47 }
 0x1f3   : > { %491 = vrot.lane.b32.xlu2 %v425_v18, %s1465_s8  ;;  %472 = vmax.xlane.f32.xlu0 %v471_v49 }
 0x1f4   : > { %493 = vrot.lane.b32.xlu1 %v426_v23, %s1465_s8 }
 0x1fb   : > { %475 = vmax.xlane.f32.xlu0 %v474_v51 }
 0x23e   : > { %v583_v52 = vpop.xlane.xlu0 %582 }
 0x23f   : > { %v593_v53 = vsub.f32 %v571_v36, %v583_v52 }
 0x241   : > { %v597_v54 = vmul.f32 1.442695, %v593_v53  ;;  %v1299_v53 = vld [vmem:[%s1546_s15 + $0x8] sm:$0xff] }
 0x243   : > { %1363 = vpow2.f32 %v597_v54  ;;  %v1298_v54 = vld [vmem:[%s1546_s15] sm:$0xff] }
 0x246   : > { %v586_v55 = vpop.xlane.xlu1 %585 }
 0x247   : > { %v594_v56 = vsub.f32 %v573_v38, %v586_v55 }
 0x249   : > { %v1364_v57 = vpop.eup %1363  ;;  %v599_v58 = vmul.f32 1.442695, %v594_v56 }
 0x24a   : > { %v638_v59 = vsel %vm399_vm1, %v1364_v57, 0.0 }
 0x24b   : > { %1365 = vpow2.f32 %v599_v58  ;;  %639 = vadd.xlane.f32.xlu0 %v638_v59 }
 0x24e   : > { %v467_v60 = vpop.xlane.xlu1 %466  ;;  %v589_v61 = vpop.xlane.xlu2 %588 }
 0x24f   : > { %v477_v62 = vsub.f32 %v455_v40, %v467_v60  ;;  %v595_v63 = vsub.f32 %v576_v41, %v589_v61 }
 0x251   : > { %v1366_v0 = vpop.eup %1365  ;;  %v481_v1 = vmul.f32 1.442695, %v477_v62  ;;  %v601_v2 = vmul.f32 1.442695, %v595_v63 }
 0x252   : > { %v641_v3 = vsel %vm399_vm1, %v1366_v0, 0.0  ;;  %v605_v4 = vpack.c.bf16 %v1366_v0, %v1364_v57 }
 0x253   : > { %1367 = vpow2.f32 %v481_v1  ;;  %642 = vadd.xlane.f32.xlu1 %v641_v3 }
 0x254   : > { %1369 = vpow2.f32 %v601_v2  ;;  %1247 = vmatmul.msk.bf16.vlgmr.msrb.gmra.mxu0 %vm399_vm1, %v605_v4 }
 0x256   : > { %v592_v5 = vpop.xlane.xlu0 %591  ;;  %v492_v27 = vpop.permute.xlu2 %491 }
 0x257   : > { %v596_v8 = vsub.f32 %v578_v44, %v592_v5 }
 0x259   : > { %v1368_v11 = vpop.eup %1367  ;;  %v603_v12 = vmul.f32 1.442695, %v596_v8 }
 0x25a   : > { %v1370_v14 = vpop.eup %1369  ;;  %v522_v15 = vsel %vm399_vm1, %v1368_v11, 0.0 }
 0x25b   : > { %1371 = vpow2.f32 %v603_v12  ;;  %v644_v16 = vsel %vm399_vm1, %v1370_v14, 0.0  ;;  %523 = vadd.xlane.f32.xlu0 %v522_v15 }
 0x25c   : > { %645 = vadd.xlane.f32.xlu2 %v644_v16 }
 0x25e   : > { %v470_v17 = vpop.xlane.xlu0 %469 }
 0x25f   : > { %v478_v18 = vsub.f32 %v457_v46, %v470_v17 }
 0x261   : > { %v1372_v19 = vpop.eup %1371  ;;  %v483_v20 = vmul.f32 1.442695, %v478_v18 }
 0x262   : > { %v606_v21 = vpack.c.bf16 %v1372_v19, %v1370_v14  ;;  %v647_v34 = vsel %vm399_vm1, %v1372_v19, 0.0 }
 0x263   : > { %1373 = vpow2.f32 %v483_v20 }
 0x264   : > { %1248 = vmatmul.msk.bf16.gmra.mxu0 %vm399_vm1, %v606_v21 }
 0x266   : > { %v494_v22 = vpop.permute.xlu1 %493  ;;  %v473_v23 = vpop.xlane.xlu0 %472 }
 0x267   : > { %v479_v24 = vsub.f32 %v460_v48, %v473_v23  ;;  %509 = vmatpush.bf16.msra.mxu2 %v494_v22 }
 0x269   : > { %v1374_v25 = vpop.eup %1373  ;;  %v485_v26 = vmul.f32 1.442695, %v479_v24 }
 0x26a   : > { %v525_v28 = vsel %vm399_vm1, %v1374_v25, 0.0  ;;  %v489_v29 = vpack.c.bf16 %v1374_v25, %v1368_v11 }
 0x26b   : > { %1375 = vpow2.f32 %v485_v26  ;;  %510 = vmatpush.bf16.msra.mxu2 %v492_v27  ;;  %526 = vadd.xlane.f32.xlu0 %v525_v28  ;;  %v684_v28 = vperm.slane %v1581_v13, 1 }
 0x26e   : > { %1243 = vmatmul.msk.bf16.vlgmr.msra.gmra.mxu2 %vm399_vm1, %v489_v29  ;;  %v476_v30 = vpop.xlane.xlu0 %475 }
 0x26f   : > { %v480_v31 = vsub.f32 %v462_v50, %v476_v30  ;;  %709 = vmatpush.bf16.msrb.mxu2 %v1299_v53 }
 0x271   : > { %v1376_v32 = vpop.eup %1375  ;;  %v487_v33 = vmul.f32 1.442695, %v480_v31 }
 0x272   : > { %v528_v35 = vsel %vm399_vm1, %v1376_v32, 0.0 }
 0x273   : > { %1377 = vpow2.f32 %v487_v33  ;;  %648 = vadd.xlane.f32.xlu0 %v647_v34  ;;  %529 = vadd.xlane.f32.xlu1 %v528_v35 }
 0x274   : > { %710 = vmatpush.bf16.msrb.mxu2 %v1298_v54 }
 0x279   : > { %v1378_v36 = vpop.eup %1377 }
 0x27a   : > { %v531_v37 = vsel %vm399_vm1, %v1378_v36, 0.0  ;;  %v490_v38 = vpack.c.bf16 %v1378_v36, %v1376_v32 }
 0x27b   : > { %532 = vadd.xlane.f32.xlu2 %v531_v37 }
 0x27e   : > { %1244 = vmatmul.msk.bf16.gmra.mxu2 %vm399_vm1, %v490_v38 }
 0x2be   : > { %v640_v39 = vpop.xlane.xlu0 %639 }
 0x2bf   : > { %1379 = vrcp.f32 %v640_v39 }
 0x2c5   : > { %v1380_v43 = vpop.eup %1379 }
 0x2c6   : > { %v643_v40 = vpop.xlane.xlu1 %642 }
 0x2c7   : > { %1381 = vrcp.f32 %v643_v40 }
 0x2cd   : > { %v1382_v44 = vpop.eup %1381 }
 0x2ce   : > { %v524_v42 = vpop.xlane.xlu0 %523 }
 0x2cf   : > { %v646_v50 = vpop.xlane.xlu2 %645 }
 0x2d0   : > { %1383 = vrcp.f32 %v646_v50 }
 0x2d1   : > { %v628_v41 = vpop.f32.mrf.mxu0 }
 0x2d2   : > { %v654_v46 = vmul.f32 %v1380_v43, %v628_v41 }
 0x2d6   : > { %v1384_v55 = vpop.eup %1383 }
 0x2d9   : > { %v630_v45 = vpop.f32.mrf.mxu0 }
 0x2da   : > { %v655_v47 = vmul.f32 %v1382_v44, %v630_v45  ;;  %v1467_v44 = vmov 32.0  }
 0x2dc   : > { %v1353_v48 = vpack.i.bf16 %v655_v47, %v654_v46 }
 0x2de   : > { %1354 = vrot.lane.b32.xlu0 %v1353_v48, %s1466_s9  ;;  %v527_v49 = vpop.xlane.xlu0 %526 }
 0x2e1   : > { %v633_v51 = vpop.f32.mrf.mxu0 }
 0x2e2   : > { %v656_v58 = vmul.f32 %v1384_v55, %v633_v51 }
 0x2e6   : > { %v649_v52 = vpop.xlane.xlu0 %648  ;;  %v530_v15 = vpop.xlane.xlu1 %529 }
 0x2e7   : > { %1385 = vrcp.f32 %v649_v52 }
 0x2e8   : > { %1387 = vrcp.f32 %v524_v42 }
 0x2e9   : > { %v635_v57 = vpop.f32.mrf.mxu0  ;;  %1389 = vrcp.f32 %v527_v49 }
 0x2ea   : > { %1391 = vrcp.f32 %v530_v15 }
 0x2ed   : > { %v1386_v56 = vpop.eup %1385 }
 0x2ee   : > { %v657_v59 = vmul.f32 %v1386_v56, %v635_v57  ;;  %v1388_v63 = vpop.eup %1387  ;;  %v533_v16 = vpop.xlane.xlu2 %532 }
 0x2ef   : > { %v1390_v0 = vpop.eup %1389  ;;  %1393 = vrcp.f32 %v533_v16 }
 0x2f0   : > { %v1358_v60 = vpack.i.bf16 %v657_v59, %v656_v58  ;;  %v1392_v18 = vpop.eup %1391  ;;  %1395 = vrcp.f32 %v1467_v44 }
 0x2f1   : > { %v512_v61 = vpop.f32.mrf.mxu2 }
 0x2f2   : > { %1359 = vrot.lane.b32.xlu1 %v1358_v60, %s1466_s9  ;;  %v538_v2 = vmul.f32 %v1388_v63, %v512_v61 }
 0x2f5   : > { %v1394_v19 = vpop.eup %1393 }
 0x2f9   : > { %v514_v62 = vpop.f32.mrf.mxu2 }
 0x2fa   : > { %v539_v3 = vmul.f32 %v1390_v0, %v514_v62 }
 0x301   : > { %v517_v14 = vpop.f32.mrf.mxu2 }
 0x302   : > { %v540_v21 = vmul.f32 %v1392_v18, %v517_v14 }
 0x309   : > { %v519_v17 = vpop.f32.mrf.mxu2 }
 0x30a   : > { %v541_v22 = vmul.f32 %v1394_v19, %v519_v17 }
 0x350   : > { %v1355_v1 = vpop.permute.xlu0 %1354 }
 0x351   : > { %v1357_v4 = vunpack.i.h.bf16 %v1355_v1  ;;  %v1356_v5 = vunpack.i.l.bf16 %v1355_v1 }
 0x353   : > { %v675_v8 = vsel %vm433_vm2, %v539_v3, %v1357_v4  ;;  %v674_v11 = vsel %vm433_vm2, %v538_v2, %v1356_v5  ;;  %v1301_v4 = vld [vmem:[%s1551_s18 + $0x8] sm:$0xff] }
 0x354   : > { %v682_v12 = vpack.c.bf16 %v675_v8, %v674_v11  ;;  %862 = vmatpush.bf16.msrb.mxu1 %v1301_v4  ;;  %v837_v4 = vperm.slane %v1581_v13, 4 }
 0x356   : > { %1257 = vmatmul.msk.bf16.vlgmr.msrb.gmra.mxu2 %vm399_vm1, %v682_v12  ;;  %v1300_v12 = vld [vmem:[%s1551_s18] sm:$0xff] }
 0x358   : > { %863 = vmatpush.bf16.msrb.mxu1 %v1300_v12 }
 0x364   : > { %v1360_v20 = vpop.permute.xlu1 %1359 }
 0x365   : > { %v1362_v23 = vunpack.i.h.bf16 %v1360_v20  ;;  %v1361_v24 = vunpack.i.l.bf16 %v1360_v20 }
 0x367   : > { %v676_v25 = vsel %vm433_vm2, %v540_v21, %v1361_v24  ;;  %v677_v26 = vsel %vm433_vm2, %v541_v22, %v1362_v23 }
 0x368   : > { %v683_v27 = vpack.c.bf16 %v677_v26, %v676_v25 }
 0x36a   : > { %1258 = vmatmul.msk.bf16.gmra.mxu2 %vm399_vm1, %v683_v27 }
 0x3d9   : > { %v712_v29 = vpop.f32.mrf.mxu2 }
 0x3da   : > { %v713_v30 = vadd.f32 %v712_v29, %v684_v28 }
 0x3dc   : > { %v722_v31 = vadd.f32 %v713_v30, %v1567_v6 }
 0x3de   : > { %v726_v32 = vsel %vm399_vm1, %v722_v31, 0.0 }
 0x3df   : > { %727 = vadd.xlane.f32.xlu0 %v726_v32 }
 0x3e1   : > { %v714_v33 = vpop.f32.mrf.mxu2 }
 0x3e2   : > { %v715_v34 = vadd.f32 %v714_v33, %v684_v28  ;;  %v821_v33 = vperm.slane %v1581_v13, 2 }
 0x3e4   : > { %v723_v35 = vadd.f32 %v715_v34, %v1569_v7  ;;  %v1396_v7 = vpop.eup %1395 }
 0x3e5   : > { %v739_v45 = vmul.f32 32.0, %v1396_v7  ;;  %vm743_vm3 = vweird.f32 %v1396_v7 }
 0x3e6   : > { %v729_v36 = vsel %vm399_vm1, %v723_v35, 0.0 }
 0x3e7   : > { %730 = vadd.xlane.f32.xlu2 %v729_v36  ;;  %v740_v46 = vsub.f32 1.0, %v739_v45 }
 0x3e9   : > { %v741_v47 = vmul.f32 %v1396_v7, %v740_v46 }
 0x3eb   : > { %v742_v48 = vadd.f32 %v1396_v7, %v741_v47 }
 0x3ed   : > { %v717_v37 = vpop.f32.mrf.mxu2  ;;  %v1629_v49 = vsel %vm743_vm3, %v1396_v7, %v742_v48 }
 0x3ee   : > { %v718_v38 = vadd.f32 %v717_v37, %v684_v28 }
 0x3f0   : > { %v724_v39 = vadd.f32 %v718_v38, %v1574_v9 }
 0x3f2   : > { %v732_v40 = vsel %vm399_vm1, %v724_v39, 0.0 }
 0x3f3   : > { %733 = vadd.xlane.f32.xlu2 %v732_v40  ;;  %v826_v40 = vperm.slane %v1581_v13, 3 }
 0x3f5   : > { %v719_v41 = vpop.f32.mrf.mxu2 }
 0x3f6   : > { %v720_v42 = vadd.f32 %v719_v41, %v684_v28 }
 0x3f8   : > { %v725_v6 = vadd.f32 %v720_v42, %v1576_v10 }
 0x3fa   : > { %v735_v43 = vsel %vm399_vm1, %v725_v6, 0.0 }
 0x3fb   : > { %736 = vadd.xlane.f32.xlu2 %v735_v43 }
 0x452   : > { %v728_v9 = vpop.xlane.xlu0 %727 }
 0x453   : > { %v745_v50 = vmul.f32 %v1629_v49, %v728_v9 }
 0x455   : > { %v749_v51 = vsub.f32 %v722_v31, %v745_v50 }
 0x457   : > { %v753_v52 = vmul.f32 %v749_v51, %v749_v51 }
 0x459   : > { %v757_v10 = vsel %vm399_vm1, %v753_v52, 0.0 }
 0x45a   : > { %v731_v53 = vpop.xlane.xlu2 %730  ;;  %758 = vadd.xlane.f32.xlu1 %v757_v10 }
 0x45b   : > { %v746_v54 = vmul.f32 %v1629_v49, %v731_v53 }
 0x45d   : > { %v750_v55 = vsub.f32 %v723_v35, %v746_v54 }
 0x45f   : > { %v754_v56 = vmul.f32 %v750_v55, %v750_v55 }
 0x461   : > { %v760_v57 = vsel %vm399_vm1, %v754_v56, 0.0 }
 0x462   : > { %761 = vadd.xlane.f32.xlu2 %v760_v57 }
 0x466   : > { %v734_v58 = vpop.xlane.xlu2 %733 }
 0x467   : > { %v747_v59 = vmul.f32 %v1629_v49, %v734_v58 }
 0x469   : > { %v1636_v60 = vsub.f32 %v724_v39, %v747_v59 }
 0x46b   : > { %v755_v61 = vmul.f32 %v1636_v60, %v1636_v60 }
 0x46d   : > { %v763_v62 = vsel %vm399_vm1, %v755_v61, 0.0 }
 0x46e   : > { %764 = vadd.xlane.f32.xlu2 %v763_v62  ;;  %v737_v63 = vpop.xlane.xlu2 %736 }
 0x46f   : > { %v748_v0 = vmul.f32 %v1629_v49, %v737_v63 }
 0x471   : > { %v1642_v1 = vsub.f32 %v725_v6, %v748_v0 }
 0x473   : > { %v756_v2 = vmul.f32 %v1642_v1, %v1642_v1 }
 0x475   : > { %v766_v3 = vsel %vm399_vm1, %v756_v2, 0.0  ;;  %v1304_v2 = vld [vmem:[%s1556_s30 + $0x10] sm:$0xff] }
 0x476   : > { %767 = vadd.xlane.f32.xlu0 %v766_v3  ;;  %v1303_v3 = vld [vmem:[%s1556_s30 + $0x8] sm:$0xff] }
 0x4cd   : > { %v759_v5 = vpop.xlane.xlu1 %758 }
 0x4ce   : > { %v769_v8 = vmul.f32 %v759_v5, %v1629_v49  ;;  %v1302_v5 = vld [vmem:[%s1556_s30] sm:$0xff] }
 0x4d0   : > { %v773_v11 = vadd.f32 1e-05, %v769_v8 }
 0x4d2   : > { %1397 = vrsqrt.f32 %v773_v11  ;;  %vm783_vm5 = vweird.f32 %v773_v11 }
 0x4d5   : > { %v762_v14 = vpop.xlane.xlu2 %761 }
 0x4d6   : > { %v770_v15 = vmul.f32 %v762_v14, %v1629_v49 }
 0x4d8   : > { %v1398_v16 = vpop.eup %1397  ;;  %v774_v17 = vadd.f32 1e-05, %v770_v15 }
 0x4d9   : > { %v778_v18 = vmul.f32 %v1398_v16, %v773_v11  ;;  %vm784_vm4 = vweird.f32 %v1398_v16 }
 0x4da   : > { %1399 = vrsqrt.f32 %v774_v17  ;;  %vm785_vm6 = vmor %vm783_vm5, %vm784_vm4  ;;  %vm793_vm8 = vweird.f32 %v774_v17 }
 0x4db   : > { %v779_v19 = vmul.f32 %v1398_v16, %v778_v18 }
 0x4dd   : > { %v780_v20 = vmul.f32 0.5, %v779_v19 }
 0x4df   : > { %v781_v21 = vsub.f32 1.5, %v780_v20 }
 0x4e0   : > { %v1400_v22 = vpop.eup %1399 }
 0x4e1   : > { %v782_v23 = vmul.f32 %v1398_v16, %v781_v21  ;;  %v788_v24 = vmul.f32 %v1400_v22, %v774_v17  ;;  %v765_v25 = vpop.xlane.xlu2 %764  ;;  %vm794_vm7 = vweird.f32 %v1400_v22 }
 0x4e2   : > { %v771_v27 = vmul.f32 %v765_v25, %v1629_v49  ;;  %vm795_vm9 = vmor %vm793_vm8, %vm794_vm7 }
 0x4e3   : > { %v789_v26 = vmul.f32 %v1400_v22, %v788_v24  ;;  %v786_v28 = vsel %vm785_vm6, %v1398_v16, %v782_v23 }
 0x4e4   : > { %v775_v30 = vadd.f32 1e-05, %v771_v27  ;;  %v817_v32 = vmul.f32 %v786_v28, %v749_v51 }
 0x4e5   : > { %v790_v29 = vmul.f32 0.5, %v789_v26 }
 0x4e6   : > { %1401 = vrsqrt.f32 %v775_v30  ;;  %v822_v39 = vmul.f32 %v821_v33, %v817_v32  ;;  %vm803_vm11 = vweird.f32 %v775_v30 }
 0x4e7   : > { %v791_v31 = vsub.f32 1.5, %v790_v29 }
 0x4e8   : > { %v1655_v7 = vadd.f32 %v826_v40, %v822_v39 }
 0x4e9   : > { %v792_v34 = vmul.f32 %v1400_v22, %v791_v31  ;;  %v768_v35 = vpop.xlane.xlu0 %767 }
 0x4ea   : > { %v772_v37 = vmul.f32 %v768_v35, %v1629_v49 }
 0x4eb   : > { %v796_v36 = vsel %vm795_vm9, %v1400_v22, %v792_v34 }
 0x4ec   : > { %v818_v38 = vmul.f32 %v796_v36, %v750_v55  ;;  %v1402_v41 = vpop.eup %1401  ;;  %v776_v42 = vadd.f32 1e-05, %v772_v37 }
 0x4ed   : > { %v798_v6 = vmul.f32 %v1402_v41, %v775_v30  ;;  %vm804_vm10 = vweird.f32 %v1402_v41 }
 0x4ee   : > { %v823_v43 = vmul.f32 %v821_v33, %v818_v38  ;;  %1403 = vrsqrt.f32 %v776_v42  ;;  %vm805_vm12 = vmor %vm803_vm11, %vm804_vm10  ;;  %vm813_vm14 = vweird.f32 %v776_v42 }
 0x4ef   : > { %v799_v44 = vmul.f32 %v1402_v41, %v798_v6 }
 0x4f0   : > { %v1657_v45 = vadd.f32 %v826_v40, %v823_v43 }
 0x4f1   : > { %v800_v46 = vmul.f32 0.5, %v799_v44 }
 0x4f2   : > { %v835_v47 = vpack.c.bf16 %v1657_v45, %v1655_v7 }
 0x4f3   : > { %v801_v48 = vsub.f32 1.5, %v800_v46 }
 0x4f4   : > { %1267 = vmatmul.msk.bf16.vlgmr.msrb.gmra.mxu1 %vm399_vm1, %v835_v47  ;;  %v1404_v9 = vpop.eup %1403 }
 0x4f5   : > { %v802_v50 = vmul.f32 %v1402_v41, %v801_v48  ;;  %v808_v51 = vmul.f32 %v1404_v9, %v776_v42  ;;  %vm814_vm13 = vweird.f32 %v1404_v9 }
 0x4f6   : > { %vm815_vm15 = vmor %vm813_vm14, %vm814_vm13 }
 0x4f7   : > { %v809_v52 = vmul.f32 %v1404_v9, %v808_v51  ;;  %v806_v10 = vsel %vm805_vm12, %v1402_v41, %v802_v50 }
 0x4f8   : > { %v819_v55 = vmul.f32 %v806_v10, %v1636_v60  ;;  %v1305_v60 = vld [vmem:[%s1556_s30 + $0x18] sm:$0xff] }
 0x4f9   : > { %v810_v53 = vmul.f32 0.5, %v809_v52  ;;  %957 = vmatpush.bf16.msrb.mxu3 %v1305_v60 }
 0x4fa   : > { %v824_v59 = vmul.f32 %v821_v33, %v819_v55  ;;  %v921_v55 = vperm.slane %v1581_v13, 5 }
 0x4fb   : > { %v811_v54 = vsub.f32 1.5, %v810_v53 }
 0x4fc   : > { %v1664_v62 = vadd.f32 %v826_v40, %v824_v59 }
 0x4fd   : > { %v812_v56 = vmul.f32 %v1404_v9, %v811_v54  ;;  %958 = vmatpush.bf16.msrb.mxu3 %v1304_v2 }
 0x4ff   : > { %v816_v57 = vsel %vm815_vm15, %v1404_v9, %v812_v56 }
 0x500   : > { %v820_v58 = vmul.f32 %v816_v57, %v1642_v1 }
 0x501   : > { %959 = vmatpush.bf16.msrb.mxu3 %v1303_v3 }
 0x502   : > { %v825_v61 = vmul.f32 %v821_v33, %v820_v58 }
 0x504   : > { %v1666_v63 = vadd.f32 %v826_v40, %v825_v61 }
 0x505   : > { %960 = vmatpush.bf16.msrb.mxu3 %v1302_v5 }
 0x506   : > { %v836_v0 = vpack.c.bf16 %v1666_v63, %v1664_v62 }
 0x508   : > { %1268 = vmatmul.msk.bf16.gmra.mxu1 %vm399_vm1, %v836_v0 }
 0x571   : > { %v865_v1 = vpop.f32.mrf.mxu1 }
 0x572   : > { %v866_v8 = vadd.f32 %v865_v1, %v837_v4 }
 0x574   : > { %v875_v11 = vmul.f32 %v866_v8, %v866_v8 }
 0x576   : > { %v879_v12 = vmul.f32 %v875_v11, %v866_v8 }
 0x578   : > { %v883_v14 = vmul.f32 0.044715, %v879_v12 }
 0x579   : > { %v867_v15 = vpop.f32.mrf.mxu1 }
 0x57a   : > { %v887_v16 = vadd.f32 %v883_v14, %v866_v8  ;;  %v868_v17 = vadd.f32 %v867_v15, %v837_v4 }
 0x57c   : > { %v891_v18 = vmul.f32 0.7978846, %v887_v16  ;;  %v876_v19 = vmul.f32 %v868_v17, %v868_v17 }
 0x57e   : > { %v880_v20 = vmul.f32 %v876_v19, %v868_v17  ;;  %1405 = vtanh.f32 %v891_v18 }
 0x580   : > { %v884_v21 = vmul.f32 0.044715, %v880_v20 }
 0x582   : > { %v888_v22 = vadd.f32 %v884_v21, %v868_v17 }
 0x584   : > { %v892_v23 = vmul.f32 0.7978846, %v888_v22  ;;  %v1406_v24 = vpop.eup %1405 }
 0x585   : > { %v870_v25 = vpop.f32.mrf.mxu1  ;;  %v899_v27 = vadd.f32 1.0, %v1406_v24 }
 0x586   : > { %1407 = vtanh.f32 %v892_v23  ;;  %v871_v26 = vadd.f32 %v870_v25, %v837_v4 }
 0x587   : > { %v903_v31 = vmul.f32 0.5, %v899_v27 }
 0x588   : > { %v877_v28 = vmul.f32 %v871_v26, %v871_v26 }
 0x589   : > { %v907_v38 = vmul.f32 %v903_v31, %v866_v8 }
 0x58a   : > { %v881_v29 = vmul.f32 %v877_v28, %v871_v26 }
 0x58c   : > { %v1408_v30 = vpop.eup %1407  ;;  %v885_v33 = vmul.f32 0.044715, %v881_v29 }
 0x58d   : > { %v900_v32 = vadd.f32 1.0, %v1408_v30  ;;  %v872_v34 = vpop.f32.mrf.mxu1 }
 0x58e   : > { %v889_v36 = vadd.f32 %v885_v33, %v871_v26  ;;  %v873_v37 = vadd.f32 %v872_v34, %v837_v4 }
 0x58f   : > { %v904_v35 = vmul.f32 0.5, %v900_v32 }
 0x590   : > { %v893_v40 = vmul.f32 0.7978846, %v889_v36  ;;  %v878_v41 = vmul.f32 %v873_v37, %v873_v37 }
 0x591   : > { %v908_v39 = vmul.f32 %v904_v35, %v868_v17 }
 0x592   : > { %v882_v42 = vmul.f32 %v878_v41, %v873_v37  ;;  %1409 = vtanh.f32 %v893_v40 }
 0x593   : > { %v919_v6 = vpack.c.bf16 %v908_v39, %v907_v38 }
 0x594   : > { %v886_v43 = vmul.f32 0.044715, %v882_v42 }
 0x595   : > { %1285 = vmatmul.msk.bf16.vlgmr.msrb.gmra.mxu3 %vm946_vm0, %v919_v6 }
 0x596   : > { %v890_v44 = vadd.f32 %v886_v43, %v873_v37 }
 0x598   : > { %v894_v46 = vmul.f32 0.7978846, %v890_v44  ;;  %v1410_v47 = vpop.eup %1409  ;;  %v1064_v44 = vperm.slane %v1581_v13, 6 }
 0x599   : > { %v901_v48 = vadd.f32 1.0, %v1410_v47 }
 0x59a   : > { %1411 = vtanh.f32 %v894_v46 }
 0x59b   : > { %v905_v51 = vmul.f32 0.5, %v901_v48 }
 0x59d   : > { %v909_v10 = vmul.f32 %v905_v51, %v871_v26 }
 0x5a0   : > { %v1412_v9 = vpop.eup %1411 }
 0x5a1   : > { %v902_v50 = vadd.f32 1.0, %v1412_v9 }
 0x5a3   : > { %v906_v52 = vmul.f32 0.5, %v902_v50  ;;  %v1069_v50 = vperm.slane %v1581_v13, 7 }
 0x5a5   : > { %v910_v53 = vmul.f32 %v906_v52, %v873_v37 }
 0x5a7   : > { %v920_v54 = vpack.c.bf16 %v910_v53, %v909_v10 }
 0x5a9   : > { %1286 = vmatmul.msk.bf16.gmra.mxu3 %vm946_vm0, %v920_v54 }
 0x618   : > { %v962_v56 = vpop.f32.mrf.mxu3 }
 0x619   : > { %v963_v57 = vadd.f32 %v962_v56, %v921_v55 }
 0x61b   : > { %v972_v58 = vadd.f32 %v963_v57, %v1655_v7 }
 0x61d   : > { %v976_v59 = vsel %vm399_vm1, %v972_v58, 0.0 }
 0x61e   : > { %977 = vadd.xlane.f32.xlu2 %v976_v59 }
 0x620   : > { %v964_v61 = vpop.f32.mrf.mxu3 }
 0x621   : > { %v965_v0 = vadd.f32 %v964_v61, %v921_v55 }
 0x623   : > { %v973_v60 = vadd.f32 %v965_v0, %v1657_v45 }
 0x625   : > { %v979_v2 = vsel %vm399_vm1, %v973_v60, 0.0 }
 0x626   : > { %980 = vadd.xlane.f32.xlu0 %v979_v2 }
 0x62c   : > { %v967_v3 = vpop.f32.mrf.mxu3 }
 0x62d   : > { %v968_v4 = vadd.f32 %v967_v3, %v921_v55 }
 0x62f   : > { %v974_v1 = vadd.f32 %v968_v4, %v1664_v62 }
 0x631   : > { %v982_v5 = vsel %vm399_vm1, %v974_v1, 0.0 }
 0x632   : > { %983 = vadd.xlane.f32.xlu2 %v982_v5 }
 0x634   : > { %v969_v8 = vpop.f32.mrf.mxu3 }
 0x635   : > { %v970_v11 = vadd.f32 %v969_v8, %v921_v55 }
 0x637   : > { %v975_v7 = vadd.f32 %v970_v11, %v1666_v63 }
 0x639   : > { %v985_v12 = vsel %vm399_vm1, %v975_v7, 0.0 }
 0x63a   : > { %986 = vadd.xlane.f32.xlu0 %v985_v12 }
 0x691   : > { %v978_v14 = vpop.xlane.xlu2 %977 }
 0x692   : > { %v988_v45 = vmul.f32 %v978_v14, %v1629_v49 }
 0x694   : > { %v992_v15 = vsub.f32 %v972_v58, %v988_v45 }
 0x696   : > { %v996_v16 = vmul.f32 %v992_v15, %v992_v15 }
 0x698   : > { %v1000_v17 = vsel %vm399_vm1, %v996_v16, 0.0 }
 0x699   : > { %1001 = vadd.xlane.f32.xlu2 %v1000_v17  ;;  %v981_v18 = vpop.xlane.xlu0 %980 }
 0x69a   : > { %v989_v62 = vmul.f32 %v981_v18, %v1629_v49 }
 0x69c   : > { %v993_v19 = vsub.f32 %v973_v60, %v989_v62 }
 0x69e   : > { %v997_v20 = vmul.f32 %v993_v19, %v993_v19 }
 0x6a0   : > { %v1003_v21 = vsel %vm399_vm1, %v997_v20, 0.0 }
 0x6a1   : > { %1004 = vadd.xlane.f32.xlu0 %v1003_v21 }
 0x6a5   : > { %v984_v63 = vpop.xlane.xlu2 %983 }
 0x6a6   : > { %v990_v22 = vmul.f32 %v984_v63, %v1629_v49 }
 0x6a8   : > { %v1692_v23 = vsub.f32 %v974_v1, %v990_v22 }
 0x6aa   : > { %v998_v24 = vmul.f32 %v1692_v23, %v1692_v23 }
 0x6ac   : > { %v1006_v25 = vsel %vm399_vm1, %v998_v24, 0.0 }
 0x6ad   : > { %1007 = vadd.xlane.f32.xlu1 %v1006_v25  ;;  %v987_v26 = vpop.xlane.xlu0 %986 }
 0x6ae   : > { %v991_v27 = vmul.f32 %v987_v26, %v1629_v49 }
 0x6b0   : > { %v1698_v28 = vsub.f32 %v975_v7, %v991_v27 }
 0x6b2   : > { %v999_v29 = vmul.f32 %v1698_v28, %v1698_v28 }
 0x6b4   : > { %v1009_v30 = vsel %vm399_vm1, %v999_v29, 0.0 }
 0x6b5   : > { %1010 = vadd.xlane.f32.xlu2 %v1009_v30 }
 0x70c   : > { %v1002_v31 = vpop.xlane.xlu2 %1001 }
 0x70d   : > { %v1012_v32 = vmul.f32 %v1002_v31, %v1629_v49 }
 0x70f   : > { %v1016_v33 = vadd.f32 1e-05, %v1012_v32 }
 0x711   : > { %1413 = vrsqrt.f32 %v1016_v33  ;;  %vm1026_vm3 = vweird.f32 %v1016_v33 }
 0x714   : > { %v1005_v34 = vpop.xlane.xlu0 %1004 }
 0x715   : > { %v1013_v35 = vmul.f32 %v1005_v34, %v1629_v49 }
 0x717   : > { %v1414_v36 = vpop.eup %1413  ;;  %v1017_v37 = vadd.f32 1e-05, %v1013_v35 }
 0x718   : > { %v1021_v38 = vmul.f32 %v1414_v36, %v1016_v33  ;;  %vm1027_vm2 = vweird.f32 %v1414_v36 }
 0x719   : > { %1415 = vrsqrt.f32 %v1017_v37  ;;  %vm1028_vm4 = vmor %vm1026_vm3, %vm1027_vm2  ;;  %vm1036_vm6 = vweird.f32 %v1017_v37 }
 0x71a   : > { %v1022_v39 = vmul.f32 %v1414_v36, %v1021_v38 }
 0x71c   : > { %v1023_v40 = vmul.f32 0.5, %v1022_v39 }
 0x71e   : > { %v1024_v41 = vsub.f32 1.5, %v1023_v40 }
 0x71f   : > { %v1416_v42 = vpop.eup %1415 }
 0x720   : > { %v1025_v6 = vmul.f32 %v1414_v36, %v1024_v41  ;;  %v1031_v43 = vmul.f32 %v1416_v42, %v1017_v37  ;;  %v1008_v46 = vpop.xlane.xlu1 %1007  ;;  %vm1037_vm5 = vweird.f32 %v1416_v42 }
 0x721   : > { %v1014_v9 = vmul.f32 %v1008_v46, %v1629_v49  ;;  %vm1038_vm7 = vmor %vm1036_vm6, %vm1037_vm5 }
 0x722   : > { %v1029_v47 = vsel %vm1028_vm4, %v1414_v36, %v1025_v6  ;;  %v1032_v48 = vmul.f32 %v1416_v42, %v1031_v43 }
 0x723   : > { %v1060_v51 = vmul.f32 %v1029_v47, %v992_v15  ;;  %v1018_v10 = vadd.f32 1e-05, %v1014_v9 }
 0x724   : > { %v1033_v52 = vmul.f32 0.5, %v1032_v48 }
 0x725   : > { %v1065_v53 = vmul.f32 %v1064_v44, %v1060_v51  ;;  %1417 = vrsqrt.f32 %v1018_v10  ;;  %vm1046_vm9 = vweird.f32 %v1018_v10 }
 0x726   : > { %v1034_v54 = vsub.f32 1.5, %v1033_v52 }
 0x727   : > { %v1070_v55 = vadd.f32 %v1069_v50, %v1065_v53 }
 0x728   : > { %v1035_v56 = vmul.f32 %v1416_v42, %v1034_v54  ;;  %v1011_v57 = vpop.xlane.xlu2 %1010 }
 0x729   : > { %1074 = vst.msk [vmem:[#allocation2] sm:$0xff] %vm399_vm1, %v1070_v55  ;;  %v1015_v59 = vmul.f32 %v1011_v57, %v1629_v49 }
 0x72a   : > { %v1039_v58 = vsel %vm1038_vm7, %v1416_v42, %v1035_v56 }
 0x72b   : > { %v1061_v61 = vmul.f32 %v1039_v58, %v993_v19  ;;  %v1418_v0 = vpop.eup %1417  ;;  %v1019_v13 = vadd.f32 1e-05, %v1015_v59 }
 0x72c   : > { %v1041_v2 = vmul.f32 %v1418_v0, %v1018_v10  ;;  %vm1047_vm8 = vweird.f32 %v1418_v0 }
 0x72d   : > { %v1066_v60 = vmul.f32 %v1064_v44, %v1061_v61  ;;  %1419 = vrsqrt.f32 %v1019_v13  ;;  %vm1048_vm10 = vmor %vm1046_vm9, %vm1047_vm8  ;;  %vm1056_vm12 = vweird.f32 %v1019_v13 }
 0x72e   : > { %v1042_v4 = vmul.f32 %v1418_v0, %v1041_v2 }
 0x72f   : > { %v1071_v3 = vadd.f32 %v1069_v50, %v1066_v60 }
 0x730   : > { %v1043_v1 = vmul.f32 0.5, %v1042_v4 }
 0x731   : > { %1075 = vst.msk [vmem:[#allocation2 + $0x8] sm:$0xff] %vm399_vm1, %v1071_v3 }
 0x732   : > { %v1044_v5 = vsub.f32 1.5, %v1043_v1 }
 0x733   : > { %v1420_v8 = vpop.eup %1419 }
 0x734   : > { %v1045_v11 = vmul.f32 %v1418_v0, %v1044_v5  ;;  %v1051_v7 = vmul.f32 %v1420_v8, %v1019_v13  ;;  %vm1057_vm11 = vweird.f32 %v1420_v8 }
 0x735   : > { %vm1058_vm13 = vmor %vm1056_vm12, %vm1057_vm11 }
 0x736   : > { %v1049_v12 = vsel %vm1048_vm10, %v1418_v0, %v1045_v11  ;;  %v1052_v49 = vmul.f32 %v1420_v8, %v1051_v7 }
 0x737   : > { %v1062_v14 = vmul.f32 %v1049_v12, %v1692_v23 }
 0x738   : > { %v1053_v45 = vmul.f32 0.5, %v1052_v49 }
 0x739   : > { %v1067_v15 = vmul.f32 %v1064_v44, %v1062_v14 }
 0x73a   : > { %v1054_v16 = vsub.f32 1.5, %v1053_v45 }
 0x73b   : > { %v1072_v17 = vadd.f32 %v1069_v50, %v1067_v15 }
 0x73c   : > { %v1055_v18 = vmul.f32 %v1420_v8, %v1054_v16 }
 0x73d   : > { %1076 = vst.msk [vmem:[#allocation2 + $0x10] sm:$0xff] %vm399_vm1, %v1072_v17 }
 0x73e   : > { %v1059_v62 = vsel %vm1058_vm13, %v1420_v8, %v1055_v18 }
 0x73f   : > { %v1063_v19 = vmul.f32 %v1059_v62, %v1698_v28 }
 0x741   : > { %v1068_v20 = vmul.f32 %v1064_v44, %v1063_v19  ;;  %1081 = sbr.rel (%p1287_p8) target bundleno = 1866 (0x74a), region = 52 }
 0x743   : > { %v1073_v21 = vadd.f32 %v1069_v50, %v1068_v20 }
 0x745   : > { %1077 = vst.msk [vmem:[#allocation2 + $0x18] sm:$0xff] %vm399_vm1, %v1073_v21 }
 0x746   : > { %1082 = vst.msk [vmem:[%s1564_s14] sm:$0xff] %vm399_vm1, %v1070_v55 }
 0x747   : > { %1083 = vst.msk [vmem:[%s1564_s14 + $0x8] sm:$0xff] %vm399_vm1, %v1071_v3 }
 0x748   : > { %1084 = vst.msk [vmem:[%s1564_s14 + $0x10] sm:$0xff] %vm399_vm1, %v1072_v17 }
 0x749   : > { %1085 = vst.msk [vmem:[%s1564_s14 + $0x18] sm:$0xff] %vm399_vm1, %v1073_v21 }
 0x74a PF: > { %s16_s25 = sadd.s32 1, %s1459_s25   ;;  %s1750_s21 = smov %s1451_s23 }
 0x74b   : > { %p13_p9 = scmp.ge.s32.totalorder %s16_s25, 6   ;;  %s1751_s22 = smov %s1455_s24 }
 0x74c   : > { %s1752_s23 = smov %s1755_s26  ;;  %s1753_s24 = smov %s1759_s27 }
 0x74d   :  { %15 = sbr.rel (!%p13_p9) target bundleno = 4 (0x4), region = 97 }

</bundles_post_ra>
